<compile_context>
chip_gen: v7x
topology: tpu7x:2x2x1
jax: 0.10.0
libtpu: 0.0.40
codegen_flags: <defaults>
</compile_context>

<pallas_src>
import functools

import numpy as np
import jax
import jax.numpy as jnp
from jax.experimental import pallas as pl
from jax.experimental.pallas import tpu as pltpu


MXU_DTYPE = jnp.bfloat16   # matmul operand dtype (accumulation is f32)


def _round_up(v, m):
    return ((v + m - 1) // m) * m


def _make_rect_plk_kernel(H, W, C, dim, m, n):
    """Build the fused kernel.  Returns (kernel_fn, K, L, n_mask_rows)."""
    HW = H * W
    pm, pn = m // 2, n // 2
    halo = pm * W + pm                       # max |dy*W + dx| over all taps
    base = _round_up(halo, 128)              # lane-aligned offset of pixel (0,0)
    L = _round_up(base + HW + halo, 128)     # zero-padded flat length
    # (KH, KW, pad_h, pad_w) for the three convs, in weight-concat order.
    convs = ((m, n, pm, pn), (n, m, pn, pm), (n, n, pn, pn))
    n_taps = sum(kh * kw for kh, kw, _, _ in convs)
    K = n_taps * dim
    n_mask_rows = _round_up(2 * pm + 1, 8)

    def kernel(x_ref, w_ref, b_ref, mask_ref, o_ref, xpf_ref, pat_ref):
        # ---- stage the first `dim` channels into the zero-padded flat image.
        # Only the halo/pad columns need (re-)zeroing; the centre is always
        # overwritten.  Zeroing is unconditional: with a "parallel" batch axis
        # each core owns its own scratch and may never see program_id == 0.
        xpf_ref[:, :base] = jnp.zeros((dim, base), MXU_DTYPE)
        xpf_ref[:, base + HW:] = jnp.zeros((dim, L - base - HW), MXU_DTYPE)
        xpf_ref[:, base:base + HW] = x_ref[0, :dim, :].astype(MXU_DTYPE)

        # ---- folded im2col: rows = (conv, ky, kx, cin), lanes = H*W.
        # Each tap is a contiguous lane-offset slice of the flat padded
        # image; a per-dx lane mask zeroes horizontally wrapped pixels.
        t = 0
        for kh, kw, ph, pw in convs:
            for i in range(kh):
                for j in range(kw):
                    dy, dx = i - ph, j - pw
                    start = base + dy * W + dx
                    win = xpf_ref[:, start:start + HW]        # (dim, HW) bf16
                    if dx != 0:
                        win = win * mask_ref[dx + pm:dx + pm + 1, :]
                    pat_ref[t * dim:(t + 1) * dim, :] = win
                    t += 1

        # ---- one big-K MXU matmul covering all three convolutions at once.
        acc = jnp.dot(w_ref[...], pat_ref[...],
                      preferred_element_type=jnp.float32)     # (dim, HW) f32
        acc = acc + b_ref[...]                                # fused bias
        o_ref[0, :dim, :] = acc.astype(o_ref.dtype)

        # ---- partial conv: remaining channels pass through bit-exactly.
        if C > dim:
            o_ref[0, dim:, :] = x_ref[0, dim:, :]

    return kernel, K, L, n_mask_rows


def rect_sparse_plk_conv2d(x, params, *, dim, kernel_size):
    """x: (N, C, H, W) NCHW with C >= dim.  params: PyTorch-layout weights
    w_mn (dim,dim,m,n), w_nm (dim,dim,n,m), w_nn (dim,dim,n,n) and biases
    b_mn / b_nm / b_nn of shape (dim,)."""
    N, C, H, W = x.shape
    m = kernel_size
    n = kernel_size // 3
    assert m % 2 == 1 and n % 2 == 1, (
        "kernel_size and kernel_size//3 must both be odd for 'same' output "
        "shapes (same implicit restriction as the PyTorch module)")
    assert C >= dim
    HW = H * W
    pm = m // 2

    kernel, K, L, n_mask_rows = _make_rect_plk_kernel(H, W, C, dim, m, n)

    # Fold the three conv weights into a single (dim, K) matrix whose K axis
    # is ordered (conv, ky, kx, cin) to match the kernel's im2col row order.
    def _flat(w):
        co, ci, kh, kw = w.shape
        return jnp.transpose(w, (0, 2, 3, 1)).reshape(co, kh * kw * ci)

    w_flat = jnp.concatenate(
        [_flat(params["w_mn"]), _flat(params["w_nm"]), _flat(params["w_nn"])],
        axis=1).astype(MXU_DTYPE)                         # (dim, K)
    b_sum = (params["b_mn"] + params["b_nm"] + params["b_nn"]
             ).reshape(dim, 1).astype(jnp.float32)        # (dim, 1)

    # Horizontal-border validity masks, one lane-row per dx in [-pm, pm]
    # (padded to a multiple of 8 rows for clean tiling).
    cols = np.arange(HW) % W
    mask_np = np.ones((n_mask_rows, HW), np.float32)
    for dx in range(-pm, pm + 1):
        mask_np[dx + pm] = ((cols + dx >= 0) & (cols + dx < W))
    masks = jnp.asarray(mask_np, dtype=MXU_DTYPE)         # (n_mask_rows, HW)

    # NCHW -> (N, C, H*W) is a free metadata reshape; H*W lands on lanes.
    x_flat = x.reshape(N, C, HW)

    out = pl.pallas_call(
        kernel,
        out_shape=jax.ShapeDtypeStruct((N, C, HW), x.dtype),
        grid=(N,),
        in_specs=[
            pl.BlockSpec((1, C, HW), lambda b: (b, 0, 0)),
            pl.BlockSpec((dim, K), lambda b: (0, 0)),
            pl.BlockSpec((dim, 1), lambda b: (0, 0)),
            pl.BlockSpec((n_mask_rows, HW), lambda b: (0, 0)),
        ],
        out_specs=pl.BlockSpec((1, C, HW), lambda b: (b, 0, 0)),
        scratch_shapes=[
            pltpu.VMEM((dim, L), MXU_DTYPE),      # zero-padded flat image
            pltpu.VMEM((K, HW), MXU_DTYPE),       # folded im2col operand
        ],
        compiler_params=pltpu.CompilerParams(
            dimension_semantics=("parallel",)),
    )(x_flat, w_flat, b_sum, masks)

    # TODO(synk): for large H*W add an H-tile grid axis with halo rows so the
    # (K, HW) im2col scratch fits v7x's 64 MiB VMEM, and mark it "parallel".
    # TODO(synk): the eval-path in-place update (x[:, :dim] = ...) could use
    # input_output_aliases (with buffer donation) to skip the pass-through
    # copy entirely; kept explicit here so the caller's x stays valid.
    return out.reshape(N, C, H, W)


# ----------------------------------------------------------------------------
# Deterministic synthetic parameters + pure-JAX reference
# ----------------------------------------------------------------------------
def init_params(key, dim, kernel_size):
    m = kernel_size
    n = kernel_size // 3
    ks = jax.random.split(key, 6)

    def tn(k, shape):
        return (0.02 * jax.random.truncated_normal(k, -2.0, 2.0, shape)
                ).astype(jnp.float32)

    def unif(k, fan_in):
        bound = 1.0 / float(np.sqrt(fan_in))
        return jax.random.uniform(k, (dim,), jnp.float32, -bound, bound)

    return {
        "w_mn": tn(ks[0], (dim, dim, m, n)),
        "w_nm": tn(ks[1], (dim, dim, n, m)),
        "w_nn": tn(ks[2], (dim, dim, n, n)),
        "b_mn": unif(ks[3], dim * m * n),
        "b_nm": unif(ks[4], dim * n * m),
        "b_nn": unif(ks[5], dim * n * n),
    }


def reference(x, params, dim, kernel_size):
    """f32 lax.conv reference matching the PyTorch forward."""
    m = kernel_size
    n = kernel_size // 3

    def conv(xi, w, b, ph, pw):
        y = jax.lax.conv_general_dilated(
            xi, w, window_strides=(1, 1), padding=[(ph, ph), (pw, pw)],
            dimension_numbers=("NCHW", "OIHW", "NCHW"))
        return y + b[None, :, None, None]

    x1 = x[:, :dim]
    y1 = (conv(x1, params["w_mn"], params["b_mn"], m // 2, n // 2)
          + conv(x1, params["w_nm"], params["b_nm"], n // 2, m // 2)
          + conv(x1, params["w_nn"], params["b_nn"], n // 2, n // 2))
    return jnp.concatenate([y1, x[:, dim:]], axis=1)


# ----------------------------------------------------------------------------
if __name__ == "__main__":
    # Small config: partial conv over the first 16 of 32 channels, 16x16
    # spatial, kernel_size=9 -> conv kernels (9,3), (3,9), (3,3).
    dim, C, H, W = 16, 32, 16, 16
    kernel_size = 9
    N = 2

    key = jax.random.PRNGKey(0)
    pkey, xkey = jax.random.split(key)
    params = init_params(pkey, dim, kernel_size)
    x = jax.random.normal(xkey, (N, C, H, W), jnp.float32)

    fwd = jax.jit(functools.partial(rect_sparse_plk_conv2d, dim=dim,
                                    kernel_size=kernel_size))
    y = fwd(x, params)
    jax.block_until_ready(y)

    assert y.shape == (N, C, H, W), y.shape
    assert bool(jnp.all(jnp.isfinite(y)))

    # Loose check vs the f32 reference (kernel matmul operands are bf16).
    ref = reference(x, params, dim, kernel_size)
    err = float(jnp.max(jnp.abs(y - ref)))
    assert err < 5e-2, f"max abs error vs reference: {err}"
    assert bool(jnp.all(y[:, dim:] == x[:, dim:]))   # pass-through is exact

    print("KERNEL_OK")
</pallas_src>

<mosaic_0001>
module attributes {stable_mosaic.version = 11 : i64} {
  func.func @kernel(%arg0: i32, %arg1: memref<1x32x256xf32, #tpu.memory_space<vmem>>, %arg2: memref<16x1008xbf16, #tpu.memory_space<vmem>>, %arg3: memref<16x1xf32, #tpu.memory_space<vmem>>, %arg4: memref<16x256xbf16, #tpu.memory_space<vmem>>, %arg5: memref<1x32x256xf32, #tpu.memory_space<vmem>>, %arg6: memref<16x512xbf16, #tpu.memory_space<vmem>>, %arg7: memref<1008x256xbf16, #tpu.memory_space<vmem>>) attributes {dimension_semantics = [#tpu.dimension_semantics<parallel>], iteration_bounds = array<i64: 2>, scalar_prefetch = 0 : i64, scratch_operands = 2 : i64, tpu.core_type = #tpu.core_type<tc>, window_params = [{transform_indices = @transform_0, window_bounds = array<i64: 1, 32, 256>}, {pipeline_mode = #tpu.pipeline_mode<synchronous>, transform_indices = @transform_1, window_bounds = array<i64: 16, 1008>}, {pipeline_mode = #tpu.pipeline_mode<synchronous>, transform_indices = @transform_2, window_bounds = array<i64: 16, 1>}, {pipeline_mode = #tpu.pipeline_mode<synchronous>, transform_indices = @transform_3, window_bounds = array<i64: 16, 256>}, {transform_indices = @transform_4, window_bounds = array<i64: 1, 32, 256>}]} {
    %cst = arith.constant 0.000000e+00 : bf16
    %0 = vector.broadcast %cst : bf16 to vector<16x128xbf16>
    %c0 = arith.constant 0 : index
    %c0_0 = arith.constant 0 : index
    %1 = vector.load %arg6[%c0, %c0_0] : memref<16x512xbf16, #tpu.memory_space<vmem>>, vector<16x128xbf16>
    tpu.vector_store %arg6[%c0, %c0_0], %0 {strides = array<i32>} : memref<16x512xbf16, #tpu.memory_space<vmem>>, vector<16x128xbf16>,
    %cst_1 = arith.constant 0.000000e+00 : bf16
    %2 = vector.broadcast %cst_1 : bf16 to vector<16x128xbf16>
    %c0_2 = arith.constant 0 : index
    %c384 = arith.constant 384 : index
    %3 = vector.load %arg6[%c0_2, %c384] : memref<16x512xbf16, #tpu.memory_space<vmem>>, vector<16x128xbf16>
    tpu.vector_store %arg6[%c0_2, %c384], %2 {strides = array<i32>} : memref<16x512xbf16, #tpu.memory_space<vmem>>, vector<16x128xbf16>,
    %c0_3 = arith.constant 0 : index
    %c0_4 = arith.constant 0 : index
    %c0_5 = arith.constant 0 : index
    %4 = vector.load %arg1[%c0_3, %c0_4, %c0_5] : memref<1x32x256xf32, #tpu.memory_space<vmem>>, vector<1x16x256xf32>
    %5 = vector.shape_cast %4 : vector<1x16x256xf32> to vector<16x256xf32>
    %6 = arith.truncf %5 : vector<16x256xf32> to vector<16x256xbf16>
    %c0_6 = arith.constant 0 : index
    %c128 = arith.constant 128 : index
    %7 = vector.load %arg6[%c0_6, %c128] : memref<16x512xbf16, #tpu.memory_space<vmem>>, vector<16x256xbf16>
    tpu.vector_store %arg6[%c0_6, %c128], %6 {strides = array<i32>} : memref<16x512xbf16, #tpu.memory_space<vmem>>, vector<16x256xbf16>,
    %c0_7 = arith.constant 0 : index
    %c63 = arith.constant 63 : index
    %8 = vector.load %arg6[%c0_7, %c63] : memref<16x512xbf16, #tpu.memory_space<vmem>>, vector<16x256xbf16>
    %c3 = arith.constant 3 : index
    %c0_8 = arith.constant 0 : index
    %9 = vector.load %arg4[%c3, %c0_8] : memref<16x256xbf16, #tpu.memory_space<vmem>>, vector<1x256xbf16>
    %10 = vector.broadcast %9 : vector<1x256xbf16> to vector<16x256xbf16>
    %11 = arith.mulf %8, %10 : vector<16x256xbf16>
    %c0_9 = arith.constant 0 : index
    %c0_10 = arith.constant 0 : index
    %12 = vector.load %arg7[%c0_9, %c0_10] : memref<1008x256xbf16, #tpu.memory_space<vmem>>, vector<16x256xbf16>
    tpu.vector_store %arg7[%c0_9, %c0_10], %11 {strides = array<i32>} : memref<1008x256xbf16, #tpu.memory_space<vmem>>, vector<16x256xbf16>,
    %c0_11 = arith.constant 0 : index
    %c64 = arith.constant 64 : index
    %13 = vector.load %arg6[%c0_11, %c64] : memref<16x512xbf16, #tpu.memory_space<vmem>>, vector<16x256xbf16>
    %c16 = arith.constant 16 : index
    %c0_12 = arith.constant 0 : index
    %14 = vector.load %arg7[%c16, %c0_12] : memref<1008x256xbf16, #tpu.memory_space<vmem>>, vector<16x256xbf16>
    tpu.vector_store %arg7[%c16, %c0_12], %13 {strides = array<i32>} : memref<1008x256xbf16, #tpu.memory_space<vmem>>, vector<16x256xbf16>,
    %c0_13 = arith.constant 0 : index
    %c65 = arith.constant 65 : index
    %15 = vector.load %arg6[%c0_13, %c65] : memref<16x512xbf16, #tpu.memory_space<vmem>>, vector<16x256xbf16>
    %c5 = arith.constant 5 : index
    %c0_14 = arith.constant 0 : index
    %16 = vector.load %arg4[%c5, %c0_14] : memref<16x256xbf16, #tpu.memory_space<vmem>>, vector<1x256xbf16>
    %17 = vector.broadcast %16 : vector<1x256xbf16> to vector<16x256xbf16>
    %18 = arith.mulf %15, %17 : vector<16x256xbf16>
    %c32 = arith.constant 32 : index
    %c0_15 = arith.constant 0 : index
    %19 = vector.load %arg7[%c32, %c0_15] : memref<1008x256xbf16, #tpu.memory_space<vmem>>, vector<16x256xbf16>
    tpu.vector_store %arg7[%c32, %c0_15], %18 {strides = array<i32>} : memref<1008x256xbf16, #tpu.memory_space<vmem>>, vector<16x256xbf16>,
    %c0_16 = arith.constant 0 : index
    %c79 = arith.constant 79 : index
    %20 = vector.load %arg6[%c0_16, %c79] : memref<16x512xbf16, #tpu.memory_space<vmem>>, vector<16x256xbf16>
    %c3_17 = arith.constant 3 : index
    %c0_18 = arith.constant 0 : index
    %21 = vector.load %arg4[%c3_17, %c0_18] : memref<16x256xbf16, #tpu.memory_space<vmem>>, vector<1x256xbf16>
    %22 = vector.broadcast %21 : vector<1x256xbf16> to vector<16x256xbf16>
    %23 = arith.mulf %20, %22 : vector<16x256xbf16>
    %c48 = arith.constant 48 : index
    %c0_19 = arith.constant 0 : index
    %24 = vector.load %arg7[%c48, %c0_19] : memref<1008x256xbf16, #tpu.memory_space<vmem>>, vector<16x256xbf16>
    tpu.vector_store %arg7[%c48, %c0_19], %23 {strides = array<i32>} : memref<1008x256xbf16, #tpu.memory_space<vmem>>, vector<16x256xbf16>,
    %c0_20 = arith.constant 0 : index
    %c80 = arith.constant 80 : index
    %25 = vector.load %arg6[%c0_20, %c80] : memref<16x512xbf16, #tpu.memory_space<vmem>>, vector<16x256xbf16>
    %c64_21 = arith.constant 64 : index
    %c0_22 = arith.constant 0 : index
    %26 = vector.load %arg7[%c64_21, %c0_22] : memref<1008x256xbf16, #tpu.memory_space<vmem>>, vector<16x256xbf16>
    tpu.vector_store %arg7[%c64_21, %c0_22], %25 {strides = array<i32>} : memref<1008x256xbf16, #tpu.memory_space<vmem>>, vector<16x256xbf16>,
    %c0_23 = arith.constant 0 : index
    %c81 = arith.constant 81 : index
    %27 = vector.load %arg6[%c0_23, %c81] : memref<16x512xbf16, #tpu.memory_space<vmem>>, vector<16x256xbf16>
    %c5_24 = arith.constant 5 : index
    %c0_25 = arith.constant 0 : index
    %28 = vector.load %arg4[%c5_24, %c0_25] : memref<16x256xbf16, #tpu.memory_space<vmem>>, vector<1x256xbf16>
    %29 = vector.broadcast %28 : vector<1x256xbf16> to vector<16x256xbf16>
    %30 = arith.mulf %27, %29 : vector<16x256xbf16>
    %c80_26 = arith.constant 80 : index
    %c0_27 = arith.constant 0 : index
    %31 = vector.load %arg7[%c80_26, %c0_27] : memref<1008x256xbf16, #tpu.memory_space<vmem>>, vector<16x256xbf16>
    tpu.vector_store %arg7[%c80_26, %c0_27], %30 {strides = array<i32>} : memref<1008x256xbf16, #tpu.memory_space<vmem>>, vector<16x256xbf16>,
    %c0_28 = arith.constant 0 : index
    %c95 = arith.constant 95 : index
    %32 = vector.load %arg6[%c0_28, %c95] : memref<16x512xbf16, #tpu.memory_space<vmem>>, vector<16x256xbf16>
    %c3_29 = arith.constant 3 : index
    %c0_30 = arith.constant 0 : index
    %33 = vector.load %arg4[%c3_29, %c0_30] : memref<16x256xbf16, #tpu.memory_space<vmem>>, vector<1x256xbf16>
    %34 = vector.broadcast %33 : vector<1x256xbf16> to vector<16x256xbf16>
    %35 = arith.mulf %32, %34 : vector<16x256xbf16>
    %c96 = arith.constant 96 : index
    %c0_31 = arith.constant 0 : index
    %36 = vector.load %arg7[%c96, %c0_31] : memref<1008x256xbf16, #tpu.memory_space<vmem>>, vector<16x256xbf16>
    tpu.vector_store %arg7[%c96, %c0_31], %35 {strides = array<i32>} : memref<1008x256xbf16, #tpu.memory_space<vmem>>, vector<16x256xbf16>,
    %c0_32 = arith.constant 0 : index
    %c96_33 = arith.constant 96 : index
    %37 = vector.load %arg6[%c0_32, %c96_33] : memref<16x512xbf16, #tpu.memory_space<vmem>>, vector<16x256xbf16>
    %c112 = arith.constant 112 : index
    %c0_34 = arith.constant 0 : index
    %38 = vector.load %arg7[%c112, %c0_34] : memref<1008x256xbf16, #tpu.memory_space<vmem>>, vector<16x256xbf16>
    tpu.vector_store %arg7[%c112, %c0_34], %37 {strides = array<i32>} : memref<1008x256xbf16, #tpu.memory_space<vmem>>, vector<16x256xbf16>,
    %c0_35 = arith.constant 0 : index
    %c97 = arith.constant 97 : index
    %39 = vector.load %arg6[%c0_35, %c97] : memref<16x512xbf16, #tpu.memory_space<vmem>>, vector<16x256xbf16>
    %c5_36 = arith.constant 5 : index
    %c0_37 = arith.constant 0 : index
    %40 = vector.load %arg4[%c5_36, %c0_37] : memref<16x256xbf16, #tpu.memory_space<vmem>>, vector<1x256xbf16>
    %41 = vector.broadcast %40 : vector<1x256xbf16> to vector<16x256xbf16>
    %42 = arith.mulf %39, %41 : vector<16x256xbf16>
    %c128_38 = arith.constant 128 : index
    %c0_39 = arith.constant 0 : index
    %43 = vector.load %arg7[%c128_38, %c0_39] : memref<1008x256xbf16, #tpu.memory_space<vmem>>, vector<16x256xbf16>
    tpu.vector_store %arg7[%c128_38, %c0_39], %42 {strides = array<i32>} : memref<1008x256xbf16, #tpu.memory_space<vmem>>, vector<16x256xbf16>,
    %c0_40 = arith.constant 0 : index
    %c111 = arith.constant 111 : index
    %44 = vector.load %arg6[%c0_40, %c111] : memref<16x512xbf16, #tpu.memory_space<vmem>>, vector<16x256xbf16>
    %c3_41 = arith.constant 3 : index
    %c0_42 = arith.constant 0 : index
    %45 = vector.load %arg4[%c3_41, %c0_42] : memref<16x256xbf16, #tpu.memory_space<vmem>>, vector<1x256xbf16>
    %46 = vector.broadcast %45 : vector<1x256xbf16> to vector<16x256xbf16>
    %47 = arith.mulf %44, %46 : vector<16x256xbf16>
    %c144 = arith.constant 144 : index
    %c0_43 = arith.constant 0 : index
    %48 = vector.load %arg7[%c144, %c0_43] : memref<1008x256xbf16, #tpu.memory_space<vmem>>, vector<16x256xbf16>
    tpu.vector_store %arg7[%c144, %c0_43], %47 {strides = array<i32>} : memref<1008x256xbf16, #tpu.memory_space<vmem>>, vector<16x256xbf16>,
    %c0_44 = arith.constant 0 : index
    %c112_45 = arith.constant 112 : index
    %49 = vector.load %arg6[%c0_44, %c112_45] : memref<16x512xbf16, #tpu.memory_space<vmem>>, vector<16x256xbf16>
    %c160 = arith.constant 160 : index
    %c0_46 = arith.constant 0 : index
    %50 = vector.load %arg7[%c160, %c0_46] : memref<1008x256xbf16, #tpu.memory_space<vmem>>, vector<16x256xbf16>
    tpu.vector_store %arg7[%c160, %c0_46], %49 {strides = array<i32>} : memref<1008x256xbf16, #tpu.memory_space<vmem>>, vector<16x256xbf16>,
    %c0_47 = arith.constant 0 : index
    %c113 = arith.constant 113 : index
    %51 = vector.load %arg6[%c0_47, %c113] : memref<16x512xbf16, #tpu.memory_space<vmem>>, vector<16x256xbf16>
    %c5_48 = arith.constant 5 : index
    %c0_49 = arith.constant 0 : index
    %52 = vector.load %arg4[%c5_48, %c0_49] : memref<16x256xbf16, #tpu.memory_space<vmem>>, vector<1x256xbf16>
    %53 = vector.broadcast %52 : vector<1x256xbf16> to vector<16x256xbf16>
    %54 = arith.mulf %51, %53 : vector<16x256xbf16>
    %c176 = arith.constant 176 : index
    %c0_50 = arith.constant 0 : index
    %55 = vector.load %arg7[%c176, %c0_50] : memref<1008x256xbf16, #tpu.memory_space<vmem>>, vector<16x256xbf16>
    tpu.vector_store %arg7[%c176, %c0_50], %54 {strides = array<i32>} : memref<1008x256xbf16, #tpu.memory_space<vmem>>, vector<16x256xbf16>,
    %c0_51 = arith.constant 0 : index
    %c127 = arith.constant 127 : index
    %56 = vector.load %arg6[%c0_51, %c127] : memref<16x512xbf16, #tpu.memory_space<vmem>>, vector<16x256xbf16>
    %c3_52 = arith.constant 3 : index
    %c0_53 = arith.constant 0 : index
    %57 = vector.load %arg4[%c3_52, %c0_53] : memref<16x256xbf16, #tpu.memory_space<vmem>>, vector<1x256xbf16>
    %58 = vector.broadcast %57 : vector<1x256xbf16> to vector<16x256xbf16>
    %59 = arith.mulf %56, %58 : vector<16x256xbf16>
    %c192 = arith.constant 192 : index
    %c0_54 = arith.constant 0 : index
    %60 = vector.load %arg7[%c192, %c0_54] : memref<1008x256xbf16, #tpu.memory_space<vmem>>, vector<16x256xbf16>
    tpu.vector_store %arg7[%c192, %c0_54], %59 {strides = array<i32>} : memref<1008x256xbf16, #tpu.memory_space<vmem>>, vector<16x256xbf16>,
    %c0_55 = arith.constant 0 : index
    %c128_56 = arith.constant 128 : index
    %61 = vector.load %arg6[%c0_55, %c128_56] : memref<16x512xbf16, #tpu.memory_space<vmem>>, vector<16x256xbf16>
    %c208 = arith.constant 208 : index
    %c0_57 = arith.constant 0 : index
    %62 = vector.load %arg7[%c208, %c0_57] : memref<1008x256xbf16, #tpu.memory_space<vmem>>, vector<16x256xbf16>
    tpu.vector_store %arg7[%c208, %c0_57], %61 {strides = array<i32>} : memref<1008x256xbf16, #tpu.memory_space<vmem>>, vector<16x256xbf16>,
    %c0_58 = arith.constant 0 : index
    %c129 = arith.constant 129 : index
    %63 = vector.load %arg6[%c0_58, %c129] : memref<16x512xbf16, #tpu.memory_space<vmem>>, vector<16x256xbf16>
    %c5_59 = arith.constant 5 : index
    %c0_60 = arith.constant 0 : index
    %64 = vector.load %arg4[%c5_59, %c0_60] : memref<16x256xbf16, #tpu.memory_space<vmem>>, vector<1x256xbf16>
    %65 = vector.broadcast %64 : vector<1x256xbf16> to vector<16x256xbf16>
    %66 = arith.mulf %63, %65 : vector<16x256xbf16>
    %c224 = arith.constant 224 : index
    %c0_61 = arith.constant 0 : index
    %67 = vector.load %arg7[%c224, %c0_61] : memref<1008x256xbf16, #tpu.memory_space<vmem>>, vector<16x256xbf16>
    tpu.vector_store %arg7[%c224, %c0_61], %66 {strides = array<i32>} : memref<1008x256xbf16, #tpu.memory_space<vmem>>, vector<16x256xbf16>,
    %c0_62 = arith.constant 0 : index
    %c143 = arith.constant 143 : index
    %68 = vector.load %arg6[%c0_62, %c143] : memref<16x512xbf16, #tpu.memory_space<vmem>>, vector<16x256xbf16>
    %c3_63 = arith.constant 3 : index
    %c0_64 = arith.constant 0 : index
    %69 = vector.load %arg4[%c3_63, %c0_64] : memref<16x256xbf16, #tpu.memory_space<vmem>>, vector<1x256xbf16>
    %70 = vector.broadcast %69 : vector<1x256xbf16> to vector<16x256xbf16>
    %71 = arith.mulf %68, %70 : vector<16x256xbf16>
    %c240 = arith.constant 240 : index
    %c0_65 = arith.constant 0 : index
    %72 = vector.load %arg7[%c240, %c0_65] : memref<1008x256xbf16, #tpu.memory_space<vmem>>, vector<16x256xbf16>
    tpu.vector_store %arg7[%c240, %c0_65], %71 {strides = array<i32>} : memref<1008x256xbf16, #tpu.memory_space<vmem>>, vector<16x256xbf16>,
    %c0_66 = arith.constant 0 : index
    %c144_67 = arith.constant 144 : index
    %73 = vector.load %arg6[%c0_66, %c144_67] : memref<16x512xbf16, #tpu.memory_space<vmem>>, vector<16x256xbf16>
    %c256 = arith.constant 256 : index
    %c0_68 = arith.constant 0 : index
    %74 = vector.load %arg7[%c256, %c0_68] : memref<1008x256xbf16, #tpu.memory_space<vmem>>, vector<16x256xbf16>
    tpu.vector_store %arg7[%c256, %c0_68], %73 {strides = array<i32>} : memref<1008x256xbf16, #tpu.memory_space<vmem>>, vector<16x256xbf16>,
    %c0_69 = arith.constant 0 : index
    %c145 = arith.constant 145 : index
    %75 = vector.load %arg6[%c0_69, %c145] : memref<16x512xbf16, #tpu.memory_space<vmem>>, vector<16x256xbf16>
    %c5_70 = arith.constant 5 : index
    %c0_71 = arith.constant 0 : index
    %76 = vector.load %arg4[%c5_70, %c0_71] : memref<16x256xbf16, #tpu.memory_space<vmem>>, vector<1x256xbf16>
    %77 = vector.broadcast %76 : vector<1x256xbf16> to vector<16x256xbf16>
    %78 = arith.mulf %75, %77 : vector<16x256xbf16>
    %c272 = arith.constant 272 : index
    %c0_72 = arith.constant 0 : index
    %79 = vector.load %arg7[%c272, %c0_72] : memref<1008x256xbf16, #tpu.memory_space<vmem>>, vector<16x256xbf16>
    tpu.vector_store %arg7[%c272, %c0_72], %78 {strides = array<i32>} : memref<1008x256xbf16, #tpu.memory_space<vmem>>, vector<16x256xbf16>,
    %c0_73 = arith.constant 0 : index
    %c159 = arith.constant 159 : index
    %80 = vector.load %arg6[%c0_73, %c159] : memref<16x512xbf16, #tpu.memory_space<vmem>>, vector<16x256xbf16>
    %c3_74 = arith.constant 3 : index
    %c0_75 = arith.constant 0 : index
    %81 = vector.load %arg4[%c3_74, %c0_75] : memref<16x256xbf16, #tpu.memory_space<vmem>>, vector<1x256xbf16>
    %82 = vector.broadcast %81 : vector<1x256xbf16> to vector<16x256xbf16>
    %83 = arith.mulf %80, %82 : vector<16x256xbf16>
    %c288 = arith.constant 288 : index
    %c0_76 = arith.constant 0 : index
    %84 = vector.load %arg7[%c288, %c0_76] : memref<1008x256xbf16, #tpu.memory_space<vmem>>, vector<16x256xbf16>
    tpu.vector_store %arg7[%c288, %c0_76], %83 {strides = array<i32>} : memref<1008x256xbf16, #tpu.memory_space<vmem>>, vector<16x256xbf16>,
    %c0_77 = arith.constant 0 : index
    %c160_78 = arith.constant 160 : index
    %85 = vector.load %arg6[%c0_77, %c160_78] : memref<16x512xbf16, #tpu.memory_space<vmem>>, vector<16x256xbf16>
    %c304 = arith.constant 304 : index
    %c0_79 = arith.constant 0 : index
    %86 = vector.load %arg7[%c304, %c0_79] : memref<1008x256xbf16, #tpu.memory_space<vmem>>, vector<16x256xbf16>
    tpu.vector_store %arg7[%c304, %c0_79], %85 {strides = array<i32>} : memref<1008x256xbf16, #tpu.memory_space<vmem>>, vector<16x256xbf16>,
    %c0_80 = arith.constant 0 : index
    %c161 = arith.constant 161 : index
    %87 = vector.load %arg6[%c0_80, %c161] : memref<16x512xbf16, #tpu.memory_space<vmem>>, vector<16x256xbf16>
    %c5_81 = arith.constant 5 : index
    %c0_82 = arith.constant 0 : index
    %88 = vector.load %arg4[%c5_81, %c0_82] : memref<16x256xbf16, #tpu.memory_space<vmem>>, vector<1x256xbf16>
    %89 = vector.broadcast %88 : vector<1x256xbf16> to vector<16x256xbf16>
    %90 = arith.mulf %87, %89 : vector<16x256xbf16>
    %c320 = arith.constant 320 : index
    %c0_83 = arith.constant 0 : index
    %91 = vector.load %arg7[%c320, %c0_83] : memref<1008x256xbf16, #tpu.memory_space<vmem>>, vector<16x256xbf16>
    tpu.vector_store %arg7[%c320, %c0_83], %90 {strides = array<i32>} : memref<1008x256xbf16, #tpu.memory_space<vmem>>, vector<16x256xbf16>,
    %c0_84 = arith.constant 0 : index
    %c175 = arith.constant 175 : index
    %92 = vector.load %arg6[%c0_84, %c175] : memref<16x512xbf16, #tpu.memory_space<vmem>>, vector<16x256xbf16>
    %c3_85 = arith.constant 3 : index
    %c0_86 = arith.constant 0 : index
    %93 = vector.load %arg4[%c3_85, %c0_86] : memref<16x256xbf16, #tpu.memory_space<vmem>>, vector<1x256xbf16>
    %94 = vector.broadcast %93 : vector<1x256xbf16> to vector<16x256xbf16>
    %95 = arith.mulf %92, %94 : vector<16x256xbf16>
    %c336 = arith.constant 336 : index
    %c0_87 = arith.constant 0 : index
    %96 = vector.load %arg7[%c336, %c0_87] : memref<1008x256xbf16, #tpu.memory_space<vmem>>, vector<16x256xbf16>
    tpu.vector_store %arg7[%c336, %c0_87], %95 {strides = array<i32>} : memref<1008x256xbf16, #tpu.memory_space<vmem>>, vector<16x256xbf16>,
    %c0_88 = arith.constant 0 : index
    %c176_89 = arith.constant 176 : index
    %97 = vector.load %arg6[%c0_88, %c176_89] : memref<16x512xbf16, #tpu.memory_space<vmem>>, vector<16x256xbf16>
    %c352 = arith.constant 352 : index
    %c0_90 = arith.constant 0 : index
    %98 = vector.load %arg7[%c352, %c0_90] : memref<1008x256xbf16, #tpu.memory_space<vmem>>, vector<16x256xbf16>
    tpu.vector_store %arg7[%c352, %c0_90], %97 {strides = array<i32>} : memref<1008x256xbf16, #tpu.memory_space<vmem>>, vector<16x256xbf16>,
    %c0_91 = arith.constant 0 : index
    %c177 = arith.constant 177 : index
    %99 = vector.load %arg6[%c0_91, %c177] : memref<16x512xbf16, #tpu.memory_space<vmem>>, vector<16x256xbf16>
    %c5_92 = arith.constant 5 : index
    %c0_93 = arith.constant 0 : index
    %100 = vector.load %arg4[%c5_92, %c0_93] : memref<16x256xbf16, #tpu.memory_space<vmem>>, vector<1x256xbf16>
    %101 = vector.broadcast %100 : vector<1x256xbf16> to vector<16x256xbf16>
    %102 = arith.mulf %99, %101 : vector<16x256xbf16>
    %c368 = arith.constant 368 : index
    %c0_94 = arith.constant 0 : index
    %103 = vector.load %arg7[%c368, %c0_94] : memref<1008x256xbf16, #tpu.memory_space<vmem>>, vector<16x256xbf16>
    tpu.vector_store %arg7[%c368, %c0_94], %102 {strides = array<i32>} : memref<1008x256xbf16, #tpu.memory_space<vmem>>, vector<16x256xbf16>,
    %c0_95 = arith.constant 0 : index
    %c191 = arith.constant 191 : index
    %104 = vector.load %arg6[%c0_95, %c191] : memref<16x512xbf16, #tpu.memory_space<vmem>>, vector<16x256xbf16>
    %c3_96 = arith.constant 3 : index
    %c0_97 = arith.constant 0 : index
    %105 = vector.load %arg4[%c3_96, %c0_97] : memref<16x256xbf16, #tpu.memory_space<vmem>>, vector<1x256xbf16>
    %106 = vector.broadcast %105 : vector<1x256xbf16> to vector<16x256xbf16>
    %107 = arith.mulf %104, %106 : vector<16x256xbf16>
    %c384_98 = arith.constant 384 : index
    %c0_99 = arith.constant 0 : index
    %108 = vector.load %arg7[%c384_98, %c0_99] : memref<1008x256xbf16, #tpu.memory_space<vmem>>, vector<16x256xbf16>
    tpu.vector_store %arg7[%c384_98, %c0_99], %107 {strides = array<i32>} : memref<1008x256xbf16, #tpu.memory_space<vmem>>, vector<16x256xbf16>,
    %c0_100 = arith.constant 0 : index
    %c192_101 = arith.constant 192 : index
    %109 = vector.load %arg6[%c0_100, %c192_101] : memref<16x512xbf16, #tpu.memory_space<vmem>>, vector<16x256xbf16>
    %c400 = arith.constant 400 : index
    %c0_102 = arith.constant 0 : index
    %110 = vector.load %arg7[%c400, %c0_102] : memref<1008x256xbf16, #tpu.memory_space<vmem>>, vector<16x256xbf16>
    tpu.vector_store %arg7[%c400, %c0_102], %109 {strides = array<i32>} : memref<1008x256xbf16, #tpu.memory_space<vmem>>, vector<16x256xbf16>,
    %c0_103 = arith.constant 0 : index
    %c193 = arith.constant 193 : index
    %111 = vector.load %arg6[%c0_103, %c193] : memref<16x512xbf16, #tpu.memory_space<vmem>>, vector<16x256xbf16>
    %c5_104 = arith.constant 5 : index
    %c0_105 = arith.constant 0 : index
    %112 = vector.load %arg4[%c5_104, %c0_105] : memref<16x256xbf16, #tpu.memory_space<vmem>>, vector<1x256xbf16>
    %113 = vector.broadcast %112 : vector<1x256xbf16> to vector<16x256xbf16>
    %114 = arith.mulf %111, %113 : vector<16x256xbf16>
    %c416 = arith.constant 416 : index
    %c0_106 = arith.constant 0 : index
    %115 = vector.load %arg7[%c416, %c0_106] : memref<1008x256xbf16, #tpu.memory_space<vmem>>, vector<16x256xbf16>
    tpu.vector_store %arg7[%c416, %c0_106], %114 {strides = array<i32>} : memref<1008x256xbf16, #tpu.memory_space<vmem>>, vector<16x256xbf16>,
    %c0_107 = arith.constant 0 : index
    %c108 = arith.constant 108 : index
    %116 = vector.load %arg6[%c0_107, %c108] : memref<16x512xbf16, #tpu.memory_space<vmem>>, vector<16x256xbf16>
    %c0_108 = arith.constant 0 : index
    %c0_109 = arith.constant 0 : index
    %117 = vector.load %arg4[%c0_108, %c0_109] : memref<16x256xbf16, #tpu.memory_space<vmem>>, vector<1x256xbf16>
    %118 = vector.broadcast %117 : vector<1x256xbf16> to vector<16x256xbf16>
    %119 = arith.mulf %116, %118 : vector<16x256xbf16>
    %c432 = arith.constant 432 : index
    %c0_110 = arith.constant 0 : index
    %120 = vector.load %arg7[%c432, %c0_110] : memref<1008x256xbf16, #tpu.memory_space<vmem>>, vector<16x256xbf16>
    tpu.vector_store %arg7[%c432, %c0_110], %119 {strides = array<i32>} : memref<1008x256xbf16, #tpu.memory_space<vmem>>, vector<16x256xbf16>,
    %c0_111 = arith.constant 0 : index
    %c109 = arith.constant 109 : index
    %121 = vector.load %arg6[%c0_111, %c109] : memref<16x512xbf16, #tpu.memory_space<vmem>>, vector<16x256xbf16>
    %c1 = arith.constant 1 : index
    %c0_112 = arith.constant 0 : index
    %122 = vector.load %arg4[%c1, %c0_112] : memref<16x256xbf16, #tpu.memory_space<vmem>>, vector<1x256xbf16>
    %123 = vector.broadcast %122 : vector<1x256xbf16> to vector<16x256xbf16>
    %124 = arith.mulf %121, %123 : vector<16x256xbf16>
    %c448 = arith.constant 448 : index
    %c0_113 = arith.constant 0 : index
    %125 = vector.load %arg7[%c448, %c0_113] : memref<1008x256xbf16, #tpu.memory_space<vmem>>, vector<16x256xbf16>
    tpu.vector_store %arg7[%c448, %c0_113], %124 {strides = array<i32>} : memref<1008x256xbf16, #tpu.memory_space<vmem>>, vector<16x256xbf16>,
    %c0_114 = arith.constant 0 : index
    %c110 = arith.constant 110 : index
    %126 = vector.load %arg6[%c0_114, %c110] : memref<16x512xbf16, #tpu.memory_space<vmem>>, vector<16x256xbf16>
    %c2 = arith.constant 2 : index
    %c0_115 = arith.constant 0 : index
    %127 = vector.load %arg4[%c2, %c0_115] : memref<16x256xbf16, #tpu.memory_space<vmem>>, vector<1x256xbf16>
    %128 = vector.broadcast %127 : vector<1x256xbf16> to vector<16x256xbf16>
    %129 = arith.mulf %126, %128 : vector<16x256xbf16>
    %c464 = arith.constant 464 : index
    %c0_116 = arith.constant 0 : index
    %130 = vector.load %arg7[%c464, %c0_116] : memref<1008x256xbf16, #tpu.memory_space<vmem>>, vector<16x256xbf16>
    tpu.vector_store %arg7[%c464, %c0_116], %129 {strides = array<i32>} : memref<1008x256xbf16, #tpu.memory_space<vmem>>, vector<16x256xbf16>,
    %c0_117 = arith.constant 0 : index
    %c111_118 = arith.constant 111 : index
    %131 = vector.load %arg6[%c0_117, %c111_118] : memref<16x512xbf16, #tpu.memory_space<vmem>>, vector<16x256xbf16>
    %c3_119 = arith.constant 3 : index
    %c0_120 = arith.constant 0 : index
    %132 = vector.load %arg4[%c3_119, %c0_120] : memref<16x256xbf16, #tpu.memory_space<vmem>>, vector<1x256xbf16>
    %133 = vector.broadcast %132 : vector<1x256xbf16> to vector<16x256xbf16>
    %134 = arith.mulf %131, %133 : vector<16x256xbf16>
    %c480 = arith.constant 480 : index
    %c0_121 = arith.constant 0 : index
    %135 = vector.load %arg7[%c480, %c0_121] : memref<1008x256xbf16, #tpu.memory_space<vmem>>, vector<16x256xbf16>
    tpu.vector_store %arg7[%c480, %c0_121], %134 {strides = array<i32>} : memref<1008x256xbf16, #tpu.memory_space<vmem>>, vector<16x256xbf16>,
    %c0_122 = arith.constant 0 : index
    %c112_123 = arith.constant 112 : index
    %136 = vector.load %arg6[%c0_122, %c112_123] : memref<16x512xbf16, #tpu.memory_space<vmem>>, vector<16x256xbf16>
    %c496 = arith.constant 496 : index
    %c0_124 = arith.constant 0 : index
    %137 = vector.load %arg7[%c496, %c0_124] : memref<1008x256xbf16, #tpu.memory_space<vmem>>, vector<16x256xbf16>
    tpu.vector_store %arg7[%c496, %c0_124], %136 {strides = array<i32>} : memref<1008x256xbf16, #tpu.memory_space<vmem>>, vector<16x256xbf16>,
    %c0_125 = arith.constant 0 : index
    %c113_126 = arith.constant 113 : index
    %138 = vector.load %arg6[%c0_125, %c113_126] : memref<16x512xbf16, #tpu.memory_space<vmem>>, vector<16x256xbf16>
    %c5_127 = arith.constant 5 : index
    %c0_128 = arith.constant 0 : index
    %139 = vector.load %arg4[%c5_127, %c0_128] : memref<16x256xbf16, #tpu.memory_space<vmem>>, vector<1x256xbf16>
    %140 = vector.broadcast %139 : vector<1x256xbf16> to vector<16x256xbf16>
    %141 = arith.mulf %138, %140 : vector<16x256xbf16>
    %c512 = arith.constant 512 : index
    %c0_129 = arith.constant 0 : index
    %142 = vector.load %arg7[%c512, %c0_129] : memref<1008x256xbf16, #tpu.memory_space<vmem>>, vector<16x256xbf16>
    tpu.vector_store %arg7[%c512, %c0_129], %141 {strides = array<i32>} : memref<1008x256xbf16, #tpu.memory_space<vmem>>, vector<16x256xbf16>,
    %c0_130 = arith.constant 0 : index
    %c114 = arith.constant 114 : index
    %143 = vector.load %arg6[%c0_130, %c114] : memref<16x512xbf16, #tpu.memory_space<vmem>>, vector<16x256xbf16>
    %c6 = arith.constant 6 : index
    %c0_131 = arith.constant 0 : index
    %144 = vector.load %arg4[%c6, %c0_131] : memref<16x256xbf16, #tpu.memory_space<vmem>>, vector<1x256xbf16>
    %145 = vector.broadcast %144 : vector<1x256xbf16> to vector<16x256xbf16>
    %146 = arith.mulf %143, %145 : vector<16x256xbf16>
    %c528 = arith.constant 528 : index
    %c0_132 = arith.constant 0 : index
    %147 = vector.load %arg7[%c528, %c0_132] : memref<1008x256xbf16, #tpu.memory_space<vmem>>, vector<16x256xbf16>
    tpu.vector_store %arg7[%c528, %c0_132], %146 {strides = array<i32>} : memref<1008x256xbf16, #tpu.memory_space<vmem>>, vector<16x256xbf16>,
    %c0_133 = arith.constant 0 : index
    %c115 = arith.constant 115 : index
    %148 = vector.load %arg6[%c0_133, %c115] : memref<16x512xbf16, #tpu.memory_space<vmem>>, vector<16x256xbf16>
    %c7 = arith.constant 7 : index
    %c0_134 = arith.constant 0 : index
    %149 = vector.load %arg4[%c7, %c0_134] : memref<16x256xbf16, #tpu.memory_space<vmem>>, vector<1x256xbf16>
    %150 = vector.broadcast %149 : vector<1x256xbf16> to vector<16x256xbf16>
    %151 = arith.mulf %148, %150 : vector<16x256xbf16>
    %c544 = arith.constant 544 : index
    %c0_135 = arith.constant 0 : index
    %152 = vector.load %arg7[%c544, %c0_135] : memref<1008x256xbf16, #tpu.memory_space<vmem>>, vector<16x256xbf16>
    tpu.vector_store %arg7[%c544, %c0_135], %151 {strides = array<i32>} : memref<1008x256xbf16, #tpu.memory_space<vmem>>, vector<16x256xbf16>,
    %c0_136 = arith.constant 0 : index
    %c116 = arith.constant 116 : index
    %153 = vector.load %arg6[%c0_136, %c116] : memref<16x512xbf16, #tpu.memory_space<vmem>>, vector<16x256xbf16>
    %c8 = arith.constant 8 : index
    %c0_137 = arith.constant 0 : index
    %154 = vector.load %arg4[%c8, %c0_137] : memref<16x256xbf16, #tpu.memory_space<vmem>>, vector<1x256xbf16>
    %155 = vector.broadcast %154 : vector<1x256xbf16> to vector<16x256xbf16>
    %156 = arith.mulf %153, %155 : vector<16x256xbf16>
    %c560 = arith.constant 560 : index
    %c0_138 = arith.constant 0 : index
    %157 = vector.load %arg7[%c560, %c0_138] : memref<1008x256xbf16, #tpu.memory_space<vmem>>, vector<16x256xbf16>
    tpu.vector_store %arg7[%c560, %c0_138], %156 {strides = array<i32>} : memref<1008x256xbf16, #tpu.memory_space<vmem>>, vector<16x256xbf16>,
    %c0_139 = arith.constant 0 : index
    %c124 = arith.constant 124 : index
    %158 = vector.load %arg6[%c0_139, %c124] : memref<16x512xbf16, #tpu.memory_space<vmem>>, vector<16x256xbf16>
    %c0_140 = arith.constant 0 : index
    %c0_141 = arith.constant 0 : index
    %159 = vector.load %arg4[%c0_140, %c0_141] : memref<16x256xbf16, #tpu.memory_space<vmem>>, vector<1x256xbf16>
    %160 = vector.broadcast %159 : vector<1x256xbf16> to vector<16x256xbf16>
    %161 = arith.mulf %158, %160 : vector<16x256xbf16>
    %c576 = arith.constant 576 : index
    %c0_142 = arith.constant 0 : index
    %162 = vector.load %arg7[%c576, %c0_142] : memref<1008x256xbf16, #tpu.memory_space<vmem>>, vector<16x256xbf16>
    tpu.vector_store %arg7[%c576, %c0_142], %161 {strides = array<i32>} : memref<1008x256xbf16, #tpu.memory_space<vmem>>, vector<16x256xbf16>,
    %c0_143 = arith.constant 0 : index
    %c125 = arith.constant 125 : index
    %163 = vector.load %arg6[%c0_143, %c125] : memref<16x512xbf16, #tpu.memory_space<vmem>>, vector<16x256xbf16>
    %c1_144 = arith.constant 1 : index
    %c0_145 = arith.constant 0 : index
    %164 = vector.load %arg4[%c1_144, %c0_145] : memref<16x256xbf16, #tpu.memory_space<vmem>>, vector<1x256xbf16>
    %165 = vector.broadcast %164 : vector<1x256xbf16> to vector<16x256xbf16>
    %166 = arith.mulf %163, %165 : vector<16x256xbf16>
    %c592 = arith.constant 592 : index
    %c0_146 = arith.constant 0 : index
    %167 = vector.load %arg7[%c592, %c0_146] : memref<1008x256xbf16, #tpu.memory_space<vmem>>, vector<16x256xbf16>
    tpu.vector_store %arg7[%c592, %c0_146], %166 {strides = array<i32>} : memref<1008x256xbf16, #tpu.memory_space<vmem>>, vector<16x256xbf16>,
    %c0_147 = arith.constant 0 : index
    %c126 = arith.constant 126 : index
    %168 = vector.load %arg6[%c0_147, %c126] : memref<16x512xbf16, #tpu.memory_space<vmem>>, vector<16x256xbf16>
    %c2_148 = arith.constant 2 : index
    %c0_149 = arith.constant 0 : index
    %169 = vector.load %arg4[%c2_148, %c0_149] : memref<16x256xbf16, #tpu.memory_space<vmem>>, vector<1x256xbf16>
    %170 = vector.broadcast %169 : vector<1x256xbf16> to vector<16x256xbf16>
    %171 = arith.mulf %168, %170 : vector<16x256xbf16>
    %c608 = arith.constant 608 : index
    %c0_150 = arith.constant 0 : index
    %172 = vector.load %arg7[%c608, %c0_150] : memref<1008x256xbf16, #tpu.memory_space<vmem>>, vector<16x256xbf16>
    tpu.vector_store %arg7[%c608, %c0_150], %171 {strides = array<i32>} : memref<1008x256xbf16, #tpu.memory_space<vmem>>, vector<16x256xbf16>,
    %c0_151 = arith.constant 0 : index
    %c127_152 = arith.constant 127 : index
    %173 = vector.load %arg6[%c0_151, %c127_152] : memref<16x512xbf16, #tpu.memory_space<vmem>>, vector<16x256xbf16>
    %c3_153 = arith.constant 3 : index
    %c0_154 = arith.constant 0 : index
    %174 = vector.load %arg4[%c3_153, %c0_154] : memref<16x256xbf16, #tpu.memory_space<vmem>>, vector<1x256xbf16>
    %175 = vector.broadcast %174 : vector<1x256xbf16> to vector<16x256xbf16>
    %176 = arith.mulf %173, %175 : vector<16x256xbf16>
    %c624 = arith.constant 624 : index
    %c0_155 = arith.constant 0 : index
    %177 = vector.load %arg7[%c624, %c0_155] : memref<1008x256xbf16, #tpu.memory_space<vmem>>, vector<16x256xbf16>
    tpu.vector_store %arg7[%c624, %c0_155], %176 {strides = array<i32>} : memref<1008x256xbf16, #tpu.memory_space<vmem>>, vector<16x256xbf16>,
    %c0_156 = arith.constant 0 : index
    %c128_157 = arith.constant 128 : index
    %178 = vector.load %arg6[%c0_156, %c128_157] : memref<16x512xbf16, #tpu.memory_space<vmem>>, vector<16x256xbf16>
    %c640 = arith.constant 640 : index
    %c0_158 = arith.constant 0 : index
    %179 = vector.load %arg7[%c640, %c0_158] : memref<1008x256xbf16, #tpu.memory_space<vmem>>, vector<16x256xbf16>
    tpu.vector_store %arg7[%c640, %c0_158], %178 {strides = array<i32>} : memref<1008x256xbf16, #tpu.memory_space<vmem>>, vector<16x256xbf16>,
    %c0_159 = arith.constant 0 : index
    %c129_160 = arith.constant 129 : index
    %180 = vector.load %arg6[%c0_159, %c129_160] : memref<16x512xbf16, #tpu.memory_space<vmem>>, vector<16x256xbf16>
    %c5_161 = arith.constant 5 : index
    %c0_162 = arith.constant 0 : index
    %181 = vector.load %arg4[%c5_161, %c0_162] : memref<16x256xbf16, #tpu.memory_space<vmem>>, vector<1x256xbf16>
    %182 = vector.broadcast %181 : vector<1x256xbf16> to vector<16x256xbf16>
    %183 = arith.mulf %180, %182 : vector<16x256xbf16>
    %c656 = arith.constant 656 : index
    %c0_163 = arith.constant 0 : index
    %184 = vector.load %arg7[%c656, %c0_163] : memref<1008x256xbf16, #tpu.memory_space<vmem>>, vector<16x256xbf16>
    tpu.vector_store %arg7[%c656, %c0_163], %183 {strides = array<i32>} : memref<1008x256xbf16, #tpu.memory_space<vmem>>, vector<16x256xbf16>,
    %c0_164 = arith.constant 0 : index
    %c130 = arith.constant 130 : index
    %185 = vector.load %arg6[%c0_164, %c130] : memref<16x512xbf16, #tpu.memory_space<vmem>>, vector<16x256xbf16>
    %c6_165 = arith.constant 6 : index
    %c0_166 = arith.constant 0 : index
    %186 = vector.load %arg4[%c6_165, %c0_166] : memref<16x256xbf16, #tpu.memory_space<vmem>>, vector<1x256xbf16>
    %187 = vector.broadcast %186 : vector<1x256xbf16> to vector<16x256xbf16>
    %188 = arith.mulf %185, %187 : vector<16x256xbf16>
    %c672 = arith.constant 672 : index
    %c0_167 = arith.constant 0 : index
    %189 = vector.load %arg7[%c672, %c0_167] : memref<1008x256xbf16, #tpu.memory_space<vmem>>, vector<16x256xbf16>
    tpu.vector_store %arg7[%c672, %c0_167], %188 {strides = array<i32>} : memref<1008x256xbf16, #tpu.memory_space<vmem>>, vector<16x256xbf16>,
    %c0_168 = arith.constant 0 : index
    %c131 = arith.constant 131 : index
    %190 = vector.load %arg6[%c0_168, %c131] : memref<16x512xbf16, #tpu.memory_space<vmem>>, vector<16x256xbf16>
    %c7_169 = arith.constant 7 : index
    %c0_170 = arith.constant 0 : index
    %191 = vector.load %arg4[%c7_169, %c0_170] : memref<16x256xbf16, #tpu.memory_space<vmem>>, vector<1x256xbf16>
    %192 = vector.broadcast %191 : vector<1x256xbf16> to vector<16x256xbf16>
    %193 = arith.mulf %190, %192 : vector<16x256xbf16>
    %c688 = arith.constant 688 : index
    %c0_171 = arith.constant 0 : index
    %194 = vector.load %arg7[%c688, %c0_171] : memref<1008x256xbf16, #tpu.memory_space<vmem>>, vector<16x256xbf16>
    tpu.vector_store %arg7[%c688, %c0_171], %193 {strides = array<i32>} : memref<1008x256xbf16, #tpu.memory_space<vmem>>, vector<16x256xbf16>,
    %c0_172 = arith.constant 0 : index
    %c132 = arith.constant 132 : index
    %195 = vector.load %arg6[%c0_172, %c132] : memref<16x512xbf16, #tpu.memory_space<vmem>>, vector<16x256xbf16>
    %c8_173 = arith.constant 8 : index
    %c0_174 = arith.constant 0 : index
    %196 = vector.load %arg4[%c8_173, %c0_174] : memref<16x256xbf16, #tpu.memory_space<vmem>>, vector<1x256xbf16>
    %197 = vector.broadcast %196 : vector<1x256xbf16> to vector<16x256xbf16>
    %198 = arith.mulf %195, %197 : vector<16x256xbf16>
    %c704 = arith.constant 704 : index
    %c0_175 = arith.constant 0 : index
    %199 = vector.load %arg7[%c704, %c0_175] : memref<1008x256xbf16, #tpu.memory_space<vmem>>, vector<16x256xbf16>
    tpu.vector_store %arg7[%c704, %c0_175], %198 {strides = array<i32>} : memref<1008x256xbf16, #tpu.memory_space<vmem>>, vector<16x256xbf16>,
    %c0_176 = arith.constant 0 : index
    %c140 = arith.constant 140 : index
    %200 = vector.load %arg6[%c0_176, %c140] : memref<16x512xbf16, #tpu.memory_space<vmem>>, vector<16x256xbf16>
    %c0_177 = arith.constant 0 : index
    %c0_178 = arith.constant 0 : index
    %201 = vector.load %arg4[%c0_177, %c0_178] : memref<16x256xbf16, #tpu.memory_space<vmem>>, vector<1x256xbf16>
    %202 = vector.broadcast %201 : vector<1x256xbf16> to vector<16x256xbf16>
    %203 = arith.mulf %200, %202 : vector<16x256xbf16>
    %c720 = arith.constant 720 : index
    %c0_179 = arith.constant 0 : index
    %204 = vector.load %arg7[%c720, %c0_179] : memref<1008x256xbf16, #tpu.memory_space<vmem>>, vector<16x256xbf16>
    tpu.vector_store %arg7[%c720, %c0_179], %203 {strides = array<i32>} : memref<1008x256xbf16, #tpu.memory_space<vmem>>, vector<16x256xbf16>,
    %c0_180 = arith.constant 0 : index
    %c141 = arith.constant 141 : index
    %205 = vector.load %arg6[%c0_180, %c141] : memref<16x512xbf16, #tpu.memory_space<vmem>>, vector<16x256xbf16>
    %c1_181 = arith.constant 1 : index
    %c0_182 = arith.constant 0 : index
    %206 = vector.load %arg4[%c1_181, %c0_182] : memref<16x256xbf16, #tpu.memory_space<vmem>>, vector<1x256xbf16>
    %207 = vector.broadcast %206 : vector<1x256xbf16> to vector<16x256xbf16>
    %208 = arith.mulf %205, %207 : vector<16x256xbf16>
    %c736 = arith.constant 736 : index
    %c0_183 = arith.constant 0 : index
    %209 = vector.load %arg7[%c736, %c0_183] : memref<1008x256xbf16, #tpu.memory_space<vmem>>, vector<16x256xbf16>
    tpu.vector_store %arg7[%c736, %c0_183], %208 {strides = array<i32>} : memref<1008x256xbf16, #tpu.memory_space<vmem>>, vector<16x256xbf16>,
    %c0_184 = arith.constant 0 : index
    %c142 = arith.constant 142 : index
    %210 = vector.load %arg6[%c0_184, %c142] : memref<16x512xbf16, #tpu.memory_space<vmem>>, vector<16x256xbf16>
    %c2_185 = arith.constant 2 : index
    %c0_186 = arith.constant 0 : index
    %211 = vector.load %arg4[%c2_185, %c0_186] : memref<16x256xbf16, #tpu.memory_space<vmem>>, vector<1x256xbf16>
    %212 = vector.broadcast %211 : vector<1x256xbf16> to vector<16x256xbf16>
    %213 = arith.mulf %210, %212 : vector<16x256xbf16>
    %c752 = arith.constant 752 : index
    %c0_187 = arith.constant 0 : index
    %214 = vector.load %arg7[%c752, %c0_187] : memref<1008x256xbf16, #tpu.memory_space<vmem>>, vector<16x256xbf16>
    tpu.vector_store %arg7[%c752, %c0_187], %213 {strides = array<i32>} : memref<1008x256xbf16, #tpu.memory_space<vmem>>, vector<16x256xbf16>,
    %c0_188 = arith.constant 0 : index
    %c143_189 = arith.constant 143 : index
    %215 = vector.load %arg6[%c0_188, %c143_189] : memref<16x512xbf16, #tpu.memory_space<vmem>>, vector<16x256xbf16>
    %c3_190 = arith.constant 3 : index
    %c0_191 = arith.constant 0 : index
    %216 = vector.load %arg4[%c3_190, %c0_191] : memref<16x256xbf16, #tpu.memory_space<vmem>>, vector<1x256xbf16>
    %217 = vector.broadcast %216 : vector<1x256xbf16> to vector<16x256xbf16>
    %218 = arith.mulf %215, %217 : vector<16x256xbf16>
    %c768 = arith.constant 768 : index
    %c0_192 = arith.constant 0 : index
    %219 = vector.load %arg7[%c768, %c0_192] : memref<1008x256xbf16, #tpu.memory_space<vmem>>, vector<16x256xbf16>
    tpu.vector_store %arg7[%c768, %c0_192], %218 {strides = array<i32>} : memref<1008x256xbf16, #tpu.memory_space<vmem>>, vector<16x256xbf16>,
    %c0_193 = arith.constant 0 : index
    %c144_194 = arith.constant 144 : index
    %220 = vector.load %arg6[%c0_193, %c144_194] : memref<16x512xbf16, #tpu.memory_space<vmem>>, vector<16x256xbf16>
    %c784 = arith.constant 784 : index
    %c0_195 = arith.constant 0 : index
    %221 = vector.load %arg7[%c784, %c0_195] : memref<1008x256xbf16, #tpu.memory_space<vmem>>, vector<16x256xbf16>
    tpu.vector_store %arg7[%c784, %c0_195], %220 {strides = array<i32>} : memref<1008x256xbf16, #tpu.memory_space<vmem>>, vector<16x256xbf16>,
    %c0_196 = arith.constant 0 : index
    %c145_197 = arith.constant 145 : index
    %222 = vector.load %arg6[%c0_196, %c145_197] : memref<16x512xbf16, #tpu.memory_space<vmem>>, vector<16x256xbf16>
    %c5_198 = arith.constant 5 : index
    %c0_199 = arith.constant 0 : index
    %223 = vector.load %arg4[%c5_198, %c0_199] : memref<16x256xbf16, #tpu.memory_space<vmem>>, vector<1x256xbf16>
    %224 = vector.broadcast %223 : vector<1x256xbf16> to vector<16x256xbf16>
    %225 = arith.mulf %222, %224 : vector<16x256xbf16>
    %c800 = arith.constant 800 : index
    %c0_200 = arith.constant 0 : index
    %226 = vector.load %arg7[%c800, %c0_200] : memref<1008x256xbf16, #tpu.memory_space<vmem>>, vector<16x256xbf16>
    tpu.vector_store %arg7[%c800, %c0_200], %225 {strides = array<i32>} : memref<1008x256xbf16, #tpu.memory_space<vmem>>, vector<16x256xbf16>,
    %c0_201 = arith.constant 0 : index
    %c146 = arith.constant 146 : index
    %227 = vector.load %arg6[%c0_201, %c146] : memref<16x512xbf16, #tpu.memory_space<vmem>>, vector<16x256xbf16>
    %c6_202 = arith.constant 6 : index
    %c0_203 = arith.constant 0 : index
    %228 = vector.load %arg4[%c6_202, %c0_203] : memref<16x256xbf16, #tpu.memory_space<vmem>>, vector<1x256xbf16>
    %229 = vector.broadcast %228 : vector<1x256xbf16> to vector<16x256xbf16>
    %230 = arith.mulf %227, %229 : vector<16x256xbf16>
    %c816 = arith.constant 816 : index
    %c0_204 = arith.constant 0 : index
    %231 = vector.load %arg7[%c816, %c0_204] : memref<1008x256xbf16, #tpu.memory_space<vmem>>, vector<16x256xbf16>
    tpu.vector_store %arg7[%c816, %c0_204], %230 {strides = array<i32>} : memref<1008x256xbf16, #tpu.memory_space<vmem>>, vector<16x256xbf16>,
    %c0_205 = arith.constant 0 : index
    %c147 = arith.constant 147 : index
    %232 = vector.load %arg6[%c0_205, %c147] : memref<16x512xbf16, #tpu.memory_space<vmem>>, vector<16x256xbf16>
    %c7_206 = arith.constant 7 : index
    %c0_207 = arith.constant 0 : index
    %233 = vector.load %arg4[%c7_206, %c0_207] : memref<16x256xbf16, #tpu.memory_space<vmem>>, vector<1x256xbf16>
    %234 = vector.broadcast %233 : vector<1x256xbf16> to vector<16x256xbf16>
    %235 = arith.mulf %232, %234 : vector<16x256xbf16>
    %c832 = arith.constant 832 : index
    %c0_208 = arith.constant 0 : index
    %236 = vector.load %arg7[%c832, %c0_208] : memref<1008x256xbf16, #tpu.memory_space<vmem>>, vector<16x256xbf16>
    tpu.vector_store %arg7[%c832, %c0_208], %235 {strides = array<i32>} : memref<1008x256xbf16, #tpu.memory_space<vmem>>, vector<16x256xbf16>,
    %c0_209 = arith.constant 0 : index
    %c148 = arith.constant 148 : index
    %237 = vector.load %arg6[%c0_209, %c148] : memref<16x512xbf16, #tpu.memory_space<vmem>>, vector<16x256xbf16>
    %c8_210 = arith.constant 8 : index
    %c0_211 = arith.constant 0 : index
    %238 = vector.load %arg4[%c8_210, %c0_211] : memref<16x256xbf16, #tpu.memory_space<vmem>>, vector<1x256xbf16>
    %239 = vector.broadcast %238 : vector<1x256xbf16> to vector<16x256xbf16>
    %240 = arith.mulf %237, %239 : vector<16x256xbf16>
    %c848 = arith.constant 848 : index
    %c0_212 = arith.constant 0 : index
    %241 = vector.load %arg7[%c848, %c0_212] : memref<1008x256xbf16, #tpu.memory_space<vmem>>, vector<16x256xbf16>
    tpu.vector_store %arg7[%c848, %c0_212], %240 {strides = array<i32>} : memref<1008x256xbf16, #tpu.memory_space<vmem>>, vector<16x256xbf16>,
    %c0_213 = arith.constant 0 : index
    %c111_214 = arith.constant 111 : index
    %242 = vector.load %arg6[%c0_213, %c111_214] : memref<16x512xbf16, #tpu.memory_space<vmem>>, vector<16x256xbf16>
    %c3_215 = arith.constant 3 : index
    %c0_216 = arith.constant 0 : index
    %243 = vector.load %arg4[%c3_215, %c0_216] : memref<16x256xbf16, #tpu.memory_space<vmem>>, vector<1x256xbf16>
    %244 = vector.broadcast %243 : vector<1x256xbf16> to vector<16x256xbf16>
    %245 = arith.mulf %242, %244 : vector<16x256xbf16>
    %c864 = arith.constant 864 : index
    %c0_217 = arith.constant 0 : index
    %246 = vector.load %arg7[%c864, %c0_217] : memref<1008x256xbf16, #tpu.memory_space<vmem>>, vector<16x256xbf16>
    tpu.vector_store %arg7[%c864, %c0_217], %245 {strides = array<i32>} : memref<1008x256xbf16, #tpu.memory_space<vmem>>, vector<16x256xbf16>,
    %c0_218 = arith.constant 0 : index
    %c112_219 = arith.constant 112 : index
    %247 = vector.load %arg6[%c0_218, %c112_219] : memref<16x512xbf16, #tpu.memory_space<vmem>>, vector<16x256xbf16>
    %c880 = arith.constant 880 : index
    %c0_220 = arith.constant 0 : index
    %248 = vector.load %arg7[%c880, %c0_220] : memref<1008x256xbf16, #tpu.memory_space<vmem>>, vector<16x256xbf16>
    tpu.vector_store %arg7[%c880, %c0_220], %247 {strides = array<i32>} : memref<1008x256xbf16, #tpu.memory_space<vmem>>, vector<16x256xbf16>,
    %c0_221 = arith.constant 0 : index
    %c113_222 = arith.constant 113 : index
    %249 = vector.load %arg6[%c0_221, %c113_222] : memref<16x512xbf16, #tpu.memory_space<vmem>>, vector<16x256xbf16>
    %c5_223 = arith.constant 5 : index
    %c0_224 = arith.constant 0 : index
    %250 = vector.load %arg4[%c5_223, %c0_224] : memref<16x256xbf16, #tpu.memory_space<vmem>>, vector<1x256xbf16>
    %251 = vector.broadcast %250 : vector<1x256xbf16> to vector<16x256xbf16>
    %252 = arith.mulf %249, %251 : vector<16x256xbf16>
    %c896 = arith.constant 896 : index
    %c0_225 = arith.constant 0 : index
    %253 = vector.load %arg7[%c896, %c0_225] : memref<1008x256xbf16, #tpu.memory_space<vmem>>, vector<16x256xbf16>
    tpu.vector_store %arg7[%c896, %c0_225], %252 {strides = array<i32>} : memref<1008x256xbf16, #tpu.memory_space<vmem>>, vector<16x256xbf16>,
    %c0_226 = arith.constant 0 : index
    %c127_227 = arith.constant 127 : index
    %254 = vector.load %arg6[%c0_226, %c127_227] : memref<16x512xbf16, #tpu.memory_space<vmem>>, vector<16x256xbf16>
    %c3_228 = arith.constant 3 : index
    %c0_229 = arith.constant 0 : index
    %255 = vector.load %arg4[%c3_228, %c0_229] : memref<16x256xbf16, #tpu.memory_space<vmem>>, vector<1x256xbf16>
    %256 = vector.broadcast %255 : vector<1x256xbf16> to vector<16x256xbf16>
    %257 = arith.mulf %254, %256 : vector<16x256xbf16>
    %c912 = arith.constant 912 : index
    %c0_230 = arith.constant 0 : index
    %258 = vector.load %arg7[%c912, %c0_230] : memref<1008x256xbf16, #tpu.memory_space<vmem>>, vector<16x256xbf16>
    tpu.vector_store %arg7[%c912, %c0_230], %257 {strides = array<i32>} : memref<1008x256xbf16, #tpu.memory_space<vmem>>, vector<16x256xbf16>,
    %c0_231 = arith.constant 0 : index
    %c128_232 = arith.constant 128 : index
    %259 = vector.load %arg6[%c0_231, %c128_232] : memref<16x512xbf16, #tpu.memory_space<vmem>>, vector<16x256xbf16>
    %c928 = arith.constant 928 : index
    %c0_233 = arith.constant 0 : index
    %260 = vector.load %arg7[%c928, %c0_233] : memref<1008x256xbf16, #tpu.memory_space<vmem>>, vector<16x256xbf16>
    tpu.vector_store %arg7[%c928, %c0_233], %259 {strides = array<i32>} : memref<1008x256xbf16, #tpu.memory_space<vmem>>, vector<16x256xbf16>,
    %c0_234 = arith.constant 0 : index
    %c129_235 = arith.constant 129 : index
    %261 = vector.load %arg6[%c0_234, %c129_235] : memref<16x512xbf16, #tpu.memory_space<vmem>>, vector<16x256xbf16>
    %c5_236 = arith.constant 5 : index
    %c0_237 = arith.constant 0 : index
    %262 = vector.load %arg4[%c5_236, %c0_237] : memref<16x256xbf16, #tpu.memory_space<vmem>>, vector<1x256xbf16>
    %263 = vector.broadcast %262 : vector<1x256xbf16> to vector<16x256xbf16>
    %264 = arith.mulf %261, %263 : vector<16x256xbf16>
    %c944 = arith.constant 944 : index
    %c0_238 = arith.constant 0 : index
    %265 = vector.load %arg7[%c944, %c0_238] : memref<1008x256xbf16, #tpu.memory_space<vmem>>, vector<16x256xbf16>
    tpu.vector_store %arg7[%c944, %c0_238], %264 {strides = array<i32>} : memref<1008x256xbf16, #tpu.memory_space<vmem>>, vector<16x256xbf16>,
    %c0_239 = arith.constant 0 : index
    %c143_240 = arith.constant 143 : index
    %266 = vector.load %arg6[%c0_239, %c143_240] : memref<16x512xbf16, #tpu.memory_space<vmem>>, vector<16x256xbf16>
    %c3_241 = arith.constant 3 : index
    %c0_242 = arith.constant 0 : index
    %267 = vector.load %arg4[%c3_241, %c0_242] : memref<16x256xbf16, #tpu.memory_space<vmem>>, vector<1x256xbf16>
    %268 = vector.broadcast %267 : vector<1x256xbf16> to vector<16x256xbf16>
    %269 = arith.mulf %266, %268 : vector<16x256xbf16>
    %c960 = arith.constant 960 : index
    %c0_243 = arith.constant 0 : index
    %270 = vector.load %arg7[%c960, %c0_243] : memref<1008x256xbf16, #tpu.memory_space<vmem>>, vector<16x256xbf16>
    tpu.vector_store %arg7[%c960, %c0_243], %269 {strides = array<i32>} : memref<1008x256xbf16, #tpu.memory_space<vmem>>, vector<16x256xbf16>,
    %c0_244 = arith.constant 0 : index
    %c144_245 = arith.constant 144 : index
    %271 = vector.load %arg6[%c0_244, %c144_245] : memref<16x512xbf16, #tpu.memory_space<vmem>>, vector<16x256xbf16>
    %c976 = arith.constant 976 : index
    %c0_246 = arith.constant 0 : index
    %272 = vector.load %arg7[%c976, %c0_246] : memref<1008x256xbf16, #tpu.memory_space<vmem>>, vector<16x256xbf16>
    tpu.vector_store %arg7[%c976, %c0_246], %271 {strides = array<i32>} : memref<1008x256xbf16, #tpu.memory_space<vmem>>, vector<16x256xbf16>,
    %c0_247 = arith.constant 0 : index
    %c145_248 = arith.constant 145 : index
    %273 = vector.load %arg6[%c0_247, %c145_248] : memref<16x512xbf16, #tpu.memory_space<vmem>>, vector<16x256xbf16>
    %c5_249 = arith.constant 5 : index
    %c0_250 = arith.constant 0 : index
    %274 = vector.load %arg4[%c5_249, %c0_250] : memref<16x256xbf16, #tpu.memory_space<vmem>>, vector<1x256xbf16>
    %275 = vector.broadcast %274 : vector<1x256xbf16> to vector<16x256xbf16>
    %276 = arith.mulf %273, %275 : vector<16x256xbf16>
    %c992 = arith.constant 992 : index
    %c0_251 = arith.constant 0 : index
    %277 = vector.load %arg7[%c992, %c0_251] : memref<1008x256xbf16, #tpu.memory_space<vmem>>, vector<16x256xbf16>
    tpu.vector_store %arg7[%c992, %c0_251], %276 {strides = array<i32>} : memref<1008x256xbf16, #tpu.memory_space<vmem>>, vector<16x256xbf16>,
    %c0_252 = arith.constant 0 : index
    %c0_253 = arith.constant 0 : index
    %278 = vector.load %arg2[%c0_252, %c0_253] : memref<16x1008xbf16, #tpu.memory_space<vmem>>, vector<16x1008xbf16>
    %c0_254 = arith.constant 0 : index
    %c0_255 = arith.constant 0 : index
    %279 = vector.load %arg7[%c0_254, %c0_255] : memref<1008x256xbf16, #tpu.memory_space<vmem>>, vector<1008x256xbf16>
    %cst_256 = arith.constant dense<0.000000e+00> : vector<16x256xf32>
    %280 = tpu.matmul %278, %279, %cst_256 {dimension_numbers = #tpu.dot_dimension_numbers<[1], [0], [0], [1], [0, 0, 1, 1], [], []>} : vector<16x1008xbf16>, vector<1008x256xbf16>, vector<16x256xf32> -> vector<16x256xf32>
    %c0_257 = arith.constant 0 : index
    %c0_258 = arith.constant 0 : index
    %281 = vector.load %arg3[%c0_257, %c0_258] : memref<16x1xf32, #tpu.memory_space<vmem>>, vector<16x1xf32>
    %282 = vector.broadcast %281 : vector<16x1xf32> to vector<16x256xf32>
    %283 = arith.addf %280, %282 : vector<16x256xf32>
    %c0_259 = arith.constant 0 : index
    %c0_260 = arith.constant 0 : index
    %c0_261 = arith.constant 0 : index
    %284 = vector.load %arg5[%c0_259, %c0_260, %c0_261] : memref<1x32x256xf32, #tpu.memory_space<vmem>>, vector<1x16x256xf32>
    %285 = vector.shape_cast %284 : vector<1x16x256xf32> to vector<16x256xf32>
    %286 = vector.shape_cast %283 : vector<16x256xf32> to vector<1x16x256xf32>
    tpu.vector_store %arg5[%c0_259, %c0_260, %c0_261], %286 {strides = array<i32>} : memref<1x32x256xf32, #tpu.memory_space<vmem>>, vector<1x16x256xf32>,
    %c0_262 = arith.constant 0 : index
    %c16_263 = arith.constant 16 : index
    %c0_264 = arith.constant 0 : index
    %287 = vector.load %arg1[%c0_262, %c16_263, %c0_264] : memref<1x32x256xf32, #tpu.memory_space<vmem>>, vector<1x16x256xf32>
    %288 = vector.shape_cast %287 : vector<1x16x256xf32> to vector<16x256xf32>
    %c0_265 = arith.constant 0 : index
    %c16_266 = arith.constant 16 : index
    %c0_267 = arith.constant 0 : index
    %289 = vector.load %arg5[%c0_265, %c16_266, %c0_267] : memref<1x32x256xf32, #tpu.memory_space<vmem>>, vector<1x16x256xf32>
    %290 = vector.shape_cast %289 : vector<1x16x256xf32> to vector<16x256xf32>
    %291 = vector.shape_cast %288 : vector<16x256xf32> to vector<1x16x256xf32>
    tpu.vector_store %arg5[%c0_265, %c16_266, %c0_267], %291 {strides = array<i32>} : memref<1x32x256xf32, #tpu.memory_space<vmem>>, vector<1x16x256xf32>,
    return
  }
  func.func @transform_0(%arg0: i32) -> (i32, i32, i32) {
    %c0_i32 = arith.constant 0 : i32
    %c0_i32_0 = arith.constant 0 : i32
    %c0_i32_1 = arith.constant 0 : i32
    return %arg0, %c0_i32, %c0_i32_0 : i32, i32, i32
  }
  func.func @transform_1(%arg0: i32) -> (i32, i32) {
    %c0_i32 = arith.constant 0 : i32
    %c0_i32_0 = arith.constant 0 : i32
    %c0_i32_1 = arith.constant 0 : i32
    return %c0_i32, %c0_i32_0 : i32, i32
  }
  func.func @transform_2(%arg0: i32) -> (i32, i32) {
    %c0_i32 = arith.constant 0 : i32
    %c0_i32_0 = arith.constant 0 : i32
    %c0_i32_1 = arith.constant 0 : i32
    return %c0_i32, %c0_i32_0 : i32, i32
  }
  func.func @transform_3(%arg0: i32) -> (i32, i32) {
    %c0_i32 = arith.constant 0 : i32
    %c0_i32_0 = arith.constant 0 : i32
    %c0_i32_1 = arith.constant 0 : i32
    return %c0_i32, %c0_i32_0 : i32, i32
  }
  func.func @transform_4(%arg0: i32) -> (i32, i32, i32) {
    %c0_i32 = arith.constant 0 : i32
    %c0_i32_0 = arith.constant 0 : i32
    %c0_i32_1 = arith.constant 0 : i32
    return %arg0, %c0_i32, %c0_i32_0 : i32, i32, i32
  }
}

</mosaic_0001>

<bundles_post_ra>
// kernel: rect_sparse_plk_conv2d.1
= control target key start
LH: loop header
LB: loop body
LE: loop exit
PB: predicated region body
PF: predicated region fallthrough
CT: control target
= control target key end

     0   :  { %s3788_s15 = smov 0   ;;  %s5175_s0 = inlined_call_operand.vmem [shape: f32[2,32,256], index: 0, kind: input, shape index: {}]   ;;  %s5176_s1 = inlined_call_operand.vmem [shape: bf16[16,1008], index: 1, kind: input, shape index: {}]   ;;  %s5177_s2 = inlined_call_operand.vmem [shape: f32[16,1], index: 2, kind: input, shape index: {}]   ;;  %s5178_s3 = inlined_call_operand.vmem [shape: bf16[16,256], index: 3, kind: input, shape index: {}]   ;;  %s5179_s4 = inlined_call_operand.vmem [shape: f32[2,32,256], index: 4, kind: output, shape index: {}]  }
   0x1 LB: > { %s3426_s16 = sadd.s32 4294967295, %s3719_s15   ;;  %p3430_p0 = scmp.ge.s32.totalorder %s3719_s15, 1  ;;  %s3719_s15 = sphi %s3788_s15, %s14_s15  }
   0x2   : > { %p162_p1 = scmp.lt.s32.totalorder %s3719_s15, 3 }
   0x4   : > { %p163_p2 = pnand %p3430_p0, %p162_p1 }
   0x5   : > { %v212_v0 = vld [vmem:[%s5178_s3] sm:$0x22] (!%p163_p2)  ;;  %v222_v1 = vlaneseq (!%p163_p2)  ;;  %v3721_v2 = vmov (!%p163_p2), 0   ;;  %s5181_s19 = smov (!%p163_p2), 64   ;;  %p188_p3 = scmp.lt.s32.totalorder (!%p163_p2), %s3426_s16, 1  ;;  %vm5200_vm0 = vcmask (!%p163_p2), 646144  }
   0x6   : > { %166 = sbr.rel (%p163_p2) target bundleno = 954 (0x3ba), region = 36  ;;  %270 = vrot.lane.b32.xlu1 (!%p163_p2), %v3721_v2, %s5181_s19  ;;  %v3435_v3 = vcombine.low (!%p163_p2), %v212_v0, %v212_v0  ;;  %v3436_v4 = vcombine.high (!%p163_p2), %v212_v0, %v212_v0  ;;  %v286_v5 = vld [vmem:[%s5178_s3] sm:$0x44] (!%p163_p2)  ;;  %v339_v6 = vld [vmem:[%s5178_s3] sm:$0x22] (!%p163_p2)  ;;  %3616 = vset.pattern.permute.xlu0 (!%p163_p2), %v3721_v2  ;;  %s3723_s30 = smov (!%p163_p2), 63  }
   0x7   : > { %v3808_v7 = vshrl.u32 (!%p163_p2), %v222_v1, 7  ;;  %v3438_v8 = vcombine.high (!%p163_p2), %v286_v5, %v286_v5  ;;  %v3439_v9 = vcombine.low (!%p163_p2), %v339_v6, %v339_v6  ;;  %3615 = vset.pattern.permute.xlu1 (!%p163_p2), %v3721_v2  ;;  %v3437_v16 = vcombine.low (!%p163_p2), %v286_v5, %v286_v5  ;;  %v413_v23 = vld [vmem:[%s5178_s3] sm:$0x44] (!%p163_p2)  ;;  %v468_v33 = vld [vmem:[%s5178_s3] sm:$0x22] (!%p163_p2)  ;;  %s3724_s7 = smov (!%p163_p2), 65  }
   0x8   : > { %v219_v10 = vshrl.u32 (!%p163_p2), %v3435_v3, 16  ;;  %v227_v11 = vshrl.u32 (!%p163_p2), %v3436_v4, 16  ;;  %v3440_v27 = vcombine.high (!%p163_p2), %v339_v6, %v339_v6  ;;  %v3441_v32 = vcombine.low (!%p163_p2), %v413_v23, %v413_v23  ;;  %s5185_s8 = smov (!%p163_p2), 79   ;;  %s3726_s9 = smov (!%p163_p2), 48   ;;  %v542_v48 = vld [vmem:[%s5178_s3] sm:$0x44] (!%p163_p2) }
   0x9   : > { %v3814_v12 = vsub.s32 (!%p163_p2), 1, %v3808_v7  ;;  %v301_v13 = vshrl.u32 (!%p163_p2), %v3438_v8, 16  ;;  %v3825_v17 = vsub.s32 (!%p163_p2), 2, %v3808_v7  ;;  %v346_v19 = vshrl.u32 (!%p163_p2), %v3439_v9, 16  ;;  %s5187_s12 = smov (!%p163_p2), 81   ;;  %s5189_s17 = smov (!%p163_p2), 95  }
   0xa   : > { %v220_v14 = vpack.i.b16 (!%p163_p2), %v219_v10, %v219_v10  ;;  %v228_v15 = vpack.i.b16 (!%p163_p2), %v227_v11, %v227_v11  ;;  %v293_v26 = vshrl.u32 (!%p163_p2), %v3437_v16, 16  ;;  %v354_v36 = vshrl.u32 (!%p163_p2), %v3440_v27, 16  ;;  %v597_v53 = vld [vmem:[%s5178_s3] sm:$0x22] (!%p163_p2)  ;;  %s3729_s18 = smov (!%p163_p2), 32   ;;  %s5191_s25 = smov (!%p163_p2), 97  }
   0xb   : > { %v302_v18 = vpack.i.b16 (!%p163_p2), %v301_v13, %v301_v13  ;;  %v347_v31 = vpack.i.b16 (!%p163_p2), %v346_v19, %v346_v19  ;;  %v420_v38 = vshrl.u32 (!%p163_p2), %v3441_v32, 16  ;;  %v3444_v39 = vcombine.high (!%p163_p2), %v468_v33, %v468_v33  ;;  %v671_v63 = vld [vmem:[%s5178_s3] sm:$0x44] (!%p163_p2)  ;;  %s3731_s26 = smov (!%p163_p2), 111   ;;  %s3733_s10 = smov (!%p163_p2), 113  }
   0xc   : > { %v225_v20 = vrot.slane (!%p163_p2), %v220_v14, %v3814_v12  ;;  %v233_v25 = vrot.slane (!%p163_p2), %v228_v15, %v3814_v12  ;;  %v294_v35 = vpack.i.b16 (!%p163_p2), %v293_v26, %v293_v26  ;;  %v355_v41 = vpack.i.b16 (!%p163_p2), %v354_v36, %v354_v36  ;;  %v1569_v8 = vld [vmem:[%s5178_s3] sm:$0x44] (!%p163_p2)  ;;  %v1730_v36 = vld [vmem:[%s5178_s3 + $0x8] sm:$0x11] (!%p163_p2)  ;;  %s5193_s22 = smov (!%p163_p2), 114   ;;  %s5195_s23 = smov (!%p163_p2), 115  }
   0xd   : > { %s5267_s16 = smov (!%p188_p3, %s3426_s16), 1  ;;  %v307_v28 = vrot.slane %v302_v18, %v3825_v17  ;;  %v352_v37 = vrot.slane %v347_v31, %v3814_v12  ;;  %v421_v42 = vpack.i.b16 %v420_v38, %v420_v38  ;;  %v483_v43 = vshrl.u32 %v3444_v39, 16  ;;  %s5197_s5 = smov 116  }
   0xe   : > { %s5180_s24 = sshll.u32 %s5267_s16, 6  ;;  %236 = vrot.lane.b32.xlu0 %v225_v20, %s3723_s30  ;;  %v299_v40 = vrot.slane %v294_v35, %v3825_v17  ;;  %v360_v44 = vrot.slane %v355_v41, %v3814_v12  ;;  %v3442_v45 = vcombine.high %v413_v23, %v413_v23  ;;  %v3443_v50 = vcombine.low %v468_v33, %v468_v33  ;;  %v1622_v20 = vld [vmem:[%s5178_s3] sm:$0x88]  ;;  %s3737_s6 = smov 124  }
   0xf   : > { %s3822_s27 = scalar_lea.vmem %s5175_s0, %s5180_s24  ;;  %v426_v46 = vrot.slane %v421_v42, %v3825_v17  ;;  %v484_v47 = vpack.i.b16 %v483_v43, %v483_v43  ;;  %v3446_v52 = vcombine.high %v542_v48, %v542_v48  ;;  %v3447_v57 = vcombine.low %v597_v53, %v597_v53  ;;  %v1783_v42 = vld [vmem:[%s5178_s3] sm:$0x11]  ;;  %s3738_s11 = smov 125  }
  0x10   : > { %v202_v21 = vld [vmem:[%s3822_s27 + $0x8] sm:$0xff]  ;;  %v204_v22 = vld [vmem:[%s3822_s27 + $0x18] sm:$0xff]  ;;  %v201_v29 = vld [vmem:[%s3822_s27] sm:$0xff]  ;;  %v428_v49 = vshrl.u32 %v3442_v45, 16  ;;  %v475_v55 = vshrl.u32 %v3443_v50, 16  ;;  %v3445_v60 = vcombine.low %v542_v48, %v542_v48  ;;  %v3448_v3 = vcombine.high %v597_v53, %v597_v53  ;;  %s3739_s13 = smov 126  }
  0x11   : > { %v3833_v24 = vpack.c.bf16 %v204_v22, %v202_v21  ;;  %v203_v30 = vld [vmem:[%s3822_s27 + $0x10] sm:$0xff]  ;;  %v489_v51 = vrot.slane %v484_v47, %v3814_v12  ;;  %v557_v56 = vshrl.u32 %v3446_v52, 16  ;;  %v604_v62 = vshrl.u32 %v3447_v57, 16  ;;  %v1675_v21 = vld [vmem:[%s5178_s3] sm:$0x88]  ;;  %s3740_s14 = smov 49  }
  0x12   : > { %238 = vrot.lane.b32.xlu0 %v233_v25, %s3723_s30  ;;  %v3846_v34 = vpack.c.bf16 %v203_v30, %v201_v29  ;;  %v429_v54 = vpack.i.b16 %v428_v49, %v428_v49  ;;  %v476_v59 = vpack.i.b16 %v475_v55, %v475_v55  ;;  %v549_v1 = vshrl.u32 %v3445_v60, 16  ;;  %v1836_v43 = vld [vmem:[%s5178_s3] sm:$0x11]  ;;  %s3742_s20 = smov 33   ;;  %s3743_s21 = smov 17  }
  0x13   : > { %274 = vrot.lane.b32.xlu1 %v3833_v24, %s5181_s19  ;;  %v558_v61 = vpack.i.b16 %v557_v56, %v557_v56  ;;  %v605_v5 = vpack.i.b16 %v604_v62, %v604_v62  ;;  %v3449_v6 = vcombine.low %v671_v63, %v671_v63  ;;  %v612_v10 = vshrl.u32 %v3448_v3, 16  ;;  %s3744_s28 = smov 31   ;;  %s3745_s24 = smov 15  }
  0x14   : > { %v434_v58 = vrot.slane %v429_v54, %v3825_v17  ;;  %v481_v0 = vrot.slane %v476_v59, %v3814_v12  ;;  %v550_v9 = vpack.i.b16 %v549_v1, %v549_v1  ;;  %v3480_v14 = vcombine.high %v1569_v8, %v1569_v8  ;;  %s3751_s29 = smov 12  }
  0x15   : > { %v563_v4 = vrot.slane %v558_v61, %v3825_v17  ;;  %v610_v11 = vrot.slane %v605_v5, %v3814_v12  ;;  %v678_v13 = vshrl.u32 %v3449_v6, 16  ;;  %v613_v16 = vpack.i.b16 %v612_v10, %v612_v10 }
  0x16   : > { %272 = vrot.lane.b32.xlu0 %v3846_v34, %s5181_s19  ;;  %v555_v15 = vrot.slane %v550_v9, %v3825_v17  ;;  %v1584_v19 = vshrl.u32 %v3480_v14, 16  ;;  %v3450_v23 = vcombine.high %v671_v63, %v671_v63  ;;  %v3482_v27 = vcombine.high %v1622_v20, %v1622_v20  ;;  %s3747_s19 = smov 1  }
  0x17   : > { %312 = vrot.lane.b32.xlu1 %v307_v28, %s3724_s7  ;;  %v679_v18 = vpack.i.b16 %v678_v13, %v678_v13  ;;  %v618_v22 = vrot.slane %v613_v16, %v3814_v12  ;;  %v3484_v28 = vcombine.high %v1675_v21, %v1675_v21  ;;  %v3479_v30 = vcombine.low %v1569_v8, %v1569_v8 }
  0x18   : > { %v1585_v26 = vpack.i.b16 %v1584_v19, %v1584_v19  ;;  %v686_v29 = vshrl.u32 %v3450_v23, 16  ;;  %v3903_v32 = vsub.s32 3, %v3808_v7  ;;  %v1636_v33 = vpack.i.b16 %v3482_v27, %v3482_v27 }
  0x19   : > { %v684_v25 = vrot.slane %v679_v18, %v3825_v17  ;;  %v1690_v35 = vshrl.u32 %v3484_v28, 16  ;;  %v1576_v38 = vshrl.u32 %v3479_v30, 16  ;;  %v3486_v41 = vcombine.high %v1730_v36, %v1730_v36 }
  0x1a   : > { %310 = vrot.lane.b32.xlu0 %v299_v40, %s3724_s7  ;;  %v1590_v31 = vrot.slane %v1585_v26, %v3825_v17  ;;  %v1641_v39 = vrot.slane %v1636_v33, %v3903_v32  ;;  %v3922_v47 = vsub.s32 0, %v3808_v7  ;;  %v3483_v48 = vcombine.low %v1675_v21, %v1675_v21 }
  0x1b   : > { %363 = vrot.lane.b32.xlu1 %v352_v37, %s5185_s8  ;;  %v687_v37 = vpack.i.b16 %v686_v29, %v686_v29  ;;  %v1691_v40 = vpack.i.b16 %v1690_v35, %v1690_v35  ;;  %v1744_v50 = vpack.i.b16 %v3486_v41, %v3486_v41  ;;  %v3490_v52 = vcombine.high %v1836_v43, %v1836_v43 }
  0x1c   : > { %v1682_v55 = vshrl.u32 %v3483_v48, 16  ;;  %v3485_v61 = vcombine.low %v1730_v36, %v1730_v36  ;;  %v3489_v5 = vcombine.low %v1836_v43, %v1836_v43  ;;  %vm5210_vm1 = vcmask 515072  }
  0x1d   : > { %v692_v45 = vrot.slane %v687_v37, %v3825_v17  ;;  %v1696_v49 = vrot.slane %v1691_v40, %v3903_v32  ;;  %v1749_v7 = vrot.slane %v1744_v50, %v3922_v47  ;;  %v1851_v57 = vshrl.u32 %v3490_v52, 16 }
  0x1e   : > { %365 = vrot.lane.b32.xlu0 %v360_v44, %s5185_s8  ;;  %v3481_v44 = vcombine.low %v1622_v20, %v1622_v20  ;;  %v1683_v60 = vpack.i.b16 %v1682_v55, %v1682_v55  ;;  %v1737_v3 = vpack.i.b16 %v3485_v61, %v3485_v61  ;;  %vm5201_vm2 = vcmask 662528   ;;  %s3752_s8 = smov 13  }
  0x1f   : > { %399 = vrot.lane.b32.xlu1 %v3846_v34, %s3726_s9  ;;  %v1852_v63 = vpack.i.b16 %v1851_v57, %v1851_v57  ;;  %vm5206_vm3 = vcmask 531456   ;;  %vm5211_vm4 = vcmask 908288   ;;  %vm5202_vm5 = vcmask 777216  }
  0x20   : > { %v1629_v54 = vpack.i.b16 %v3481_v44, %v3481_v44  ;;  %v1688_v1 = vrot.slane %v1683_v60, %v3903_v32  ;;  %v1742_v9 = vrot.slane %v1737_v3, %v3922_v47  ;;  %v1944_v60 = vld [vmem:[%s5178_s3] sm:$0x22]  ;;  %vm5203_vm6 = vcmask 793600  }
  0x21   : > { %v1857_v6 = vrot.slane %v1852_v63, %v3922_v47  ;;  %v3493_v3 = vcombine.low %v1944_v60, %v1944_v60  ;;  %vm5208_vm7 = vcmask 924672   ;;  %vm5204_vm8 = vcmask 932864  }
  0x22   : > { %397 = vrot.lane.b32.xlu0 %v3721_v2, %s3726_s9  ;;  %v1634_v59 = vrot.slane %v1629_v54, %v3903_v32  ;;  %vm5205_vm9 = vcmask 941056   ;;  %vm5209_vm10 = vcmask 949248   ;;  %vm5212_vm11 = vcmask 1014784  }
  0x23   : > { %437 = vrot.lane.b32.xlu1 %v426_v46, %s5187_s12  ;;  %v1577_v46 = vpack.i.b16 %v1576_v38, %v1576_v38  ;;  %vm5199_vm12 = vcmask 523264   ;;  %vm1864_vm13 = vcmask 1022976   ;;  %vm1917_vm14 = vcmask 1031168  }
  0x24   : > { %vm384_vm15 = vcmask 400384  }
  0x25   : > { %v1582_v53 = vrot.slane %v1577_v46, %v3825_v17 }
  0x26   : > { %401 = vrot.lane.b32.xlu0 %v3833_v24, %s3726_s9  ;;  %s5183_s9 = smov 16  }
  0x27   : > { %494 = vrot.lane.b32.xlu1 %v489_v51, %s5189_s17  ;;  %v3488_v51 = vcombine.high %v1783_v42, %v1783_v42 }
  0x29   : > { %v1797_v56 = vpack.i.b16 %v3488_v51, %v3488_v51 }
  0x2a   : > { %439 = vrot.lane.b32.xlu0 %v434_v58, %s5187_s12  ;;  %v1891_v58 = vld [vmem:[%s5178_s3] sm:$0x22]  ;;  %s3746_s12 = smov 127  }
  0x2b   : > { %526 = vrot.lane.b32.xlu1 %v3721_v2, %s3729_s18  ;;  %v1802_v62 = vrot.slane %v1797_v56, %v3922_v47  ;;  %v3491_v16 = vcombine.low %v1891_v58, %v1891_v58 }
  0x2d   : > { %v1898_v19 = vpack.i.b16 %v3491_v16, %v3491_v16 }
  0x2e   : > { %492 = vrot.lane.b32.xlu0 %v481_v0, %s5189_s17  ;;  %v3492_v0 = vcombine.high %v1891_v58, %v1891_v58  ;;  %s3754_s17 = smov 18  }
  0x2f   : > { %530 = vrot.lane.b32.xlu1 %v3833_v24, %s3729_s18  ;;  %v1903_v20 = vrot.slane %v1898_v19, %v3814_v12 }
  0x30   : > { %v1905_v8 = vpack.i.b16 %v3492_v0, %v3492_v0 }
  0x32   : > { %528 = vrot.lane.b32.xlu0 %v3846_v34, %s3729_s18  ;;  %v1910_v13 = vrot.slane %v1905_v8, %v3814_v12  ;;  %s3741_s18 = smov 47  }
  0x33   : > { %568 = vrot.lane.b32.xlu1 %v563_v4, %s5191_s25  ;;  %v3487_v4 = vcombine.low %v1783_v42, %v1783_v42 }
  0x35   : > { %v1790_v10 = vpack.i.b16 %v3487_v4, %v3487_v4 }
  0x36   : > { %566 = vrot.lane.b32.xlu0 %v555_v15, %s5191_s25  ;;  %s3750_s25 = smov 4  }
  0x37   : > { %621 = vrot.lane.b32.xlu1 %v610_v11, %s3731_s26  ;;  %v1843_v11 = vshrl.u32 %v3489_v5, 16  ;;  %v1795_v14 = vrot.slane %v1790_v10, %v3922_v47  ;;  %v2001_v10 = vld [vmem:[%s5178_s3] sm:$0x44] }
  0x38   : > { %v3495_v19 = vcombine.low %v2001_v10, %v2001_v10 }
  0x39   : > { %v1844_v15 = vpack.i.b16 %v1843_v11, %v1843_v11 }
  0x3a   : > { %623 = vrot.lane.b32.xlu0 %v618_v22, %s3731_s26 }
  0x3b   : > { %657 = vrot.lane.b32.xlu1 %v3846_v34, %s5183_s9  ;;  %v1849_v18 = vrot.slane %v1844_v15, %v3922_v47 }
  0x3e   : > { %655 = vrot.lane.b32.xlu0 %v3721_v2, %s5183_s9 }
  0x3f   : > { %695 = vrot.lane.b32.xlu1 %v684_v25, %s3733_s10 }
  0x42   : > { %659 = vrot.lane.b32.xlu0 %v3833_v24, %s5183_s9  ;;  %s3748_s9 = smov 2  }
  0x43   : > { %1595 = vrot.lane.b32.xlu1 %v1590_v31, %s3733_s10 }
  0x46   : > { %697 = vrot.lane.b32.xlu0 %v692_v45, %s3733_s10 }
  0x47   : > { %1646 = vrot.lane.b32.xlu1 %v1641_v39, %s5193_s22 }
  0x4a   : > { %1593 = vrot.lane.b32.xlu0 %v1582_v53, %s3733_s10 }
  0x4b   : > { %1701 = vrot.lane.b32.xlu1 %v1696_v49, %s5195_s23 }
  0x4e   : > { %1644 = vrot.lane.b32.xlu0 %v1634_v59, %s5193_s22  ;;  %s3749_s22 = smov 3  }
  0x4f   : > { %1754 = vrot.lane.b32.xlu1 %v1749_v7, %s5197_s5 }
  0x52   : > { %1699 = vrot.lane.b32.xlu0 %v1688_v1, %s5195_s23  ;;  %s3756_s23 = smov 20  }
  0x53   : > { %1807 = vrot.lane.b32.xlu1 %v1802_v62, %s3737_s6 }
  0x56   : > { %1752 = vrot.lane.b32.xlu0 %v1742_v9, %s5197_s5  ;;  %v1951_v9 = vshrl.u32 %v3493_v3, 16  ;;  %s3753_s5 = smov 14  }
  0x57   : > { %1862 = vrot.lane.b32.xlu1 %v1857_v6, %s3738_s11 }
  0x5a   : > { %1805 = vrot.lane.b32.xlu0 %v1795_v14, %s3737_s6 }
  0x5b   : > { %1915 = vrot.lane.b32.xlu1 %v1910_v13, %s3739_s13 }
  0x5e   : > { %1860 = vrot.lane.b32.xlu0 %v1849_v18, %s3738_s11  ;;  %v1952_v18 = vpack.i.b16 %v1951_v9, %v1951_v9 }
  0x62   : > { %1913 = vrot.lane.b32.xlu0 %v1903_v20, %s3739_s13  ;;  %v3494_v20 = vcombine.high %v1944_v60, %v1944_v60 }
  0x78   : > { %v3953_v21 = vpop.permute.xlu1 %270 }
  0x80   : > { %v3955_v22 = vpop.permute.xlu0 %236 }
  0x81   : > { %v245_v23 = vmul.bf16 0, %v3955_v22 }
  0x83   : > { %251 = vrot.lane.b32.xlu1 %v245_v23, %s3724_s7 }
  0x84   : > { %v3961_v26 = vpop.permute.xlu0 %238 }
  0x85   : > { %v3958_v25 = vpop.permute.xlu1 %274  ;;  %v247_v27 = vmul.bf16 %v3961_v26, %v3833_v24  ;;  %v241_v6 = vsel %vm5210_vm1, %v3955_v22, %v3961_v26 }
  0x86   : > { %v246_v14 = vmul.bf16 %v241_v6, %v3846_v34 }
  0x87   : > { %255 = vrot.lane.b32.xlu0 %v247_v27, %s3724_s7 }
  0x88   : > { %v3968_v29 = vpop.permute.xlu0 %272 }
  0x89   : > { %v3965_v28 = vpop.permute.xlu1 %312 }
  0x8a   : > { %v320_v38 = vmul.bf16 %v3965_v28, %v3833_v24 }
  0x8c   : > { %v3970_v33 = vpop.permute.xlu0 %310 }
  0x8d   : > { %v364_v30 = vpop.permute.xlu1 %363  ;;  %v318_v35 = vmul.bf16 0, %v3970_v33  ;;  %v314_v15 = vsel %vm5206_vm3, %v3970_v33, %v3965_v28  ;;  %v1957_v28 = vrot.slane %v1952_v18, %v3814_v12  ;;  %v726_v33 = vld [vmem:[%s5178_s3] sm:$0x22] }
  0x8e   : > { %v372_v31 = vmul.bf16 0, %v364_v30  ;;  %v319_v23 = vmul.bf16 %v314_v15, %v3846_v34 }
  0x8f   : > { %324 = vrot.lane.b32.xlu0 %v318_v35, %s3723_s30  ;;  %v2054_v35 = vld [vmem:[%s5178_s3] sm:$0x88] }
  0x90   : > { %378 = vrot.lane.b32.xlu1 %v372_v31, %s3740_s14  ;;  %v366_v37 = vpop.permute.xlu0 %365  ;;  %v1959_v31 = vshrl.u32 %v3494_v20, 16  ;;  %v3498_v3 = vcombine.high %v2054_v35, %v2054_v35 }
  0x91   : > { %v3974_v36 = vpop.permute.xlu1 %399  ;;  %v374_v39 = vmul.bf16 %v366_v37, %v3833_v24  ;;  %v368_v0 = vsel %vm5200_vm0, %v364_v30, %v366_v37  ;;  %v2008_v30 = vshrl.u32 %v3495_v19, 16  ;;  %vm458_vm0 = vcmask 384000  }
  0x92   : > { %v373_v5 = vmul.bf16 %v368_v0, %v3846_v34  ;;  %v3452_v0 = vcombine.high %v726_v33, %v726_v33  ;;  %v2068_v15 = vpack.i.b16 %v3498_v3, %v3498_v3 }
  0x93   : > { %328 = vrot.lane.b32.xlu0 %v320_v38, %s3723_s30 }
  0x94   : > { %382 = vrot.lane.b32.xlu1 %v374_v39, %s3740_s14  ;;  %v3982_v42 = vpop.permute.xlu0 %397 }
  0x95   : > { %v438_v40 = vpop.permute.xlu1 %437 }
  0x96   : > { %v446_v41 = vmul.bf16 0, %v438_v40 }
  0x98   : > { %452 = vrot.lane.b32.xlu1 %v446_v41, %s3741_s18  ;;  %v3987_v44 = vpop.permute.xlu0 %401  ;;  %v3496_v41 = vcombine.high %v2001_v10, %v2001_v10 }
  0x99   : > { %v3984_v43 = vpop.permute.xlu1 %494 }
  0x9a   : > { %v503_v54 = vmul.bf16 %v3984_v43, %v3833_v24 }
  0x9c   : > { %v440_v46 = vpop.permute.xlu0 %439 }
  0x9d   : > { %v3989_v45 = vpop.permute.xlu1 %526  ;;  %v448_v48 = vmul.bf16 %v440_v46, %v3833_v24  ;;  %v442_v8 = vsel %vm5201_vm2, %v438_v40, %v440_v46  ;;  %v3451_v40 = vcombine.low %v726_v33, %v726_v33  ;;  %v1960_v46 = vpack.i.b16 %v1959_v31, %v1959_v31 }
  0x9e   : > { %v447_v13 = vmul.bf16 %v442_v8, %v3846_v34  ;;  %vm513_vm2 = vcmask 269312  }
  0x9f   : > { %456 = vrot.lane.b32.xlu1 %v448_v48, %s3741_s18  ;;  %v3497_v48 = vcombine.low %v2054_v35, %v2054_v35 }
  0xa0   : > { %v493_v50 = vpop.permute.xlu0 %492 }
  0xa1   : > { %v3992_v49 = vpop.permute.xlu1 %530  ;;  %v501_v51 = vmul.bf16 0, %v493_v50  ;;  %v497_v26 = vsel %vm5202_vm5, %v493_v50, %v3984_v43  ;;  %v2009_v43 = vpack.i.b16 %v2008_v30, %v2008_v30  ;;  %v2105_v50 = vld [vmem:[%s5178_s3] sm:$0x88]  ;;  %v838_v30 = vld [vmem:[%s5178_s3] sm:$0x22]  ;;  %vm754_vm5 = vcmask 1039360  }
  0xa2   : > { %v502_v37 = vmul.bf16 %v497_v26, %v3846_v34  ;;  %v3500_v18 = vcombine.high %v2105_v50, %v2105_v50 }
  0xa3   : > { %507 = vrot.lane.b32.xlu0 %v501_v51, %s3742_s20 }
  0xa4   : > { %v3998_v53 = vpop.permute.xlu0 %528 }
  0xa5   : > { %v3995_v52 = vpop.permute.xlu1 %568 }
  0xa6   : > { %v577_v61 = vmul.bf16 %v3995_v52, %v3833_v24 }
  0xa7   : > { %511 = vrot.lane.b32.xlu0 %v503_v54, %s3742_s20  ;;  %v733_v54 = vshrl.u32 %v3451_v40, 16 }
  0xa8   : > { %v567_v56 = vpop.permute.xlu0 %566 }
  0xa9   : > { %v622_v55 = vpop.permute.xlu1 %621  ;;  %v575_v57 = vmul.bf16 0, %v567_v56  ;;  %v571_v38 = vsel %vm5203_vm6, %v567_v56, %v3995_v52  ;;  %v2014_v56 = vrot.slane %v2009_v43, %v3825_v17  ;;  %v734_v60 = vpack.i.b16 %v733_v54, %v733_v54  ;;  %v2260_v43 = vld [vmem:[%s5178_s3] sm:$0x11] }
  0xaa   : > { %v630_v7 = vmul.bf16 0, %v622_v55  ;;  %v576_v52 = vmul.bf16 %v571_v38, %v3846_v34  ;;  %v3455_v38 = vcombine.low %v838_v30, %v838_v30  ;;  %vm587_vm6 = vcmask 252928  }
  0xab   : > { %581 = vrot.lane.b32.xlu0 %v575_v57, %s3744_s28  ;;  %v1965_v57 = vrot.slane %v1960_v46, %v3814_v12  ;;  %v739_v9 = vrot.slane %v734_v60, %v3814_v12 }
  0xac   : > { %636 = vrot.lane.b32.xlu1 %v630_v7, %s3743_s21  ;;  %v624_v59 = vpop.permute.xlu0 %623  ;;  %v3499_v7 = vcombine.low %v2105_v50, %v2105_v50  ;;  %v845_v50 = vshrl.u32 %v3455_v38, 16 }
  0xad   : > { %v4004_v58 = vpop.permute.xlu1 %657  ;;  %v632_v62 = vmul.bf16 %v624_v59, %v3833_v24  ;;  %v626_v16 = vsel %vm5211_vm4, %v622_v55, %v624_v59  ;;  %v2016_v55 = vshrl.u32 %v3496_v41, 16  ;;  %v2061_v59 = vpack.i.b16 %v3497_v48, %v3497_v48 }
  0xae   : > { %v631_v22 = vmul.bf16 %v626_v16, %v3846_v34  ;;  %vm1720_vm4 = vcmask 105472  }
  0xaf   : > { %585 = vrot.lane.b32.xlu0 %v577_v61, %s3744_s28  ;;  %v2017_v61 = vpack.i.b16 %v2016_v55, %v2016_v55 }
  0xb0   : > { %640 = vrot.lane.b32.xlu1 %v632_v62, %s3743_s21  ;;  %v4016_v4 = vpop.permute.xlu0 %655  ;;  %v2112_v62 = vshrl.u32 %v3499_v7, 16 }
  0xb1   : > { %v696_v63 = vpop.permute.xlu1 %695  ;;  %v2022_v10 = vrot.slane %v2017_v61, %v3825_v17 }
  0xb2   : > { %v704_v1 = vmul.bf16 0, %v696_v63 }
  0xb3   : > { %380 = vrot.lane.b32.xlu0 %v373_v5, %s3740_s14  ;;  %v785_v5 = vld [vmem:[%s5178_s3] sm:$0x44] }
  0xb4   : > { %710 = vrot.lane.b32.xlu1 %v704_v1, %s3745_s24  ;;  %v4028_v11 = vpop.permute.xlu0 %659  ;;  %v2066_v1 = vrot.slane %v2061_v59, %v3903_v32  ;;  %v3453_v16 = vcombine.low %v785_v5, %v785_v5  ;;  %v3454_v41 = vcombine.high %v785_v5, %v785_v5  ;;  %v846_v59 = vpack.i.b16 %v845_v50, %v845_v50 }
  0xb5   : > { %v4101_v7 = vpop.permute.xlu1 %1595 }
  0xb6   : > { %v792_v26 = vshrl.u32 %v3453_v16, 16  ;;  %v800_v55 = vshrl.u32 %v3454_v41, 16  ;;  %v851_v3 = vrot.slane %v846_v59, %v3814_v12 }
  0xb7   : > { %454 = vrot.lane.b32.xlu0 %v447_v13, %s3741_s18  ;;  %v2113_v13 = vpack.i.b16 %v2112_v62, %v2112_v62 }
  0xb8   : > { %253 = vrot.lane.b32.xlu1 %v246_v14, %s3724_s7  ;;  %v698_v27 = vpop.permute.xlu0 %697  ;;  %v741_v14 = vshrl.u32 %v3452_v0, 16  ;;  %v801_v61 = vpack.i.b16 %v800_v55, %v800_v55  ;;  %v2313_v0 = vld [vmem:[%s5178_s3] sm:$0x22] }
  0xb9   : > { %v700_v39 = vsel %vm5208_vm7, %v696_v63, %v698_v27  ;;  %v2158_v63 = vld [vmem:[%s5178_s3 + $0x8] sm:$0x11]  ;;  %v706_v6 = vmul.bf16 %v698_v27, %v3833_v24  ;;  %v2120_v27 = vshrl.u32 %v3500_v18, 16 }
  0xba   : > { %v705_v51 = vmul.bf16 %v700_v39, %v3846_v34  ;;  %v3501_v8 = vcombine.low %v2158_v63, %v2158_v63  ;;  %v742_v20 = vpack.i.b16 %v741_v14, %v741_v14  ;;  %v793_v39 = vpack.i.b16 %v792_v26, %v792_v26 }
  0xbb   : > { %638 = vrot.lane.b32.xlu0 %v631_v22, %s3743_s21  ;;  %v2118_v22 = vrot.slane %v2113_v13, %v3903_v32  ;;  %v2121_v40 = vpack.i.b16 %v2120_v27, %v2120_v27  ;;  %v3507_v13 = vcombine.low %v2313_v0, %v2313_v0 }
  0xbc   : > { %326 = vrot.lane.b32.xlu1 %v319_v23, %s3723_s30  ;;  %v2165_v19 = vpack.i.b16 %v3501_v8, %v3501_v8  ;;  %v2073_v23 = vrot.slane %v2068_v15, %v3903_v32  ;;  %v747_v33 = vrot.slane %v742_v20, %v3814_v12  ;;  %v4113_v8 = vpop.permute.xlu1 %1646  ;;  %v910_v15 = vld [vmem:[%s5178_s3] sm:$0x44] }
  0xbd   : > { %v2126_v54 = vrot.slane %v2121_v40, %v3903_v32 }
  0xbe   : > { %v2170_v31 = vrot.slane %v2165_v19, %v3922_v47  ;;  %v3457_v19 = vcombine.low %v910_v15, %v910_v15 }
  0xbf   : > { %1968 = vrot.lane.b32.xlu0 %v1957_v28, %s3746_s12  ;;  %v2209_v28 = vld [vmem:[%s5178_s3] sm:$0x11] }
  0xc0   : > { %509 = vrot.lane.b32.xlu1 %v502_v37, %s3742_s20  ;;  %v3503_v35 = vcombine.low %v2209_v28, %v2209_v28  ;;  %v3502_v37 = vcombine.high %v2158_v63, %v2158_v63  ;;  %v3504_v62 = vcombine.high %v2209_v28, %v2209_v28  ;;  %v3456_v63 = vcombine.high %v838_v30, %v838_v30  ;;  %v4127_v27 = vpop.permute.xlu1 %1701 }
  0xc1   : > { %v917_v30 = vshrl.u32 %v3457_v19, 16 }
  0xc2   : > { %v2216_v46 = vpack.i.b16 %v3503_v35, %v3503_v35  ;;  %v2172_v48 = vpack.i.b16 %v3502_v37, %v3502_v37  ;;  %v853_v14 = vshrl.u32 %v3456_v63, 16  ;;  %v3508_v35 = vcombine.high %v2313_v0, %v2313_v0  ;;  %v2364_v37 = vld [vmem:[%s5178_s3] sm:$0x22] }
  0xc3   : > { %712 = vrot.lane.b32.xlu0 %v705_v51, %s3745_s24  ;;  %v3505_v51 = vcombine.low %v2260_v43, %v2260_v43  ;;  %v918_v41 = vpack.i.b16 %v917_v30, %v917_v30  ;;  %v3509_v59 = vcombine.low %v2364_v37, %v2364_v37 }
  0xc4   : > { %583 = vrot.lane.b32.xlu1 %v576_v52, %s3744_s28  ;;  %v798_v52 = vrot.slane %v793_v39, %v3825_v17  ;;  %v854_v26 = vpack.i.b16 %v853_v14, %v853_v14  ;;  %v2327_v50 = vpack.i.b16 %v3508_v35, %v3508_v35 }
  0xc5   : > { %v2267_v60 = vshrl.u32 %v3505_v51, 16  ;;  %v3458_v51 = vcombine.high %v910_v15, %v910_v15  ;;  %v923_v55 = vrot.slane %v918_v41, %v3825_v17  ;;  %v2371_v0 = vshrl.u32 %v3509_v59, 16 }
  0xc7   : > { %2025 = vrot.lane.b32.xlu0 %v2014_v56, %s3747_s19  ;;  %v2221_v56 = vrot.slane %v2216_v46, %v3922_v47  ;;  %v2268_v5 = vpack.i.b16 %v2267_v60, %v2267_v60  ;;  %v4142_v46 = vpop.permute.xlu1 %1754  ;;  %v963_v60 = vld [vmem:[%s5178_s3] sm:$0x22]  ;;  %v2372_v15 = vpack.i.b16 %v2371_v0, %v2371_v0 }
  0xc8   : > { %1970 = vrot.lane.b32.xlu1 %v1965_v57, %s3746_s12  ;;  %v2177_v57 = vrot.slane %v2172_v48, %v3922_v47 }
  0xc9   : > { %v2273_v16 = vrot.slane %v2268_v5, %v3922_v47  ;;  %v1603_v5 = vmul.bf16 %v4101_v7, %v3833_v24 }
  0xcb   : > { %2076 = vrot.lane.b32.xlu0 %v2066_v1, %s3748_s9  ;;  %v4110_v1 = vpop.permute.xlu0 %1593 }
  0xcc   : > { %714 = vrot.lane.b32.xlu1 %v706_v6, %s3745_s24  ;;  %v3506_v6 = vcombine.high %v2260_v43, %v2260_v43  ;;  %v1597_v38 = vsel %vm5208_vm7, %v4110_v1, %v4101_v7  ;;  %v3510_v43 = vcombine.high %v2364_v37, %v2364_v37  ;;  %v2377_v7 = vrot.slane %v2372_v15, %v3814_v12 }
  0xcd   : > { %v1602_v48 = vmul.bf16 %v1597_v38, %v3846_v34  ;;  %vm1881_vm7 = vcmask 23552  }
  0xce   : > { %v2275_v18 = vshrl.u32 %v3506_v6, 16  ;;  %v1601_v6 = vmul.bf16 0, %v4110_v1 }
  0xcf   : > { %750 = vrot.lane.b32.xlu0 %v739_v9, %s3746_s12  ;;  %v806_v9 = vrot.slane %v801_v61, %v3825_v17  ;;  %v4122_v20 = vpop.permute.xlu0 %1644  ;;  %v4156_v61 = vpop.permute.xlu1 %1807 }
  0xd0   : > { %2027 = vrot.lane.b32.xlu1 %v2022_v10, %s3747_s19  ;;  %v2223_v10 = vpack.i.b16 %v3504_v62, %v3504_v62  ;;  %v2276_v28 = vpack.i.b16 %v2275_v18, %v2275_v18  ;;  %v3459_v18 = vcombine.low %v963_v60, %v963_v60  ;;  %v1649_v30 = vsel %vm5204_vm8, %v4122_v20, %v4113_v8 }
  0xd1   : > { %v1654_v38 = vmul.bf16 %v1649_v30, %v3846_v34  ;;  %vm771_vm8 = vcmask 7168  }
  0xd2   : > { %v2281_v40 = vrot.slane %v2276_v28, %v3922_v47 }
  0xd3   : > { %2129 = vrot.lane.b32.xlu0 %v2118_v22, %s3749_s22  ;;  %v2228_v22 = vrot.slane %v2223_v10, %v3922_v47  ;;  %v4139_v39 = vpop.permute.xlu0 %1699 }
  0xd4   : > { %2078 = vrot.lane.b32.xlu1 %v2073_v23, %s3748_s9  ;;  %v2320_v23 = vpack.i.b16 %v3507_v13, %v3507_v13  ;;  %v4166_v13 = vpop.permute.xlu1 %1862 }
  0xd7   : > { %2180 = vrot.lane.b32.xlu0 %v2170_v31, %s3750_s25  ;;  %v2325_v31 = vrot.slane %v2320_v23, %v3814_v12  ;;  %v2435_v23 = vld [vmem:[%s5178_s3] sm:$0x44] }
  0xd8   : > { %752 = vrot.lane.b32.xlu1 %v747_v33, %s3746_s12  ;;  %v859_v33 = vrot.slane %v854_v26, %v3814_v12  ;;  %v1655_v26 = vmul.bf16 %v4113_v8, %v3833_v24  ;;  %v4181_v28 = vpop.permute.xlu1 %1915  ;;  %v3512_v35 = vcombine.high %v2435_v23, %v2435_v23 }
  0xdb   : > { %809 = vrot.lane.b32.xlu0 %v798_v52, %s3747_s19  ;;  %v2379_v52 = vshrl.u32 %v3510_v43, 16  ;;  %v2450_v43 = vshrl.u32 %v3512_v35, 16 }
  0xdc   : > { %2131 = vrot.lane.b32.xlu1 %v2126_v54, %s3749_s22  ;;  %v4147_v54 = vpop.permute.xlu0 %1752 }
  0xdd   : > { %v2380_v62 = vpack.i.b16 %v2379_v52, %v2379_v52 }
  0xdf   : > { %2231 = vrot.lane.b32.xlu0 %v2221_v56, %s3751_s29  ;;  %v2332_v56 = vrot.slane %v2327_v50, %v3814_v12  ;;  %v2385_v10 = vrot.slane %v2380_v62, %v3814_v12  ;;  %v1035_v50 = vld [vmem:[%s5178_s3] sm:$0x44]  ;;  %v1708_v62 = vmul.bf16 0, %v4139_v39 }
  0xe0   : > { %2182 = vrot.lane.b32.xlu1 %v2177_v57, %s3750_s25  ;;  %v925_v57 = vshrl.u32 %v3458_v51, 16  ;;  %v3462_v52 = vcombine.high %v1035_v50, %v1035_v50 }
  0xe2   : > { %v926_v63 = vpack.i.b16 %v925_v57, %v925_v57  ;;  %v2451_v57 = vpack.i.b16 %v2450_v43, %v2450_v43 }
  0xe3   : > { %862 = vrot.lane.b32.xlu0 %v851_v3, %s3745_s24  ;;  %v3460_v3 = vcombine.high %v963_v60, %v963_v60  ;;  %v1653_v60 = vmul.bf16 0, %v4122_v20  ;;  %v1710_v20 = vmul.bf16 %v4127_v27, %v3833_v24 }
  0xe4   : > { %811 = vrot.lane.b32.xlu1 %v806_v9, %s3747_s19  ;;  %v4163_v9 = vpop.permute.xlu0 %1805  ;;  %v931_v14 = vrot.slane %v926_v63, %v3825_v17  ;;  %v1050_v63 = vshrl.u32 %v3462_v52, 16 }
  0xe5   : > { %v1810_v52 = vsel %vm5212_vm11, %v4163_v9, %v4156_v61  ;;  %vm1773_vm11 = vcmask 97280  }
  0xe7   : > { %2284 = vrot.lane.b32.xlu0 %v2273_v16, %s3752_s8  ;;  %v978_v16 = vshrl.u32 %v3460_v3, 16  ;;  %v2456_v3 = vrot.slane %v2451_v57, %v3825_v17 }
  0xe8   : > { %2233 = vrot.lane.b32.xlu1 %v2228_v22, %s3751_s29  ;;  %v4171_v19 = vpop.permute.xlu0 %1860  ;;  %v970_v22 = vshrl.u32 %v3459_v18, 16 }
  0xe9   : > { %v979_v1 = vpack.i.b16 %v978_v16, %v978_v16 }
  0xeb   : > { %2335 = vrot.lane.b32.xlu0 %v2325_v31, %s3753_s5  ;;  %v984_v31 = vrot.slane %v979_v1, %v3814_v12  ;;  %v1763_v1 = vmul.bf16 %v4142_v46, %v3833_v24 }
  0xec   : > { %864 = vrot.lane.b32.xlu1 %v859_v33, %s3745_s24  ;;  %v971_v33 = vpack.i.b16 %v970_v22, %v970_v22  ;;  %v4189_v37 = vpop.permute.xlu0 %1913  ;;  %v1757_v22 = vsel %vm5209_vm10, %v4147_v54, %v4142_v46  ;;  %vm1665_vm10 = vcmask 113664  }
  0xed   : > { %v1762_v35 = vmul.bf16 %v1757_v22, %v3846_v34 }
  0xee   : > { %v976_v8 = vrot.slane %v971_v33, %v3814_v12 }
  0xef   : > { %1609 = vrot.lane.b32.xlu0 %v1602_v48, %s3745_s24  ;;  %v3511_v48 = vcombine.low %v2435_v23, %v2435_v23 }
  0xf0   : > { %2286 = vrot.lane.b32.xlu1 %v2281_v40, %s3752_s8  ;;  %v1704_v40 = vsel %vm5205_vm9, %v4139_v39, %v4127_v27  ;;  %v1051_v39 = vpack.i.b16 %v1050_v63, %v1050_v63  ;;  %vm642_vm9 = vcmask 138240  }
  0xf1   : > { %v1709_v51 = vmul.bf16 %v1704_v40, %v3846_v34  ;;  %v2442_v59 = vshrl.u32 %v3511_v48, 16 }
  0xf2   : > { %v1056_v23 = vrot.slane %v1051_v39, %v3825_v17 }
  0xf3   : > { %934 = vrot.lane.b32.xlu0 %v923_v55, %s3743_s21 }
  0xf4   : > { %2337 = vrot.lane.b32.xlu1 %v2332_v56, %s3753_s5 }
  0xf5   : > { %v4195_v41 = vpop.permute.xlu1 %251 }
  0xf7   : > { %1607 = vrot.lane.b32.xlu0 %v1601_v6, %s3745_s24  ;;  %v3461_v6 = vcombine.low %v1035_v50, %v1035_v50  ;;  %v2539_v50 = vld [vmem:[%s5178_s3] sm:$0x88] }
  0xf8   : > { %1611 = vrot.lane.b32.xlu1 %v1603_v5, %s3745_s24  ;;  %v2443_v5 = vpack.i.b16 %v2442_v59, %v2442_v59  ;;  %v3516_v57 = vcombine.high %v2539_v50, %v2539_v50 }
  0xf9   : > { %v4204_v55 = vpop.permute.xlu0 %255  ;;  %v1042_v18 = vshrl.u32 %v3461_v6, 16 }
  0xfa   : > { %v2448_v15 = vrot.slane %v2443_v5, %v3825_v17  ;;  %v1815_v5 = vmul.bf16 %v1810_v52, %v3846_v34 }
  0xfb   : > { %2390 = vrot.lane.b32.xlu0 %v2385_v10, %s3745_s24  ;;  %v2488_v10 = vld [vmem:[%s5178_s3] sm:$0x88] }
  0xfc   : > { %936 = vrot.lane.b32.xlu1 %v931_v14, %s3743_s21  ;;  %v3513_v16 = vcombine.low %v2488_v10, %v2488_v10  ;;  %v3514_v48 = vcombine.high %v2488_v10, %v2488_v10  ;;  %v2554_v10 = vshrl.u32 %v3516_v57, 16 }
  0xfe   : > { %v2495_v30 = vpack.i.b16 %v3513_v16, %v3513_v16  ;;  %v3515_v16 = vcombine.low %v2539_v50, %v2539_v50 }
  0xff   : > { %1663 = vrot.lane.b32.xlu0 %v1655_v26, %s3753_s5 }
 0x100   : > { %2388 = vrot.lane.b32.xlu1 %v2377_v7, %s3745_s24  ;;  %v1088_v7 = vld [vmem:[%s5178_s3] sm:$0x22]  ;;  %v2500_v46 = vrot.slane %v2495_v30, %v3903_v32  ;;  %v2546_v22 = vshrl.u32 %v3515_v16, 16  ;;  %v1816_v30 = vmul.bf16 %v4156_v61, %v3833_v24  ;;  %v1160_v61 = vld [vmem:[%s5178_s3] sm:$0x44] }
 0x101   : > { %v4212_v0 = vpop.permute.xlu0 %324  ;;  %v3463_v33 = vcombine.low %v1088_v7, %v1088_v7  ;;  %v3464_v63 = vcombine.high %v1088_v7, %v1088_v7 }
 0x102   : > { %v4206_v56 = vpop.permute.xlu1 %378 }
 0x103   : > { %989 = vrot.lane.b32.xlu0 %v984_v31, %s3744_s28  ;;  %v1043_v31 = vpack.i.b16 %v1042_v18, %v1042_v18  ;;  %v1095_v43 = vshrl.u32 %v3463_v33, 16 }
 0x104   : > { %1661 = vrot.lane.b32.xlu1 %v1654_v38, %s3753_s5 }
 0x105   : > { %v4232_v27 = vpop.permute.xlu0 %328 }
 0x106   : > { %v4222_v14 = vpop.permute.xlu1 %382 }
 0x107   : > { %1716 = vrot.lane.b32.xlu0 %v1709_v51, %s3752_s8 }
 0x108   : > { %987 = vrot.lane.b32.xlu1 %v976_v8, %s3744_s28  ;;  %v1048_v8 = vrot.slane %v1043_v31, %v3825_v17  ;;  %v1814_v31 = vmul.bf16 0, %v4163_v9 }
 0x10a   : > { %v4238_v26 = vpop.permute.xlu1 %452 }
 0x10b   : > { %1714 = vrot.lane.b32.xlu0 %v1708_v62, %s3752_s8  ;;  %v2502_v62 = vpack.i.b16 %v3514_v48, %v3514_v48 }
 0x10c   : > { %1659 = vrot.lane.b32.xlu1 %v1653_v60, %s3753_s5  ;;  %v1096_v60 = vpack.i.b16 %v1095_v43, %v1095_v43  ;;  %v2547_v43 = vpack.i.b16 %v2546_v22, %v2546_v22  ;;  %v1918_v22 = vsel %vm1917_vm14, %v4189_v37, %v4181_v28  ;;  %s3759_s5 = smov 110  }
 0x10d   : > { %v2507_v39 = vrot.slane %v2502_v62, %v3903_v32 }
 0x10f   : > { %2461 = vrot.lane.b32.xlu0 %v2456_v3, %s3743_s21  ;;  %v1761_v3 = vmul.bf16 0, %v4147_v54  ;;  %v2555_v54 = vpack.i.b16 %v2554_v10, %v2554_v10  ;;  %v1865_v10 = vsel %vm1864_vm13, %v4171_v19, %v4166_v13 }
 0x110   : > { %1718 = vrot.lane.b32.xlu1 %v1710_v20, %s3752_s8  ;;  %v1101_v20 = vrot.slane %v1096_v60, %v3814_v12  ;;  %v2552_v60 = vrot.slane %v2547_v43, %v3903_v32  ;;  %s5216_s8 = smov 97  }
 0x111   : > { %v4245_v40 = vpop.permute.xlu1 %456 }
 0x113   : > { %1771 = vrot.lane.b32.xlu0 %v1763_v1, %s3751_s29 }
 0x114   : > { %2459 = vrot.lane.b32.xlu1 %v2448_v15, %s3743_s21  ;;  %v1103_v15 = vshrl.u32 %v3464_v63, 16  ;;  %v3465_v63 = vcombine.low %v1160_v61, %v1160_v61 }
 0x115   : > { %v4243_v38 = vpop.permute.xlu0 %507 }
 0x116   : > { %v1104_v1 = vpack.i.b16 %v1103_v15, %v1103_v15  ;;  %v2643_v15 = vld [vmem:[%s5178_s3] sm:$0x22] }
 0x117   : > { %1061 = vrot.lane.b32.xlu0 %v1056_v23, %s3742_s20  ;;  %v2592_v23 = vld [vmem:[%s5178_s3 + $0x8] sm:$0x11] }
 0x118   : > { %1769 = vrot.lane.b32.xlu1 %v1762_v35, %s3751_s29  ;;  %v3517_v48 = vcombine.low %v2592_v23, %v2592_v23 }
 0x119   : > { %v4254_v51 = vpop.permute.xlu0 %511 }
 0x11a   : > { %v2599_v62 = vpack.i.b16 %v3517_v48, %v3517_v48 }
 0x11b   : > { %2510 = vrot.lane.b32.xlu0 %v2500_v46, %s3754_s17  ;;  %v2560_v46 = vrot.slane %v2555_v54, %v3903_v32 }
 0x11c   : > { %1059 = vrot.lane.b32.xlu1 %v1048_v8, %s3742_s20  ;;  %v1109_v8 = vrot.slane %v1104_v1, %v3814_v12  ;;  %v2604_v32 = vrot.slane %v2599_v62, %v3922_v47  ;;  %s3761_s20 = smov 96  }
 0x11d   : > { %v4265_v6 = vpop.permute.xlu0 %581 }
 0x11e   : > { %v4261_v59 = vpop.permute.xlu1 %636 }
 0x11f   : > { %1822 = vrot.lane.b32.xlu0 %v1815_v5, %s3750_s25 }
 0x120   : > { %1767 = vrot.lane.b32.xlu1 %v1761_v3, %s3751_s29  ;;  %v1871_v3 = vmul.bf16 %v4166_v13, %v3833_v24  ;;  %v1870_v13 = vmul.bf16 %v1865_v10, %v3846_v34  ;;  %s3757_s29 = smov 108  }
 0x121   : > { %v4273_v7 = vpop.permute.xlu0 %585 }
 0x122   : > { %v4271_v18 = vpop.permute.xlu1 %640 }
 0x123   : > { %1112 = vrot.lane.b32.xlu0 %v1101_v20, %s3741_s18  ;;  %v1167_v20 = vshrl.u32 %v3465_v63, 16 }
 0x124   : > { %2512 = vrot.lane.b32.xlu1 %v2507_v39, %s3754_s17  ;;  %v3518_v39 = vcombine.high %v2592_v23, %v2592_v23  ;;  %v3520_v23 = vcombine.high %v2643_v15, %v2643_v15 }
 0x125   : > { %v4285_v35 = vpop.permute.xlu0 %380 }
 0x126   : > { %v4283_v33 = vpop.permute.xlu1 %710  ;;  %v386_v43 = vsel %vm384_vm15, %v4285_v35, %v4222_v14  ;;  %v385_v14 = vsel %vm384_vm15, %v4206_v56, %v4285_v35  ;;  %v2714_v56 = vld [vmem:[%s5178_s3] sm:$0x44] }
 0x127   : > { %1820 = vrot.lane.b32.xlu0 %v1814_v31, %s3750_s25  ;;  %v1869_v31 = vmul.bf16 0, %v4171_v19 }
 0x128   : > { %1824 = vrot.lane.b32.xlu1 %v1816_v30, %s3750_s25  ;;  %s3755_s25 = smov 19   ;;  %v3466_v30 = vcombine.high %v1160_v61, %v1160_v61 }
 0x129   : > { %v4294_v50 = vpop.permute.xlu0 %454 }
 0x12a   : > { %v254_v9 = vpop.permute.xlu1 %253  ;;  %v1175_v61 = vshrl.u32 %v3466_v30, 16 }
 0x12b   : > { %v259_v52 = vsel %vm5206_vm3, %v254_v9, %v4204_v55  ;;  %v258_v57 = vsel %vm5206_vm3, %v4195_v41, %v254_v9  ;;  %2565 = vrot.lane.b32.xlu0 %v2560_v46, %s3755_s25  ;;  %v278_v41 = vsel %vm5199_vm12, %v3968_v29, %v3958_v25  ;;  %v277_v25 = vsel %vm5199_vm12, %v3953_v21, %v3968_v29 }
 0x12c   : > { %1114 = vrot.lane.b32.xlu1 %v1109_v8, %s3741_s18  ;;  %3187 = vmatprep.subr.bf16.mxu1 %v259_v52  ;;  %v1168_v21 = vpack.i.b16 %v1167_v20, %v1167_v20  ;;  %v2606_v29 = vpack.i.b16 %v3518_v39, %v3518_v39  ;;  %v1923_v46 = vmul.bf16 %v1918_v22, %v3846_v34  ;;  %v2658_v9 = vshrl.u32 %v3520_v23, 16  ;;  %s3758_s18 = smov 109  }
 0x12d   : > { %3188 = vmatpush1.bf16.msra.mxu1 %v258_v57  ;;  %v4305_v55 = vpop.permute.xlu0 %638  ;;  %v3519_v52 = vcombine.low %v2643_v15, %v2643_v15  ;;  %v1213_v57 = vld [vmem:[%s5178_s3] sm:$0x22]  ;;  %vm403_vm12 = vcmask 392192   ;;  %v460_v39 = vsel %vm458_vm0, %v4294_v50, %v4245_v40  ;;  %v459_v40 = vsel %vm458_vm0, %v4238_v26, %v4294_v50 }
 0x12e   : > { %v327_v5 = vpop.permute.xlu1 %326  ;;  %3189 = vmatprep.subr.bf16.mxu1 %v278_v41  ;;  %v2611_v19 = vrot.slane %v2606_v29, %v3922_v47  ;;  %v405_v62 = vsel %vm403_vm12, %v3974_v36, %v3987_v44  ;;  %v3468_v41 = vcombine.high %v1213_v57, %v1213_v57  ;;  %v404_v35 = vsel %vm403_vm12, %v3982_v42, %v3974_v36 }
 0x12f   : > { %1879 = vrot.lane.b32.xlu0 %v1871_v3, %s3749_s22  ;;  %v331_v54 = vsel %vm5210_vm1, %v327_v5, %v4232_v27  ;;  %v330_v27 = vsel %vm5210_vm1, %v4212_v0, %v327_v5  ;;  %v1173_v0 = vrot.slane %v1168_v21, %v3825_v17  ;;  %v2659_v3 = vpack.i.b16 %v2658_v9, %v2658_v9 }
 0x130   : > { %2563 = vrot.lane.b32.xlu1 %v2552_v60, %s3755_s25  ;;  %v1176_v5 = vpack.i.b16 %v1175_v61, %v1175_v61  ;;  %v2650_v10 = vshrl.u32 %v3519_v52, 16  ;;  %v1924_v44 = vmul.bf16 %v4181_v28, %v3833_v24  ;;  %v3521_v36 = vcombine.low %v2714_v56, %v2714_v56 }
 0x131   : > { %3190 = vmatpush1.bf16.msra.mxu1 %v277_v25  ;;  %v4323_v16 = vpop.permute.xlu0 %1968  ;;  %v2664_v25 = vrot.slane %v2659_v3, %v3814_v12  ;;  %vm532_vm12 = vcmask 261120   ;;  %vm716_vm3 = vcmask 121856   ;;  %vm1826_vm1 = vcmask 31744  }
 0x132   : > { %v4327_v1 = vpop.permute.xlu1 %509  ;;  %3191 = vmatprep.subr.bf16.mxu1 %v331_v54  ;;  %v1181_v42 = vrot.slane %v1176_v5, %v3825_v17  ;;  %v2651_v28 = vpack.i.b16 %v2650_v10, %v2650_v10  ;;  %v2721_v29 = vshrl.u32 %v3521_v36, 16  ;;  %v644_v10 = vsel %vm642_vm9, %v4305_v55, %v4271_v18 }
 0x133   : > { %2614 = vrot.lane.b32.xlu0 %v2604_v32, %s3756_s23  ;;  %v1922_v32 = vmul.bf16 0, %v4189_v37  ;;  %v3467_v37 = vcombine.low %v1213_v57, %v1213_v57  ;;  %v515_v22 = vsel %vm513_vm2, %v4327_v1, %v4254_v51  ;;  %v514_v30 = vsel %vm513_vm2, %v4243_v38, %v4327_v1  ;;  %v1284_v51 = vld [vmem:[%s5178_s3] sm:$0x44] }
 0x134   : > { %1877 = vrot.lane.b32.xlu1 %v1870_v13, %s3749_s22  ;;  %v1228_v13 = vshrl.u32 %v3468_v41, 16  ;;  %v2656_v26 = vrot.slane %v2651_v28, %v3814_v12  ;;  %v2722_v1 = vpack.i.b16 %v2721_v29, %v2721_v29  ;;  %v3469_v61 = vcombine.low %v1284_v51, %v1284_v51 }
 0x135   : > { %3192 = vmatpush1.bf16.msra.mxu1 %v330_v27  ;;  %v4338_v8 = vpop.permute.xlu0 %712  ;;  %v1220_v50 = vshrl.u32 %v3467_v37, 16  ;;  %v1976_v18 = vmul.bf16 0, %v4323_v16 }
 0x136   : > { %v4343_v48 = vpop.permute.xlu1 %583  ;;  %3193 = vmatprep.subr.bf16.mxu1 %v386_v43  ;;  %v1229_v21 = vpack.i.b16 %v1228_v13, %v1228_v13  ;;  %v1291_v3 = vshrl.u32 %v3469_v61, 16 }
 0x137   : > { %1930 = vrot.lane.b32.xlu0 %v1923_v46, %s3748_s9  ;;  %v534_v46 = vsel %vm532_vm12, %v3998_v53, %v3992_v49  ;;  %v533_v49 = vsel %vm532_vm12, %v3989_v45, %v3998_v53  ;;  %v2727_v45 = vrot.slane %v2722_v1, %v3825_v17  ;;  %v588_v41 = vsel %vm587_vm6, %v4265_v6, %v4343_v48 }
 0x138   : > { %1875 = vrot.lane.b32.xlu1 %v1869_v31, %s3749_s22  ;;  %v1234_v38 = vrot.slane %v1229_v21, %v3814_v12  ;;  %vm5207_vm12 = vcmask 130048   ;;  %s3760_s22 = smov 112  }
 0x139   : > { %3194 = vmatpush1.bf16.msra.mxu1 %v385_v14  ;;  %v4355_v60 = vpop.permute.xlu0 %2025  ;;  %v589_v14 = vsel %vm587_vm6, %v4343_v48, %v4273_v7  ;;  %v2767_v7 = vld [vmem:[%s5178_s3] sm:$0x22]  ;;  %v1292_v48 = vpack.i.b16 %v1291_v3, %v1291_v3  ;;  %v663_v36 = vsel %vm5207_vm12, %v4004_v58, %v4028_v11 }
 0x13a   : > { %v1971_v63 = vpop.permute.xlu1 %1970  ;;  %3195 = vmatprep.subr.bf16.mxu1 %v405_v62  ;;  %v3523_v37 = vcombine.low %v2767_v7, %v2767_v7 }
 0x13b   : > { %1184 = vrot.lane.b32.xlu0 %v1173_v0, %s3740_s14  ;;  %v1978_v27 = vmul.bf16 %v1971_v63, %v3833_v24  ;;  %v1972_v9 = vsel %vm754_vm5, %v4323_v16, %v1971_v63  ;;  %v1221_v0 = vpack.i.b16 %v1220_v50, %v1220_v50 }
 0x13c   : > { %2616 = vrot.lane.b32.xlu1 %v2611_v19, %s3756_s23  ;;  %v3522_v19 = vcombine.high %v2714_v56, %v2714_v56  ;;  %v1977_v52 = vmul.bf16 %v1972_v9, %v3846_v34  ;;  %v2774_v50 = vshrl.u32 %v3523_v37, 16 }
 0x13d   : > { %3196 = vmatpush1.bf16.msra.mxu1 %v404_v35  ;;  %v4369_v20 = vpop.permute.xlu0 %2076  ;;  %v1226_v53 = vrot.slane %v1221_v0, %v3814_v12 }
 0x13e   : > { %v4374_v15 = vpop.permute.xlu1 %714  ;;  %3197 = vmatprep.subr.bf16.mxu1 %v460_v39  ;;  %v2729_v63 = vshrl.u32 %v3522_v19, 16  ;;  %v643_v39 = vsel %vm642_vm9, %v4261_v59, %v4305_v55  ;;  %v1297_v55 = vrot.slane %v1292_v48, %v3825_v17 }
 0x13f   : > { %1928 = vrot.lane.b32.xlu0 %v1922_v32, %s3748_s9  ;;  %v3524_v32 = vcombine.high %v2767_v7, %v2767_v7 }
 0x140   : > { %1932 = vrot.lane.b32.xlu1 %v1924_v44, %s3748_s9  ;;  %v3470_v44 = vcombine.high %v1284_v51, %v1284_v51  ;;  %v2730_v6 = vpack.i.b16 %v2729_v63, %v2729_v63  ;;  %s5228_s9 = smov 64  }
 0x141   : > { %3198 = vmatpush1.bf16.msra.mxu1 %v459_v40  ;;  %v4383_v54 = vpop.permute.xlu0 %750  ;;  %v2782_v16 = vshrl.u32 %v3524_v32, 16  ;;  %v662_v40 = vsel %vm5207_vm12, %v4016_v4, %v4004_v58  ;;  %v717_v58 = vsel %vm716_vm3, %v4283_v33, %v4338_v8  ;;  %v1337_v4 = vld [vmem:[%s5178_s3] sm:$0x11]  ;;  %vm1934_vm12 = vcmask 15360  }
 0x142   : > { %v4388_v23 = vpop.permute.xlu1 %2027  ;;  %3199 = vmatprep.subr.bf16.mxu1 %v515_v22  ;;  %v1299_v28 = vshrl.u32 %v3470_v44, 16  ;;  %v2735_v59 = vrot.slane %v2730_v6, %v3825_v17  ;;  %v718_v22 = vsel %vm716_vm3, %v4338_v8, %v4374_v15  ;;  %v2033_v15 = vmul.bf16 %v4355_v60, %v3846_v34 }
 0x143   : > { %2669 = vrot.lane.b32.xlu0 %v2664_v25, %s3731_s26  ;;  %v2029_v35 = vsel %vm771_vm8, %v4355_v60, %v4388_v23  ;;  %v2775_v8 = vpack.i.b16 %v2774_v50, %v2774_v50  ;;  %v3472_v9 = vcombine.high %v1337_v4, %v1337_v4  ;;  %v3471_v0 = vcombine.low %v1337_v4, %v1337_v4 }
 0x144   : > { %1186 = vrot.lane.b32.xlu1 %v1181_v42, %s3740_s14  ;;  %v2034_v25 = vmul.bf16 %v2029_v35, %v3833_v24  ;;  %v1300_v29 = vpack.i.b16 %v1299_v28, %v1299_v28  ;;  %v2824_v35 = vld [vmem:[%s5178_s3] sm:$0x44]  ;;  %v2084_v28 = vmul.bf16 %v4369_v20, %v3846_v34 }
 0x145   : > { %3200 = vmatpush1.bf16.msra.mxu1 %v514_v30  ;;  %v4400_v31 = vpop.permute.xlu0 %2129  ;;  %v2035_v30 = vmul.bf16 0, %v4388_v23  ;;  %v2780_v23 = vrot.slane %v2775_v8, %v3814_v12  ;;  %v1351_v1 = vpack.i.b16 %v3472_v9, %v3472_v9 }
 0x146   : > { %v4405_v43 = vpop.permute.xlu1 %2078  ;;  %3201 = vmatprep.subr.bf16.mxu1 %v534_v46  ;;  %v1305_v46 = vrot.slane %v1300_v29, %v3825_v17 }
 0x147   : > { %1986 = vrot.lane.b32.xlu0 %v1978_v27, %s3747_s19  ;;  %v2086_v19 = vmul.bf16 0, %v4405_v43 }
 0x148   : > { %2667 = vrot.lane.b32.xlu1 %v2656_v26, %s3731_s26  ;;  %v2783_v26 = vpack.i.b16 %v2782_v16, %v2782_v16 }
 0x149   : > { %3202 = vmatpush1.bf16.msra.mxu1 %v533_v49  ;;  %v4416_v57 = vpop.permute.xlu0 %2180 }
 0x14a   : > { %v4421_v62 = vpop.permute.xlu1 %752  ;;  %3203 = vmatprep.subr.bf16.mxu1 %v589_v14  ;;  %v2788_v33 = vrot.slane %v2783_v26, %v3814_v12  ;;  %v1356_v14 = vrot.slane %v1351_v1, %v3922_v47 }
 0x14b   : > { %1239 = vrot.lane.b32.xlu0 %v1234_v38, %s3723_s30  ;;  %v761_v29 = vmul.bf16 %v4421_v62, %v3833_v24 }
 0x14c   : > { %1984 = vrot.lane.b32.xlu1 %v1977_v52, %s3747_s19  ;;  %v2080_v52 = vsel %vm1934_vm12, %v4369_v20, %v4405_v43  ;;  %v755_v43 = vsel %vm754_vm5, %v4383_v54, %v4421_v62  ;;  %v1445_v62 = vld [vmem:[%s5178_s3] sm:$0x22] }
 0x14d   : > { %3204 = vmatpush1.bf16.msra.mxu1 %v588_v41  ;;  %v4433_v5 = vpop.permute.xlu0 %809  ;;  %v2085_v63 = vmul.bf16 %v2080_v52, %v3833_v24  ;;  %v760_v44 = vmul.bf16 %v755_v43, %v3846_v34 }
 0x14e   : > { %v4438_v56 = vpop.permute.xlu1 %2131  ;;  %3205 = vmatprep.subr.bf16.mxu1 %v644_v10 }
 0x14f   : > { %2738 = vrot.lane.b32.xlu0 %v2727_v45, %s3733_s10  ;;  %v1344_v45 = vpack.i.b16 %v3471_v0, %v3471_v0  ;;  %v2139_v20 = vmul.bf16 0, %v4438_v56  ;;  %v2133_v50 = vsel %vm1881_vm7, %v4400_v31, %v4438_v56  ;;  %v3475_v0 = vcombine.low %v1445_v62, %v1445_v62 }
 0x150   : > { %1237 = vrot.lane.b32.xlu1 %v1226_v53, %s3723_s30  ;;  %v1390_v53 = vld [vmem:[%s5178_s3] sm:$0x11] }
 0x151   : > { %3206 = vmatpush1.bf16.msra.mxu1 %v643_v39  ;;  %v4450_v13 = vpop.permute.xlu0 %2231  ;;  %v3474_v7 = vcombine.high %v1390_v53, %v1390_v53  ;;  %v1349_v10 = vrot.slane %v1344_v45, %v3922_v47  ;;  %v1452_v45 = vpack.i.b16 %v3475_v0, %v3475_v0 }
 0x152   : > { %v4455_v42 = vpop.permute.xlu1 %2182  ;;  %3207 = vmatprep.subr.bf16.mxu1 %v663_v36  ;;  %v3473_v36 = vcombine.low %v1390_v53, %v1390_v53  ;;  %v2137_v53 = vmul.bf16 %v4400_v31, %v3846_v34 }
 0x153   : > { %2041 = vrot.lane.b32.xlu0 %v2034_v25, %s3746_s12  ;;  %v3525_v25 = vcombine.low %v2824_v35, %v2824_v35  ;;  %v2184_v52 = vsel %vm1826_vm1, %v4416_v57, %v4455_v42 }
 0x154   : > { %1982 = vrot.lane.b32.xlu1 %v1976_v18, %s3747_s19  ;;  %v1405_v18 = vshrl.u32 %v3474_v7, 16 }
 0x155   : > { %3208 = vmatpush1.bf16.msra.mxu1 %v662_v40  ;;  %v4464_v11 = vpop.permute.xlu0 %862  ;;  %v2831_v40 = vshrl.u32 %v3525_v25, 16 }
 0x156   : > { %v4469_v21 = vpop.permute.xlu1 %811  ;;  %3209 = vmatprep.subr.bf16.mxu1 %v718_v22  ;;  %v1406_v37 = vpack.i.b16 %v1405_v18, %v1405_v18  ;;  %v1397_v22 = vshrl.u32 %v3473_v36, 16 }
 0x157   : > { %1308 = vrot.lane.b32.xlu0 %v1297_v55, %s3724_s7  ;;  %v2832_v4 = vpack.i.b16 %v2831_v40, %v2831_v40 }
 0x158   : > { %2740 = vrot.lane.b32.xlu1 %v2735_v59, %s3733_s10  ;;  %v759_v59 = vmul.bf16 0, %v4383_v54 }
 0x159   : > { %3210 = vmatpush1.bf16.msra.mxu1 %v717_v58  ;;  %v4482_v51 = vpop.permute.xlu0 %2284  ;;  %v1411_v58 = vrot.slane %v1406_v37, %v3922_v47  ;;  %v2837_v9 = vrot.slane %v2832_v4, %v3825_v17  ;;  %v2190_v37 = vmul.bf16 0, %v4455_v42  ;;  %v813_v42 = vsel %vm771_vm8, %v4433_v5, %v4469_v21 }
 0x15a   : > { %v4484_v27 = vpop.permute.xlu1 %2233 }
 0x15b   : > { %2039 = vrot.lane.b32.xlu0 %v2033_v15, %s3746_s12  ;;  %v1398_v15 = vpack.i.b16 %v1397_v22, %v1397_v22 }
 0x15c   : > { %2043 = vrot.lane.b32.xlu1 %v2035_v30, %s3746_s12  ;;  %v3526_v30 = vcombine.high %v2824_v35, %v2824_v35  ;;  %v3476_v35 = vcombine.high %v1445_v62, %v1445_v62 }
 0x15d   : > { %v4490_v38 = vpop.permute.xlu0 %2335 }
 0x15e   : > { %v4492_v60 = vpop.permute.xlu1 %864  ;;  %v2839_v1 = vshrl.u32 %v3526_v30, 16  ;;  %v1459_v18 = vpack.i.b16 %v3476_v35, %v3476_v35  ;;  %v2239_v35 = vmul.bf16 %v4450_v13, %v3846_v34 }
 0x15f   : > { %2793 = vrot.lane.b32.xlu0 %v2788_v33, %s3746_s12 }
 0x160   : > { %1310 = vrot.lane.b32.xlu1 %v1305_v46, %s3724_s7  ;;  %v2138_v46 = vmul.bf16 %v2133_v50, %v3833_v24 }
 0x161   : > { %v1610_v61 = vpop.permute.xlu0 %1609 }
 0x162   : > { %v4498_v49 = vpop.permute.xlu1 %2286 }
 0x163   : > { %2094 = vrot.lane.b32.xlu0 %v2086_v19, %s3739_s13 }
 0x164   : > { %2791 = vrot.lane.b32.xlu1 %v2780_v23, %s3746_s12  ;;  %v1403_v23 = vrot.slane %v1398_v15, %v3922_v47  ;;  %v2877_v47 = vld [vmem:[%s5178_s3] sm:$0x22] }
 0x165   : > { %v4510_v3 = vpop.permute.xlu0 %934 }
 0x166   : > { %v4512_v41 = vpop.permute.xlu1 %2337 }
 0x167   : > { %1361 = vrot.lane.b32.xlu0 %v1356_v14, %s3757_s29  ;;  %v2840_v14 = vpack.i.b16 %v2839_v1, %v2839_v1 }
 0x168   : > { %2092 = vrot.lane.b32.xlu1 %v2085_v63, %s3739_s13  ;;  %v2189_v63 = vmul.bf16 %v2184_v52, %v3833_v24 }
 0x169   : > { %v1608_v6 = vpop.permute.xlu0 %1607 }
 0x16a   : > { %v1612_v48 = vpop.permute.xlu1 %1611  ;;  %v1613_v39 = vsel %vm716_vm3, %v1608_v6, %v1610_v61  ;;  %v1457_v6 = vrot.slane %v1452_v45, %v3814_v12 }
 0x16b   : > { %v1614_v32 = vsel %vm716_vm3, %v1610_v61, %v1612_v48  ;;  %767 = vrot.lane.b32.xlu0 %v760_v44, %s3747_s19  ;;  %v2845_v44 = vrot.slane %v2840_v14, %v3825_v17  ;;  %v3527_v48 = vcombine.low %v2877_v47, %v2877_v47 }
 0x16c   : > { %1359 = vrot.lane.b32.xlu1 %v1349_v10, %s3757_s29  ;;  %3273 = vmatprep.subr.bf16.mxu0 %v1614_v32 }
 0x16d   : > { %3274 = vmatpush1.bf16.msra.mxu0 %v1613_v39  ;;  %v4531_v55 = vpop.permute.xlu0 %2390  ;;  %v2884_v25 = vshrl.u32 %v3527_v48, 16 }
 0x16e   : > { %v4533_v16 = vpop.permute.xlu1 %936 }
 0x16f   : > { %765 = vrot.lane.b32.xlu0 %v759_v59, %s3747_s19  ;;  %v2188_v59 = vmul.bf16 %v4416_v57, %v3846_v34 }
 0x170   : > { %2090 = vrot.lane.b32.xlu1 %v2084_v28, %s3739_s13  ;;  %v1498_v28 = vld [vmem:[%s5178_s3] sm:$0x22]  ;;  %s5214_s13 = smov 115  }
 0x171   : > { %v1664_v26 = vpop.permute.xlu0 %1663  ;;  %v3477_v50 = vcombine.low %v1498_v28, %v1498_v28  ;;  %v3478_v0 = vcombine.high %v1498_v28, %v1498_v28  ;;  %v866_v28 = vsel %vm716_vm3, %v4464_v11, %v4492_v60 }
 0x172   : > { %v4540_v54 = vpop.permute.xlu1 %2388 }
 0x173   : > { %2147 = vrot.lane.b32.xlu0 %v2139_v20, %s3738_s11  ;;  %v2885_v20 = vpack.i.b16 %v2884_v25, %v2884_v25  ;;  %v2948_v25 = vld [vmem:[%s5178_s3] sm:$0x44] }
 0x174   : > { %769 = vrot.lane.b32.xlu1 %v761_v29, %s3747_s19  ;;  %v1464_v29 = vrot.slane %v1459_v18, %v3814_v12 }
 0x175   : > { %v4552_v33 = vpop.permute.xlu0 %989  ;;  %v2890_v30 = vrot.slane %v2885_v20, %v3814_v12 }
 0x176   : > { %v1662_v8 = vpop.permute.xlu1 %1661 }
 0x177   : > { %v1667_v56 = vsel %vm1665_vm10, %v1662_v8, %v1664_v26  ;;  %1416 = vrot.lane.b32.xlu0 %v1411_v58, %s3758_s18  ;;  %v3528_v26 = vcombine.high %v2877_v47, %v2877_v47  ;;  %v819_v58 = vmul.bf16 0, %v4469_v21  ;;  %v2235_v21 = vsel %vm1773_vm11, %v4450_v13, %v4484_v27 }
 0x178   : > { %2145 = vrot.lane.b32.xlu1 %v2138_v46, %s3738_s11  ;;  %3275 = vmatprep.subr.bf16.mxu0 %v1667_v56  ;;  %v1505_v46 = vshrl.u32 %v3477_v50, 16  ;;  %v2240_v52 = vmul.bf16 %v2235_v21, %v3833_v24  ;;  %v872_v13 = vmul.bf16 0, %v4492_v60  ;;  %v4666_v50 = vld [vmem:[%s5176_s1 + $0x20] sm:$0xff] }
 0x179   : > { %v1717_v19 = vpop.permute.xlu0 %1716  ;;  %v2892_v62 = vshrl.u32 %v3528_v26, 16  ;;  %v4661_v26 = vld [vmem:[%s5176_s1] sm:$0xff] }
 0x17a   : > { %v4559_v61 = vpop.permute.xlu1 %987  ;;  %v1506_v1 = vpack.i.b16 %v1505_v46, %v1505_v46  ;;  %v3531_v46 = vcombine.low %v4661_v26, %v4666_v50 }
 0x17b   : > { %2848 = vrot.lane.b32.xlu0 %v2837_v9, %s3747_s19 }
 0x17c   : > { %1414 = vrot.lane.b32.xlu1 %v1403_v23, %s3758_s18  ;;  %v2893_v23 = vpack.i.b16 %v2892_v62, %v2892_v62 }
 0x17d   : > { %v1715_v43 = vpop.permute.xlu0 %1714 }
 0x17e   : > { %v1660_v7 = vpop.permute.xlu1 %1659  ;;  %v1721_v36 = vsel %vm1720_vm4, %v1715_v43, %v1717_v19  ;;  %v1513_v43 = vshrl.u32 %v3478_v0, 16 }
 0x17f   : > { %v1666_v10 = vsel %vm1665_vm10, %v1660_v7, %v1662_v8  ;;  %2196 = vrot.lane.b32.xlu0 %v2189_v63, %s3737_s6  ;;  %v818_v8 = vmul.bf16 %v813_v42, %v3833_v24  ;;  %v1511_v63 = vrot.slane %v1506_v1, %v3814_v12 }
 0x180   : > { %2143 = vrot.lane.b32.xlu1 %v2137_v53, %s3738_s11  ;;  %3276 = vmatpush1.bf16.msra.mxu0 %v1666_v10  ;;  %v2898_v53 = vrot.slane %v2893_v23, %v3814_v12  ;;  %s5217_s11 = smov 95  }
 0x181   : > { %v4577_v32 = vpop.permute.xlu0 %2461 }
 0x182   : > { %v1719_v31 = vpop.permute.xlu1 %1718 }
 0x183   : > { %v1722_v39 = vsel %vm1720_vm4, %v1717_v19, %v1719_v31  ;;  %1467 = vrot.lane.b32.xlu0 %v1457_v6, %s3759_s5  ;;  %v817_v19 = vmul.bf16 %v4433_v5, %v3846_v34  ;;  %v1514_v5 = vpack.i.b16 %v1513_v43, %v1513_v43 }
 0x184   : > { %2850 = vrot.lane.b32.xlu1 %v2845_v44, %s3747_s19  ;;  %3277 = vmatprep.subr.bf16.mxu0 %v1722_v39  ;;  %v2241_v44 = vmul.bf16 0, %v4484_v27 }
 0x185   : > { %3278 = vmatpush1.bf16.msra.mxu0 %v1721_v36  ;;  %v1772_v40 = vpop.permute.xlu0 %1771  ;;  %v1519_v18 = vrot.slane %v1514_v5, %v3814_v12  ;;  %v2288_v12 = vsel %vm1720_vm4, %v4482_v51, %v4498_v49  ;;  %vm5219_vm4 = vcmask 1014784  }
 0x186   : > { %v4589_v22 = vpop.permute.xlu1 %2459 }
 0x187   : > { %2194 = vrot.lane.b32.xlu0 %v2188_v59, %s3737_s6  ;;  %v3529_v59 = vcombine.low %v2948_v25, %v2948_v25 }
 0x188   : > { %2198 = vrot.lane.b32.xlu1 %v2190_v37, %s3737_s6  ;;  %s5213_s6 = smov 116   ;;  %v871_v37 = vmul.bf16 %v866_v28, %v3833_v24 }
 0x189   : > { %v4595_v4 = vpop.permute.xlu0 %1061  ;;  %v2955_v60 = vshrl.u32 %v3529_v59, 16 }
 0x18a   : > { %v1770_v57 = vpop.permute.xlu1 %1769 }
 0x18b   : > { %v1775_v15 = vsel %vm1773_vm11, %v1770_v57, %v1772_v40  ;;  %827 = vrot.lane.b32.xlu0 %v819_v58, %s3746_s12  ;;  %v2293_v40 = vmul.bf16 %v2288_v12, %v3833_v24  ;;  %v870_v58 = vmul.bf16 %v4464_v11, %v3846_v34  ;;  %v3530_v11 = vcombine.high %v2948_v25, %v2948_v25 }
 0x18c   : > { %1469 = vrot.lane.b32.xlu1 %v1464_v29, %s3759_s5  ;;  %3279 = vmatprep.subr.bf16.mxu0 %v1775_v15 }
 0x18d   : > { %v4605_v56 = vpop.permute.xlu0 %2510 }
 0x18e   : > { %v4607_v9 = vpop.permute.xlu1 %1059 }
 0x18f   : > { %2901 = vrot.lane.b32.xlu0 %v2890_v30, %s3745_s24  ;;  %v3532_v30 = vcombine.high %v4661_v26, %v4666_v50 }
 0x190   : > { %825 = vrot.lane.b32.xlu1 %v818_v8, %s3746_s12  ;;  %v2956_v8 = vpack.i.b16 %v2955_v60, %v2955_v60  ;;  %v942_v60 = vmul.bf16 %v4510_v3, %v3846_v34 }
 0x191   : > { %v1823_v14 = vpop.permute.xlu0 %1822  ;;  %3219 = vmatprep.mubr.bf16.mxu1 %v3532_v30  ;;  %v2398_v30 = vmul.bf16 0, %v4531_v55 }
 0x192   : > { %v1768_v45 = vpop.permute.xlu1 %1767  ;;  %v2961_v0 = vrot.slane %v2956_v8, %v3825_v17 }
 0x193   : > { %v1774_v47 = vsel %vm1773_vm11, %v1768_v45, %v1770_v57  ;;  %2247 = vrot.lane.b32.xlu0 %v2240_v52, %s5213_s6  ;;  %v2292_v57 = vmul.bf16 %v4482_v51, %v3846_v34  ;;  %v2294_v51 = vmul.bf16 0, %v4498_v49  ;;  %v2339_v49 = vsel %vm1665_vm10, %v4490_v38, %v4512_v41 }
 0x194   : > { %823 = vrot.lane.b32.xlu1 %v817_v19, %s3746_s12  ;;  %3280 = vmatpush1.bf16.msra.mxu0 %v1774_v47  ;;  %v2963_v19 = vshrl.u32 %v3530_v11, 16  ;;  %v2344_v47 = vmul.bf16 %v2339_v49, %v3833_v24  ;;  %vm5223_vm10 = vcmask 515072   ;;  %vm5224_vm11 = vcmask 949248  }
 0x195   : > { %v4622_v7 = vpop.permute.xlu0 %1112 }
 0x196   : > { %v4624_v10 = vpop.permute.xlu1 %2512  ;;  %v2964_v45 = vpack.i.b16 %v2963_v19, %v2963_v19 }
 0x197   : > { %1522 = vrot.lane.b32.xlu0 %v1511_v63, %s3731_s26 }
 0x198   : > { %2903 = vrot.lane.b32.xlu1 %v2898_v53, %s3745_s24 }
 0x199   : > { %v1821_v6 = vpop.permute.xlu0 %1820 }
 0x19a   : > { %v1825_v48 = vpop.permute.xlu1 %1824  ;;  %v1827_v39 = vsel %vm1826_vm1, %v1821_v6, %v1823_v14 }
 0x19b   : > { %v1828_v31 = vsel %vm1826_vm1, %v1823_v14, %v1825_v48  ;;  %2245 = vrot.lane.b32.xlu0 %v2239_v35, %s5213_s6  ;;  %v2969_v35 = vrot.slane %v2964_v45, %v3825_v17  ;;  %v4719_v17 = vld [vmem:[%s5176_s1 + $0x10] sm:$0xff]  ;;  %vm1488_vm1 = vcmask 146432  }
 0x19c   : > { %2249 = vrot.lane.b32.xlu1 %v2241_v44, %s5213_s6  ;;  %3281 = vmatprep.subr.bf16.mxu0 %v1828_v31  ;;  %s5215_s6 = smov 114   ;;  %v2343_v44 = vmul.bf16 %v4490_v38, %v3846_v34  ;;  %v2345_v31 = vmul.bf16 0, %v4512_v41  ;;  %v4724_v38 = vld [vmem:[%s5176_s1 + $0x30] sm:$0xff]  ;;  %v2392_v41 = vsel %vm716_vm3, %v4540_v54, %v4531_v55 }
 0x19d   : > { %3282 = vmatpush1.bf16.msra.mxu0 %v1827_v39  ;;  %v4640_v27 = vpop.permute.xlu0 %2565  ;;  %v944_v39 = vmul.bf16 0, %v4533_v16  ;;  %v3535_v28 = vcombine.low %v4719_v17, %v4724_v38  ;;  %v3536_v12 = vcombine.high %v4719_v17, %v4724_v38 }
 0x19e   : > { %v4642_v36 = vpop.permute.xlu1 %1114 }
 0x19f   : > { %880 = vrot.lane.b32.xlu0 %v872_v13, %s3733_s10  ;;  %v938_v13 = vsel %vm642_vm9, %v4510_v3, %v4533_v16  ;;  %3305 = vmatprep.mubr.bf16.mxu0 %v3536_v12  ;;  %v991_v3 = vsel %vm587_vm6, %v4559_v61, %v4552_v33  ;;  %v1069_v12 = vmul.bf16 0, %v4595_v4  ;;  %vm5220_vm6 = vmmov %vm5219_vm4 }
 0x1a0   : > { %1524 = vrot.lane.b32.xlu1 %v1519_v18, %s3731_s26  ;;  %v943_v59 = vmul.bf16 %v938_v13, %v3833_v24 }
 0x1a1   : > { %v1880_v29 = vpop.permute.xlu0 %1879 }
 0x1a2   : > { %v4654_v20 = vpop.permute.xlu1 %2563 }
 0x1a3   : > { %2300 = vrot.lane.b32.xlu0 %v2293_v40, %s5214_s13 }
 0x1a4   : > { %878 = vrot.lane.b32.xlu1 %v871_v37, %s3733_s10  ;;  %v2397_v37 = vmul.bf16 %v2392_v41, %v3833_v24 }
 0x1a5   : > { %v4672_v42 = vpop.permute.xlu0 %2614 }
 0x1a6   : > { %v1878_v15 = vpop.permute.xlu1 %1877 }
 0x1a7   : > { %v1883_v62 = vsel %vm1881_vm7, %v1878_v15, %v1880_v29  ;;  %2298 = vrot.lane.b32.xlu0 %v2292_v57, %s5214_s13 }
 0x1a8   : > { %876 = vrot.lane.b32.xlu1 %v870_v58, %s3733_s10  ;;  %3283 = vmatprep.subr.bf16.mxu0 %v1883_v62  ;;  %v2396_v58 = vmul.bf16 %v4540_v54, %v3846_v34  ;;  %v997_v62 = vmul.bf16 0, %v4552_v33  ;;  %v995_v33 = vmul.bf16 %v4559_v61, %v3846_v34  ;;  %v2469_v61 = vmul.bf16 0, %v4577_v32 }
 0x1a9   : > { %v1931_v21 = vpop.permute.xlu0 %1930 }
 0x1aa   : > { %v1876_v23 = vpop.permute.xlu1 %1875 }
 0x1ab   : > { %v1882_v1 = vsel %vm1881_vm7, %v1876_v23, %v1878_v15  ;;  %3611 = vrot.lane.b32.xlu0 %v3721_v2, %s3760_s22  ;;  %vm5222_vm7 = vcmask 908288  }
 0x1ac   : > { %2302 = vrot.lane.b32.xlu1 %v2294_v51, %s5214_s13  ;;  %3284 = vmatpush1.bf16.msra.mxu0 %v1882_v1  ;;  %v996_v51 = vmul.bf16 %v991_v3, %v3833_v24 }
 0x1ad   : > { %v4687_v52 = vpop.permute.xlu0 %1184 }
 0x1ae   : > { %v4689_v14 = vpop.permute.xlu1 %2616 }
 0x1af   : > { %2972 = vrot.lane.b32.xlu0 %v2961_v0, %s3743_s21 }
 0x1b0   : > { %896 = vrot.lane.b32.xlu1 %v3833_v24, %s3760_s22 }
 0x1b1   : > { %v1929_v53 = vpop.permute.xlu0 %1928 }
 0x1b2   : > { %v1933_v63 = vpop.permute.xlu1 %1932  ;;  %v1935_v5 = vsel %vm1934_vm12, %v1929_v53, %v1931_v21 }
 0x1b3   : > { %v1936_v43 = vsel %vm1934_vm12, %v1931_v21, %v1933_v63  ;;  %2351 = vrot.lane.b32.xlu0 %v2344_v47, %s5215_s6  ;;  %v2463_v63 = vsel %vm642_vm9, %v4589_v22, %v4577_v32  ;;  %v2467_v32 = vmul.bf16 %v4589_v22, %v3846_v34  ;;  %v2514_v22 = vsel %vm1488_vm1, %v4605_v56, %v4624_v10 }
 0x1b4   : > { %894 = vrot.lane.b32.xlu1 %v3846_v34, %s3760_s22  ;;  %3285 = vmatprep.subr.bf16.mxu0 %v1936_v43  ;;  %v1063_v43 = vsel %vm513_vm2, %v4607_v9, %v4595_v4  ;;  %v2519_v4 = vmul.bf16 %v2514_v22, %v3833_v24  ;;  %vm1380_vm2 = vcmask 162816  }
 0x1b5   : > { %3286 = vmatpush1.bf16.msra.mxu0 %v1935_v5  ;;  %v4706_v6 = vpop.permute.xlu0 %2669  ;;  %v2468_v5 = vmul.bf16 %v2463_v63, %v3833_v24 }
 0x1b6   : > { %v4708_v48 = vpop.permute.xlu1 %1186 }
 0x1b7   : > { %2349 = vrot.lane.b32.xlu0 %v2343_v44, %s5215_s6 }
 0x1b8   : > { %2974 = vrot.lane.b32.xlu1 %v2969_v35, %s3743_s21  ;;  %v1068_v35 = vmul.bf16 %v1063_v43, %v3833_v24  ;;  %v2624_v43 = vmul.bf16 0, %v4689_v14 }
 0x1b9   : > { %v1987_v18 = vpop.permute.xlu0 %1986 }
 0x1ba   : > { %v4714_v25 = vpop.permute.xlu1 %2667 }
 0x1bb   : > { %952 = vrot.lane.b32.xlu0 %v944_v39, %s3731_s26 }
 0x1bc   : > { %2353 = vrot.lane.b32.xlu1 %v2345_v31, %s5215_s6  ;;  %s5218_s6 = smov 81  }
 0x1bd   : > { %v4740_v16 = vpop.permute.xlu0 %1239 }
 0x1be   : > { %v1985_v40 = vpop.permute.xlu1 %1984 }
 0x1bf   : > { %v1989_v29 = vsel %vm771_vm8, %v1985_v40, %v1987_v18  ;;  %2404 = vrot.lane.b32.xlu0 %v2397_v37, %s3733_s10  ;;  %v1067_v18 = vmul.bf16 %v4607_v9, %v3846_v34  ;;  %v1116_v9 = vsel %vm458_vm0, %v4622_v7, %v4642_v36  ;;  %vm1435_vm0 = vcmask 154624  }
 0x1c0   : > { %950 = vrot.lane.b32.xlu1 %v943_v59, %s3731_s26  ;;  %3287 = vmatprep.subr.bf16.mxu0 %v1989_v29  ;;  %v2520_v59 = vmul.bf16 0, %v4624_v10 }
 0x1c1   : > { %v4749_v57 = vpop.permute.xlu0 %2738 }
 0x1c2   : > { %v4751_v15 = vpop.permute.xlu1 %1237 }
 0x1c3   : > { %2402 = vrot.lane.b32.xlu0 %v2396_v58, %s3733_s10 }
 0x1c4   : > { %948 = vrot.lane.b32.xlu1 %v942_v60, %s3731_s26  ;;  %v1121_v60 = vmul.bf16 %v1116_v9, %v3833_v24 }
 0x1c5   : > { %v2042_v8 = vpop.permute.xlu0 %2041 }
 0x1c6   : > { %v1983_v11 = vpop.permute.xlu1 %1982 }
 0x1c7   : > { %v1988_v54 = vsel %vm771_vm8, %v1983_v11, %v1985_v40  ;;  %1005 = vrot.lane.b32.xlu0 %v997_v62, %s5216_s8  ;;  %v1120_v11 = vmul.bf16 %v4622_v7, %v3846_v34 }
 0x1c8   : > { %2406 = vrot.lane.b32.xlu1 %v2398_v30, %s3733_s10  ;;  %3288 = vmatpush1.bf16.msra.mxu0 %v1988_v54 }
 0x1c9   : > { %v4764_v21 = vpop.permute.xlu0 %1308  ;;  %3289 = vmatprep.subr.bf16.mxu0 %v3833_v24 }
 0x1ca   : > { %v4766_v55 = vpop.permute.xlu1 %2740  ;;  %v1316_v26 = vmul.bf16 %v4764_v21, %v3846_v34 }
 0x1cb   : > { %2422 = vrot.lane.b32.xlu0 %v3833_v24, %s3760_s22 }
 0x1cc   : > { %1003 = vrot.lane.b32.xlu1 %v996_v51, %s5216_s8  ;;  %3290 = vmatpush1.bf16.msra.mxu0 %v3846_v34 }
 0x1cd   : > { %v2040_v23 = vpop.permute.xlu0 %2039 }
 0x1ce   : > { %v2044_v1 = vpop.permute.xlu1 %2043  ;;  %v2045_v19 = vsel %vm754_vm5, %v2040_v23, %v2042_v8 }
 0x1cf   : > { %v2046_v0 = vsel %vm754_vm5, %v2042_v8, %v2044_v1  ;;  %1021 = vrot.lane.b32.xlu0 %v3833_v24, %s3761_s20  ;;  %v2518_v8 = vmul.bf16 %v4605_v56, %v3846_v34  ;;  %v1122_v56 = vmul.bf16 0, %v4642_v36  ;;  %v2567_v1 = vsel %vm1435_vm0, %v4654_v20, %v4640_v27 }
 0x1d0   : > { %1001 = vrot.lane.b32.xlu1 %v995_v33, %s5216_s8  ;;  %3291 = vmatprep.subr.bf16.mxu0 %v2046_v0  ;;  %v2573_v33 = vmul.bf16 0, %v4640_v27  ;;  %v2572_v0 = vmul.bf16 %v2567_v1, %v3833_v24  ;;  %v1247_v1 = vmul.bf16 0, %v4740_v16 }
 0x1d1   : > { %3292 = vmatpush1.bf16.msra.mxu0 %v2045_v19  ;;  %v4779_v49 = vpop.permute.xlu0 %2793 }
 0x1d2   : > { %v4781_v45 = vpop.permute.xlu1 %1310 }
 0x1d3   : > { %1019 = vrot.lane.b32.xlu0 %v3846_v34, %s3761_s20 }
 0x1d4   : > { %2420 = vrot.lane.b32.xlu1 %v3846_v34, %s3760_s22 }
 0x1d5   : > { %v2095_v47 = vpop.permute.xlu0 %2094 }
 0x1d6   : > { %v4787_v53 = vpop.permute.xlu1 %2791 }
 0x1d7   : > { %2477 = vrot.lane.b32.xlu0 %v2469_v61, %s3731_s26 }
 0x1d8   : > { %1023 = vrot.lane.b32.xlu1 %v3721_v2, %s3761_s20 }
 0x1d9   : > { %v4799_v44 = vpop.permute.xlu0 %1361 }
 0x1da   : > { %v2093_v31 = vpop.permute.xlu1 %2092 }
 0x1db   : > { %v2097_v39 = vsel %vm1917_vm14, %v2093_v31, %v2095_v47  ;;  %1075 = vrot.lane.b32.xlu0 %v1068_v35, %s5217_s11  ;;  %v2571_v47 = vmul.bf16 %v4654_v20, %v3846_v34  ;;  %v1188_v20 = vsel %vm384_vm15, %v4687_v52, %v4708_v48 }
 0x1dc   : > { %2475 = vrot.lane.b32.xlu1 %v2468_v5, %s3731_s26  ;;  %3293 = vmatprep.subr.bf16.mxu0 %v2097_v39 }
 0x1dd   : > { %v768_v13 = vpop.permute.xlu0 %767 }
 0x1de   : > { %v4808_v41 = vpop.permute.xlu1 %1359 }
 0x1df   : > { %1073 = vrot.lane.b32.xlu0 %v1067_v18, %s5217_s11 }
 0x1e0   : > { %2473 = vrot.lane.b32.xlu1 %v2467_v32, %s3731_s26 }
 0x1e1   : > { %v766_v37 = vpop.permute.xlu0 %765 }
 0x1e2   : > { %v2091_v40 = vpop.permute.xlu1 %2090  ;;  %v772_v10 = vsel %vm771_vm8, %v766_v37, %v768_v13  ;;  %v1192_v37 = vmul.bf16 %v4687_v52, %v3846_v34  ;;  %v2671_v52 = vsel %vm5222_vm7, %v4714_v25, %v4706_v6  ;;  %vm900_vm7 = vcmask 916480  }
 0x1e3   : > { %v2096_v29 = vsel %vm1917_vm14, %v2091_v40, %v2093_v31  ;;  %2528 = vrot.lane.b32.xlu0 %v2520_v59, %s3759_s5  ;;  %v2618_v31 = vsel %vm1380_vm2, %v4672_v42, %v4689_v14  ;;  %v2622_v59 = vmul.bf16 %v4672_v42, %v3846_v34  ;;  %vm5227_vm14 = vcmask 924672  }
 0x1e4   : > { %1077 = vrot.lane.b32.xlu1 %v1069_v12, %s5217_s11  ;;  %3294 = vmatpush1.bf16.msra.mxu0 %v2096_v29  ;;  %v2623_v18 = vmul.bf16 %v2618_v31, %v3833_v24  ;;  %v2677_v29 = vmul.bf16 %v4706_v6, %v3833_v24  ;;  %v2675_v6 = vmul.bf16 0, %v4714_v25  ;;  %vm5229_vm15 = vmmov %vm5227_vm14 }
 0x1e5   : > { %v2148_v58 = vpop.permute.xlu0 %2147  ;;  %vm5230_vm12 = vmmov %vm5227_vm14 }
 0x1e6   : > { %v770_v30 = vpop.permute.xlu1 %769  ;;  %v2742_v31 = vsel %vm5230_vm12, %v4749_v57, %v4766_v55  ;;  %vm1418_vm12 = vcmask 891904  }
 0x1e7   : > { %v773_v62 = vsel %vm771_vm8, %v768_v13, %v770_v30  ;;  %1128 = vrot.lane.b32.xlu0 %v1121_v60, %s5218_s6  ;;  %v1193_v13 = vmul.bf16 %v1188_v20, %v3833_v24 }
 0x1e8   : > { %2526 = vrot.lane.b32.xlu1 %v2519_v4, %s3759_s5  ;;  %3211 = vmatprep.subr.bf16.mxu1 %v773_v62  ;;  %v1194_v4 = vmul.bf16 0, %v4708_v48  ;;  %v2676_v62 = vmul.bf16 %v2671_v52, %v3846_v34 }
 0x1e9   : > { %3212 = vmatpush1.bf16.msra.mxu1 %v772_v10  ;;  %v4833_v3 = vpop.permute.xlu0 %1416 }
 0x1ea   : > { %v2146_v54 = vpop.permute.xlu1 %2145  ;;  %3213 = vmatprep.subr.bf16.mxu1 %v3833_v24 }
 0x1eb   : > { %v2150_v51 = vsel %vm1864_vm13, %v2146_v54, %v2148_v58  ;;  %1126 = vrot.lane.b32.xlu0 %v1120_v11, %s5218_s6  ;;  %v1241_v58 = vsel %vm5223_vm10, %v4751_v15, %v4740_v16  ;;  %v1245_v11 = vmul.bf16 %v4751_v15, %v3846_v34 }
 0x1ec   : > { %2524 = vrot.lane.b32.xlu1 %v2518_v8, %s3759_s5  ;;  %3295 = vmatprep.subr.bf16.mxu0 %v2150_v51  ;;  %s3762_s5 = smov 80   ;;  %v1246_v48 = vmul.bf16 %v1241_v58, %v3833_v24 }
 0x1ed   : > { %v4841_v23 = vpop.permute.xlu0 %2848  ;;  %3214 = vmatpush1.bf16.msra.mxu1 %v3846_v34 }
 0x1ee   : > { %v4843_v7 = vpop.permute.xlu1 %1414 }
 0x1ef   : > { %2581 = vrot.lane.b32.xlu0 %v2573_v33, %s3758_s18 }
 0x1f0   : > { %1130 = vrot.lane.b32.xlu1 %v1122_v56, %s5218_s6 }
 0x1f1   : > { %v2197_v19 = vpop.permute.xlu0 %2196 }
 0x1f2   : > { %v2144_v61 = vpop.permute.xlu1 %2143 }
 0x1f3   : > { %v2149_v36 = vsel %vm1864_vm13, %v2144_v61, %v2146_v54  ;;  %1146 = vrot.lane.b32.xlu0 %v3833_v24, %s3762_s5  ;;  %vm5225_vm13 = vmmov %vm5224_vm11 }
 0x1f4   : > { %2579 = vrot.lane.b32.xlu1 %v2572_v0, %s3758_s18  ;;  %3296 = vmatpush1.bf16.msra.mxu0 %v2149_v36 }
 0x1f5   : > { %v4857_v27 = vpop.permute.xlu0 %1467 }
 0x1f6   : > { %v4859_v63 = vpop.permute.xlu1 %2850 }
 0x1f7   : > { %1144 = vrot.lane.b32.xlu0 %v3846_v34, %s3762_s5 }
 0x1f8   : > { %2577 = vrot.lane.b32.xlu1 %v2571_v47, %s3758_s18  ;;  %s5221_s18 = smov 79  }
 0x1f9   : > { %v2195_v5 = vpop.permute.xlu0 %2194 }
 0x1fa   : > { %v2199_v35 = vpop.permute.xlu1 %2198  ;;  %v2200_v32 = vsel %vm5220_vm6, %v2195_v5, %v2197_v19  ;;  %vm5232_vm6 = vcmask 941056  }
 0x1fb   : > { %v2201_v39 = vsel %vm5219_vm4, %v2197_v19, %v2199_v35  ;;  %2632 = vrot.lane.b32.xlu0 %v2624_v43, %s3757_s29  ;;  %v2748_v43 = vmul.bf16 %v4766_v55, %v3833_v24  ;;  %vm5231_vm4 = vcmask 531456   ;;  %vm5233_vm10 = vmmov %vm5232_vm6  ;;  %v2747_v55 = vmul.bf16 %v2742_v31, %v3846_v34 }
 0x1fc   : > { %1148 = vrot.lane.b32.xlu1 %v3721_v2, %s3762_s5  ;;  %3297 = vmatprep.subr.bf16.mxu0 %v2201_v39  ;;  %v1312_v20 = vsel %vm5231_vm4, %v4764_v21, %v4781_v45  ;;  %v2795_v21 = vsel %vm754_vm5, %v4787_v53, %v4779_v49 }
 0x1fd   : > { %3298 = vmatpush1.bf16.msra.mxu0 %v2200_v32  ;;  %v828_v12 = vpop.permute.xlu0 %827  ;;  %v2800_v52 = vmul.bf16 %v2795_v21, %v3846_v34 }
 0x1fe   : > { %v4876_v14 = vpop.permute.xlu1 %1469 }
 0x1ff   : > { %1200 = vrot.lane.b32.xlu0 %v1193_v13, %s5221_s18  ;;  %v1317_v13 = vmul.bf16 %v1312_v20, %v3833_v24 }
 0x200   : > { %2630 = vrot.lane.b32.xlu1 %v2623_v18, %s3757_s29 }
 0x201   : > { %v4884_v40 = vpop.permute.xlu0 %2901 }
 0x202   : > { %v826_v22 = vpop.permute.xlu1 %825 }
 0x203   : > { %v830_v9 = vsel %vm754_vm5, %v826_v22, %v828_v12  ;;  %1198 = vrot.lane.b32.xlu0 %v1192_v37, %s5221_s18 }
 0x204   : > { %2628 = vrot.lane.b32.xlu1 %v2622_v59, %s3757_s29  ;;  %3215 = vmatprep.subr.bf16.mxu1 %v830_v9  ;;  %s5226_s29 = smov 16  }
 0x205   : > { %v2248_v60 = vpop.permute.xlu0 %2247 }
 0x206   : > { %v824_v42 = vpop.permute.xlu1 %823 }
 0x207   : > { %v829_v30 = vsel %vm754_vm5, %v824_v42, %v826_v22  ;;  %2685 = vrot.lane.b32.xlu0 %v2677_v29, %s3743_s21  ;;  %v2746_v22 = vmul.bf16 0, %v4749_v57  ;;  %v2801_v29 = vmul.bf16 %v4779_v49, %v3833_v24 }
 0x208   : > { %1202 = vrot.lane.b32.xlu1 %v1194_v4, %s5221_s18  ;;  %3216 = vmatpush1.bf16.msra.mxu1 %v829_v30  ;;  %v1318_v4 = vmul.bf16 0, %v4781_v45 }
 0x209   : > { %v4903_v10 = vpop.permute.xlu0 %1522 }
 0x20a   : > { %v4905_v8 = vpop.permute.xlu1 %2903 }
 0x20b   : > { %1253 = vrot.lane.b32.xlu0 %v1246_v48, %s3724_s7  ;;  %v2799_v48 = vmul.bf16 0, %v4787_v53  ;;  %v1370_v53 = vmul.bf16 %v4799_v44, %v3833_v24 }
 0x20c   : > { %2683 = vrot.lane.b32.xlu1 %v2676_v62, %s3743_s21 }
 0x20d   : > { %v2246_v54 = vpop.permute.xlu0 %2245 }
 0x20e   : > { %v2250_v51 = vpop.permute.xlu1 %2249  ;;  %v2251_v56 = vsel %vm5225_vm13, %v2246_v54, %v2248_v60  ;;  %vm5234_vm13 = vcmask 932864  }
 0x20f   : > { %v2252_v33 = vsel %vm5224_vm11, %v2248_v60, %v2250_v51  ;;  %1251 = vrot.lane.b32.xlu0 %v1245_v11, %s3724_s7  ;;  %vm1363_vm11 = vcmask 883712  }
 0x210   : > { %2681 = vrot.lane.b32.xlu1 %v2675_v6, %s3743_s21  ;;  %3299 = vmatprep.subr.bf16.mxu0 %v2252_v33  ;;  %v1364_v42 = vsel %vm1363_vm11, %v4808_v41, %v4799_v44  ;;  %v1368_v6 = vmul.bf16 0, %v4808_v41  ;;  %v1425_v41 = vmul.bf16 %v4833_v3, %v3833_v24 }
 0x211   : > { %3300 = vmatpush1.bf16.msra.mxu0 %v2251_v56  ;;  %v881_v0 = vpop.permute.xlu0 %880  ;;  %v1369_v58 = vmul.bf16 %v1364_v42, %v3846_v34 }
 0x212   : > { %v4917_v19 = vpop.permute.xlu1 %1524 }
 0x213   : > { %2703 = vrot.lane.b32.xlu0 %v3833_v24, %s5226_s29 }
 0x214   : > { %1255 = vrot.lane.b32.xlu1 %v1247_v1, %s3724_s7  ;;  %v1419_v1 = vsel %vm1418_vm12, %v4843_v7, %v4833_v3 }
 0x215   : > { %v2301_v25 = vpop.permute.xlu0 %2300  ;;  %v1424_v17 = vmul.bf16 %v1419_v1, %v3846_v34 }
 0x216   : > { %v879_v15 = vpop.permute.xlu1 %878 }
 0x217   : > { %v883_v61 = vsel %vm5227_vm14, %v879_v15, %v881_v0  ;;  %1271 = vrot.lane.b32.xlu0 %v3833_v24, %s5228_s9  ;;  %vm5235_vm14 = vmmov %vm5234_vm13  ;;  %v2852_v0 = vsel %vm771_vm8, %v4841_v23, %v4859_v63 }
 0x218   : > { %2701 = vrot.lane.b32.xlu1 %v3846_v34, %s5226_s29  ;;  %3217 = vmatprep.subr.bf16.mxu1 %v883_v61  ;;  %v2857_v38 = vmul.bf16 %v2852_v0, %v3833_v24 }
 0x219   : > { %v2299_v16 = vpop.permute.xlu0 %2298 }
 0x21a   : > { %v877_v36 = vpop.permute.xlu1 %876  ;;  %v2304_v18 = vsel %vm5233_vm10, %v2299_v16, %v2301_v25  ;;  %v2856_v16 = vmul.bf16 %v4841_v23, %v3846_v34  ;;  %v1478_v23 = vmul.bf16 %v4876_v14, %v3833_v24 }
 0x21b   : > { %v882_v47 = vsel %vm5229_vm15, %v877_v36, %v879_v15  ;;  %1269 = vrot.lane.b32.xlu0 %v3846_v34, %s5228_s9  ;;  %vm5236_vm15 = vcmask 908288   ;;  %v1423_v36 = vmul.bf16 0, %v4843_v7 }
 0x21c   : > { %2699 = vrot.lane.b32.xlu1 %v3721_v2, %s5226_s29  ;;  %3218 = vmatpush1.bf16.msra.mxu1 %v882_v47  ;;  %vm5237_vm4 = vmmov %vm5236_vm15 }
 0x21d   : > { %v4934_v5 = vpop.permute.xlu0 %3611 }
 0x21e   : > { %v2303_v35 = vpop.permute.xlu1 %2302  ;;  %v3613_v39 = vunpack.i.l.bf16 %v4934_v5  ;;  %v3614_v3 = vunpack.i.h.bf16 %v4934_v5  ;;  %v2858_v5 = vmul.bf16 0, %v4859_v63 }
 0x21f   : > { %v2305_v32 = vsel %vm5232_vm6, %v2301_v25, %v2303_v35  ;;  %2756 = vrot.lane.b32.xlu0 %v2748_v43, %s3745_s24  ;;  %3220 = vmatmul.mubr.bf16.vlgmr.msra.gmra.mrb[0].mxu1 %v3531_v46  ;;  %vm5238_vm6 = vcmask 924672  }
 0x220   : > { %1273 = vrot.lane.b32.xlu1 %v3721_v2, %s5228_s9  ;;  %3301 = vmatprep.subr.bf16.mxu0 %v2305_v32  ;;  %vm5239_vm10 = vmmov %vm5238_vm6  ;;  %v2905_v32 = vsel %vm716_vm3, %v4884_v40, %v4905_v8 }
 0x221   : > { %3302 = vmatpush1.bf16.msra.mxu0 %v2304_v18  ;;  %v4953_v12 = vpop.permute.xlu0 %2972 }
 0x222   : > { %v897_v59 = vpop.permute.xlu1 %896 }
 0x223   : > { %v902_v37 = vsel %vm900_vm7, %v897_v59, %v3613_v39  ;;  %1324 = vrot.lane.b32.xlu0 %v1317_v13, %s3723_s30 }
 0x224   : > { %2754 = vrot.lane.b32.xlu1 %v2747_v55, %s3745_s24  ;;  %3230 = vmatprep.subr.bf16.mxu1 %v902_v37  ;;  %v2910_v55 = vmul.bf16 %v2905_v32, %v3833_v24 }
 0x225   : > { %v2352_v50 = vpop.permute.xlu0 %2351 }
 0x226   : > { %v895_v46 = vpop.permute.xlu1 %894 }
 0x227   : > { %v901_v9 = vsel %vm900_vm7, %v895_v46, %v897_v59  ;;  %1322 = vrot.lane.b32.xlu0 %v1316_v26, %s3723_s30 }
 0x228   : > { %2752 = vrot.lane.b32.xlu1 %v2746_v22, %s3745_s24  ;;  %3231 = vmatpush1.bf16.msra.mxu1 %v901_v9  ;;  %v2909_v22 = vmul.bf16 %v4884_v40, %v3846_v34 }
 0x229   : > { %v2350_v60 = vpop.permute.xlu0 %2349 }
 0x22a   : > { %v4967_v57 = vpop.permute.xlu1 %2974  ;;  %v2355_v49 = vsel %vm5235_vm14, %v2350_v60, %v2352_v50  ;;  %vm1471_vm14 = vcmask 900096  }
 0x22b   : > { %2809 = vrot.lane.b32.xlu0 %v2801_v29, %s3747_s19  ;;  %v1472_v39 = vsel %vm1471_vm14, %v4857_v27, %v4876_v14  ;;  %v1476_v14 = vmul.bf16 0, %v4857_v27  ;;  %v2911_v29 = vmul.bf16 0, %v4905_v8 }
 0x22c   : > { %1326 = vrot.lane.b32.xlu1 %v1318_v4, %s3723_s30  ;;  %v1477_v63 = vmul.bf16 %v1472_v39, %v3846_v34  ;;  %v1532_v4 = vmul.bf16 %v4917_v19, %v3833_v24 }
 0x22d   : > { %v953_v45 = vpop.permute.xlu0 %952 }
 0x22e   : > { %v2354_v30 = vpop.permute.xlu1 %2353 }
 0x22f   : > { %v2356_v62 = vsel %vm5234_vm13, %v2352_v50, %v2354_v30  ;;  %1376 = vrot.lane.b32.xlu0 %v1369_v58, %s3756_s23  ;;  %vm5240_vm13 = vcmask 793600  }
 0x230   : > { %2807 = vrot.lane.b32.xlu1 %v2800_v52, %s3747_s19  ;;  %3303 = vmatprep.subr.bf16.mxu0 %v2356_v62 }
 0x231   : > { %3304 = vmatpush1.bf16.msra.mxu0 %v2355_v49  ;;  %v2405_v11 = vpop.permute.xlu0 %2404  ;;  %v5062_v49 = vld [vmem:[%s5176_s1 + $0x8] sm:$0xff] }
 0x232   : > { %v951_v54 = vpop.permute.xlu1 %950 }
 0x233   : > { %v955_v51 = vsel %vm5236_vm15, %v951_v54, %v953_v45  ;;  %1374 = vrot.lane.b32.xlu0 %v1368_v6, %s3756_s23  ;;  %vm5241_vm15 = vmmov %vm5240_vm13 }
 0x234   : > { %2805 = vrot.lane.b32.xlu1 %v2799_v48, %s3747_s19  ;;  %3232 = vmatprep.subr.bf16.mxu1 %v955_v51  ;;  %v5067_v48 = vld [vmem:[%s5176_s1 + $0x28] sm:$0xff] }
 0x235   : > { %3306 = vmatmul.mubr.bf16.vlgmr.msra.gmra.mrb[0].mxu0 %v3535_v28  ;;  %v2403_v33 = vpop.permute.xlu0 %2402  ;;  %v3533_v6 = vcombine.low %v5062_v49, %v5067_v48 }
 0x236   : > { %v949_v56 = vpop.permute.xlu1 %948  ;;  %v2408_v61 = vsel %vm5239_vm10, %v2403_v33, %v2405_v11  ;;  %v5085_v33 = vld [vmem:[%s5176_s1 + $0x18] sm:$0xff] }
 0x237   : > { %v954_v25 = vsel %vm5237_vm4, %v949_v56, %v951_v54  ;;  %1433 = vrot.lane.b32.xlu0 %v1425_v41, %s3755_s25  ;;  %vm1025_vm4 = vcmask 785408   ;;  %v5090_v56 = vld [vmem:[%s5176_s1 + $0x38] sm:$0xff] }
 0x238   : > { %1378 = vrot.lane.b32.xlu1 %v1370_v53, %s3756_s23  ;;  %3233 = vmatpush1.bf16.msra.mxu1 %v954_v25  ;;  %v2976_v53 = vsel %vm642_vm9, %v4953_v12, %v4967_v57 }
 0x239   : > { %v1006_v28 = vpop.permute.xlu0 %1005  ;;  %v2981_v1 = vmul.bf16 %v2976_v53, %v3833_v24 }
 0x23a   : > { %v2407_v44 = vpop.permute.xlu1 %2406 }
 0x23b   : > { %v2409_v15 = vsel %vm5238_vm6, %v2405_v11, %v2407_v44  ;;  %2864 = vrot.lane.b32.xlu0 %v2857_v38, %s3746_s12  ;;  %vm5242_vm6 = vcmask 908288   ;;  %v3534_v11 = vcombine.high %v5062_v49, %v5067_v48  ;;  %v3537_v38 = vcombine.low %v5085_v33, %v5090_v56  ;;  %v3366_v49 = vld [vmem:[%s3822_s27 + $0x38] sm:$0xff] }
 0x23c   : > { %1431 = vrot.lane.b32.xlu1 %v1424_v17, %s3755_s25  ;;  %3316 = vmatprep.subr.bf16.mxu0 %v2409_v15  ;;  %v1526_v40 = vsel %vm5242_vm6, %v4903_v10, %v4917_v19  ;;  %vm5243_vm10 = vmmov %vm5242_vm6  ;;  %v1530_v19 = vmul.bf16 0, %v4903_v10  ;;  %v3538_v17 = vcombine.high %v5085_v33, %v5090_v56  ;;  %v2980_v44 = vmul.bf16 %v4953_v12, %v3846_v34  ;;  %v3133_v12 = vld [vmem:[%s5177_s2 + $0x8] sm:$0xff] }
 0x23d   : > { %3317 = vmatpush1.bf16.msra.mxu0 %v2408_v61  ;;  %v2423_v47 = vpop.permute.xlu0 %2422  ;;  %v1531_v42 = vmul.bf16 %v1526_v40, %v3846_v34  ;;  %3262 = vmatprep.mubr.bf16.mxu1 %v3534_v11 }
 0x23e   : > { %v1004_v43 = vpop.permute.xlu1 %1003  ;;  %v2427_v31 = vsel %vm900_vm7, %v2423_v47, %v3614_v3  ;;  %3539 = vmatprep.mubr.msk.bf16.mxu0 %vm900_vm7, %v3538_v17 }
 0x23f   : > { %v1008_v35 = vsel %vm5240_vm13, %v1004_v43, %v1006_v28  ;;  %2862 = vrot.lane.b32.xlu0 %v2856_v16, %s3746_s12  ;;  %3318 = vmatprep.subr.bf16.mxu0 %v2427_v31  ;;  %vm5244_vm13 = vmmov %vm5242_vm6  ;;  %vm5247_vm6 = vcmask 662528  }
 0x240   : > { %1429 = vrot.lane.b32.xlu1 %v1423_v36, %s3755_s25  ;;  %3234 = vmatprep.subr.bf16.mxu1 %v1008_v35  ;;  %v2982_v36 = vmul.bf16 0, %v4967_v57 }
 0x241   : > { %v1022_v7 = vpop.permute.xlu0 %1021 }
 0x242   : > { %v1002_v20 = vpop.permute.xlu1 %1001 }
 0x243   : > { %v1007_v18 = vsel %vm5241_vm15, %v1002_v20, %v1004_v43  ;;  %1486 = vrot.lane.b32.xlu0 %v1478_v23, %s3754_s17  ;;  %vm5245_vm15 = vcmask 777216  }
 0x244   : > { %2866 = vrot.lane.b32.xlu1 %v2858_v5, %s3746_s12  ;;  %3235 = vmatpush1.bf16.msra.mxu1 %v1007_v18 }
 0x245   : > { %v1020_v13 = vpop.permute.xlu0 %1019 }
 0x246   : > { %v2421_v59 = vpop.permute.xlu1 %2420  ;;  %v1026_v9 = vsel %vm1025_vm4, %v1020_v13, %v1022_v7 }
 0x247   : > { %v2426_v37 = vsel %vm900_vm7, %v2421_v59, %v2423_v47  ;;  %2917 = vrot.lane.b32.xlu0 %v2910_v55, %s3733_s10 }
 0x248   : > { %1484 = vrot.lane.b32.xlu1 %v1477_v63, %s3754_s17  ;;  %3319 = vmatpush1.bf16.msra.mxu0 %v2426_v37 }
 0x249   : > { %v2478_v26 = vpop.permute.xlu0 %2477 }
 0x24a   : > { %v1024_v50 = vpop.permute.xlu1 %1023 }
 0x24b   : > { %v1027_v46 = vsel %vm1025_vm4, %v1022_v7, %v1024_v50  ;;  %2915 = vrot.lane.b32.xlu0 %v2909_v22, %s3733_s10  ;;  %vm5246_vm4 = vmmov %vm5245_vm15 }
 0x24c   : > { %1482 = vrot.lane.b32.xlu1 %v1476_v14, %s3754_s17  ;;  %3236 = vmatprep.subr.bf16.mxu1 %v1027_v46 }
 0x24d   : > { %3237 = vmatpush1.bf16.msra.mxu1 %v1026_v9  ;;  %v1076_v27 = vpop.permute.xlu0 %1075 }
 0x24e   : > { %v2476_v60 = vpop.permute.xlu1 %2475 }
 0x24f   : > { %v2480_v21 = vsel %vm5243_vm10, %v2476_v60, %v2478_v26  ;;  %1540 = vrot.lane.b32.xlu0 %v1532_v4, %s3743_s21  ;;  %vm1150_vm10 = vcmask 654336  }
 0x250   : > { %2919 = vrot.lane.b32.xlu1 %v2911_v29, %s3733_s10  ;;  %3320 = vmatprep.subr.bf16.mxu0 %v2480_v21 }
 0x251   : > { %v1074_v8 = vpop.permute.xlu0 %1073 }
 0x252   : > { %v2474_v52 = vpop.permute.xlu1 %2473  ;;  %v1079_v10 = vsel %vm5246_vm4, %v1074_v8, %v1076_v27  ;;  %vm5253_vm4 = vcmask 130048  }
 0x253   : > { %v2479_v58 = vsel %vm5244_vm13, %v2474_v52, %v2476_v60  ;;  %2935 = vrot.lane.b32.xlu0 %v3833_v24, %s3760_s22 }
 0x254   : > { %1538 = vrot.lane.b32.xlu1 %v1531_v42, %s3743_s21  ;;  %3321 = vmatpush1.bf16.msra.mxu0 %v2479_v58 }
 0x255   : > { %v2529_v45 = vpop.permute.xlu0 %2528 }
 0x256   : > { %v1078_v30 = vpop.permute.xlu1 %1077 }
 0x257   : > { %v1080_v62 = vsel %vm5245_vm15, %v1076_v27, %v1078_v30  ;;  %2933 = vrot.lane.b32.xlu0 %v3846_v34, %s3760_s22 }
 0x258   : > { %1536 = vrot.lane.b32.xlu1 %v1530_v19, %s3743_s21  ;;  %3238 = vmatprep.subr.bf16.mxu1 %v1080_v62 }
 0x259   : > { %3239 = vmatpush1.bf16.msra.mxu1 %v1079_v10  ;;  %v1129_v54 = vpop.permute.xlu0 %1128 }
 0x25a   : > { %v2527_v51 = vpop.permute.xlu1 %2526 }
 0x25b   : > { %v2531_v41 = vsel %vm1471_vm14, %v2527_v51, %v2529_v45  ;;  %1558 = vrot.lane.b32.xlu0 %v3833_v24, %s5226_s29 }
 0x25c   : > { %2937 = vrot.lane.b32.xlu1 %v3721_v2, %s3760_s22  ;;  %3322 = vmatprep.subr.bf16.mxu0 %v2531_v41 }
 0x25d   : > { %v1127_v0 = vpop.permute.xlu0 %1126 }
 0x25e   : > { %v2525_v25 = vpop.permute.xlu1 %2524 }
 0x25f   : > { %v2530_v28 = vsel %vm1471_vm14, %v2525_v25, %v2527_v51  ;;  %2988 = vrot.lane.b32.xlu0 %v2981_v1, %s3731_s26  ;;  %vm5248_vm14 = vmmov %vm5247_vm6 }
 0x260   : > { %1556 = vrot.lane.b32.xlu1 %v3846_v34, %s5226_s29  ;;  %3323 = vmatpush1.bf16.msra.mxu0 %v2530_v28  ;;  %v1132_v16 = vsel %vm5248_vm14, %v1127_v0, %v1129_v54  ;;  %vm5255_vm14 = vcmask 523264  }
 0x261   : > { %v2582_v15 = vpop.permute.xlu0 %2581 }
 0x262   : > { %v1131_v3 = vpop.permute.xlu1 %1130 }
 0x263   : > { %v1133_v61 = vsel %vm5247_vm6, %v1129_v54, %v1131_v3  ;;  %2986 = vrot.lane.b32.xlu0 %v2980_v44, %s3731_s26  ;;  %vm5254_vm6 = vmmov %vm5253_vm4 }
 0x264   : > { %1554 = vrot.lane.b32.xlu1 %v3721_v2, %s5226_s29  ;;  %3240 = vmatprep.subr.bf16.mxu1 %v1133_v61  ;;  %v3132_v2 = vld [vmem:[%s5177_s2] sm:$0xff] }
 0x265   : > { %3241 = vmatpush1.bf16.msra.mxu1 %v1132_v16  ;;  %v1147_v47 = vpop.permute.xlu0 %1146 }
 0x266   : > { %v2580_v43 = vpop.permute.xlu1 %2579 }
 0x267   : > { %v2584_v35 = vsel %vm1418_vm12, %v2580_v43, %v2582_v15  ;;  %3141 = vperm.xlu0 %3616, %v3133_v12  }
 0x268   : > { %2990 = vrot.lane.b32.xlu1 %v2982_v36, %s3731_s26  ;;  %3324 = vmatprep.subr.bf16.mxu0 %v2584_v35  ;;  %s5265_s26 = sshll.u32 %s5267_s16, 6 }
 0x269   : > { %v1145_v31 = vpop.permute.xlu0 %1144  ;;  %s197_s8 = scalar_lea.vmem %s5179_s4, %s5265_s26 }
 0x26a   : > { %v2578_v5 = vpop.permute.xlu1 %2577  ;;  %v1151_v39 = vsel %vm1150_vm10, %v1145_v31, %v1147_v47  ;;  %3370 = vst [vmem:[%s197_s8 + $0x38] sm:$0xff] %v3366_v49 }
 0x26b   : > { %v2583_v57 = vsel %vm1418_vm12, %v2578_v5, %v2580_v43  ;;  %vm5249_vm12 = vcmask 646144  }
 0x26c   : > { %3325 = vmatpush1.bf16.msra.mxu0 %v2583_v57  ;;  %3136 = vperm.xlu1 %3615, %v3132_v2   ;;  %vm5250_vm13 = vmmov %vm5249_vm12 }
 0x26d   : > { %v2633_v23 = vpop.permute.xlu0 %2632 }
 0x26e   : > { %v1149_v7 = vpop.permute.xlu1 %1148 }
 0x26f   : > { %v1152_v20 = vsel %vm1150_vm10, %v1147_v47, %v1149_v7  ;;  %vm5256_vm10 = vmmov %vm5255_vm14 }
 0x270   : > { %3242 = vmatprep.subr.bf16.mxu1 %v1152_v20 }
 0x271   : > { %3243 = vmatpush1.bf16.msra.mxu1 %v1151_v39  ;;  %v1201_v32 = vpop.permute.xlu0 %1200 }
 0x272   : > { %v2631_v18 = vpop.permute.xlu1 %2630 }
 0x273   : > { %v2635_v63 = vsel %vm1363_vm11, %v2631_v18, %v2633_v23 }
 0x274   : > { %3326 = vmatprep.subr.bf16.mxu0 %v2635_v63 }
 0x275   : > { %v1199_v55 = vpop.permute.xlu0 %1198 }
 0x276   : > { %v2629_v13 = vpop.permute.xlu1 %2628  ;;  %v1204_v26 = vsel %vm5250_vm13, %v1199_v55, %v1201_v32 }
 0x277   : > { %v2634_v59 = vsel %vm1363_vm11, %v2629_v13, %v2631_v18  ;;  %vm5251_vm11 = vcmask 531456  }
 0x278   : > { %3327 = vmatpush1.bf16.msra.mxu0 %v2634_v59  ;;  %vm5252_vm15 = vmmov %vm5251_vm11 }
 0x279   : > { %v2686_v37 = vpop.permute.xlu0 %2685 }
 0x27a   : > { %v1203_v14 = vpop.permute.xlu1 %1202 }
 0x27b   : > { %v1205_v22 = vsel %vm5249_vm12, %v1201_v32, %v1203_v14  ;;  %vm5257_vm12 = vcmask 515072  }
 0x27c   : > { %3244 = vmatprep.subr.bf16.mxu1 %v1205_v22  ;;  %vm5258_vm13 = vmmov %vm5257_vm12 }
 0x27d   : > { %3245 = vmatpush1.bf16.msra.mxu1 %v1204_v26  ;;  %v1254_v50 = vpop.permute.xlu0 %1253 }
 0x27e   : > { %v2684_v46 = vpop.permute.xlu1 %2683 }
 0x27f   : > { %v2688_v9 = vsel %vm642_vm9, %v2684_v46, %v2686_v37 }
 0x280   : > { %3328 = vmatprep.subr.bf16.mxu0 %v2688_v9 }
 0x281   : > { %v1252_v29 = vpop.permute.xlu0 %1251 }
 0x282   : > { %v2682_v4 = vpop.permute.xlu1 %2681  ;;  %v1257_v42 = vsel %vm5252_vm15, %v1252_v29, %v1254_v50 }
 0x283   : > { %v2687_v27 = vsel %vm642_vm9, %v2682_v4, %v2684_v46 }
 0x284   : > { %3329 = vmatpush1.bf16.msra.mxu0 %v2687_v27 }
 0x285   : > { %v2704_v60 = vpop.permute.xlu0 %2703 }
 0x286   : > { %v1256_v40 = vpop.permute.xlu1 %1255 }
 0x287   : > { %v1258_v21 = vsel %vm5251_vm11, %v1254_v50, %v1256_v40 }
 0x288   : > { %3246 = vmatprep.subr.bf16.mxu1 %v1258_v21 }
 0x289   : > { %3247 = vmatpush1.bf16.msra.mxu1 %v1257_v42  ;;  %v1272_v8 = vpop.permute.xlu0 %1271 }
 0x28a   : > { %v2702_v52 = vpop.permute.xlu1 %2701 }
 0x28b   : > { %v2706_v58 = vsel %vm5253_vm4, %v2702_v52, %v2704_v60 }
 0x28c   : > { %3330 = vmatprep.subr.bf16.mxu0 %v2706_v58 }
 0x28d   : > { %v1270_v19 = vpop.permute.xlu0 %1269 }
 0x28e   : > { %v2700_v45 = vpop.permute.xlu1 %2699  ;;  %v1275_v54 = vsel %vm5256_vm10, %v1270_v19, %v1272_v8 }
 0x28f   : > { %v2705_v30 = vsel %vm5254_vm6, %v2700_v45, %v2702_v52 }
 0x290   : > { %3331 = vmatpush1.bf16.msra.mxu0 %v2705_v30 }
 0x291   : > { %v2757_v62 = vpop.permute.xlu0 %2756 }
 0x292   : > { %v1274_v10 = vpop.permute.xlu1 %1273 }
 0x293   : > { %v1276_v11 = vsel %vm5255_vm14, %v1272_v8, %v1274_v10 }
 0x294   : > { %3248 = vmatprep.subr.bf16.mxu1 %v1276_v11 }
 0x295   : > { %3249 = vmatpush1.bf16.msra.mxu1 %v1275_v54  ;;  %v1325_v51 = vpop.permute.xlu0 %1324 }
 0x296   : > { %v2755_v53 = vpop.permute.xlu1 %2754 }
 0x297   : > { %v2759_v41 = vsel %vm716_vm3, %v2755_v53, %v2757_v62 }
 0x298   : > { %3332 = vmatprep.subr.bf16.mxu0 %v2759_v41  ;;  %v3364_v41 = vld [vmem:[%s3822_s27 + $0x28] sm:$0xff] }
 0x299   : > { %v1323_v1 = vpop.permute.xlu0 %1322  ;;  %3368 = vst [vmem:[%s197_s8 + $0x28] sm:$0xff] %v3364_v41 }
 0x29a   : > { %v2753_v0 = vpop.permute.xlu1 %2752  ;;  %v1328_v15 = vsel %vm5258_vm13, %v1323_v1, %v1325_v51  ;;  %v3365_v1 = vld [vmem:[%s3822_s27 + $0x30] sm:$0xff] }
 0x29b   : > { %v2758_v25 = vsel %vm716_vm3, %v2753_v0, %v2755_v53  ;;  %vm5259_vm3 = vcmask 924672   ;;  %v3363_v53 = vld [vmem:[%s3822_s27 + $0x20] sm:$0xff]  ;;  %3369 = vst [vmem:[%s197_s8 + $0x30] sm:$0xff] %v3365_v1 }
 0x29c   : > { %3333 = vmatpush1.bf16.msra.mxu0 %v2758_v25  ;;  %3367 = vst [vmem:[%s197_s8 + $0x20] sm:$0xff] %v3363_v53 }
 0x29d   : > { %v2810_v17 = vpop.permute.xlu0 %2809 }
 0x29e   : > { %v1327_v28 = vpop.permute.xlu1 %1326 }
 0x29f   : > { %v1329_v44 = vsel %vm5257_vm12, %v1325_v51, %v1327_v28 }
 0x2a0   : > { %3250 = vmatprep.subr.bf16.mxu1 %v1329_v44 }
 0x2a1   : > { %3251 = vmatpush1.bf16.msra.mxu1 %v1328_v15  ;;  %v1377_v3 = vpop.permute.xlu0 %1376 }
 0x2a2   : > { %v2808_v61 = vpop.permute.xlu1 %2807 }
 0x2a3   : > { %v2812_v16 = vsel %vm771_vm8, %v2808_v61, %v2810_v17 }
 0x2a4   : > { %3334 = vmatprep.subr.bf16.mxu0 %v2812_v16 }
 0x2a5   : > { %v1375_v36 = vpop.permute.xlu0 %1374 }
 0x2a6   : > { %v2806_v47 = vpop.permute.xlu1 %2805  ;;  %v1381_v31 = vsel %vm1380_vm2, %v1375_v36, %v1377_v3 }
 0x2a7   : > { %v2811_v43 = vsel %vm771_vm8, %v2806_v47, %v2808_v61  ;;  %vm5260_vm8 = vmmov %vm5259_vm3 }
 0x2a8   : > { %3335 = vmatpush1.bf16.msra.mxu0 %v2811_v43 }
 0x2a9   : > { %3336 = vmatprep.subr.bf16.mxu0 %v3833_v24  ;;  %v1434_v12 = vpop.permute.xlu0 %1433 }
 0x2aa   : > { %v1379_v35 = vpop.permute.xlu1 %1378 }
 0x2ab   : > { %v1382_v2 = vsel %vm1380_vm2, %v1377_v3, %v1379_v35 }
 0x2ac   : > { %3252 = vmatprep.subr.bf16.mxu1 %v1382_v2  ;;  %3337 = vmatpush1.bf16.msra.mxu0 %v3846_v34 }
 0x2ad   : > { %3253 = vmatpush1.bf16.msra.mxu1 %v1381_v31  ;;  %v2865_v5 = vpop.permute.xlu0 %2864 }
 0x2ae   : > { %v1432_v57 = vpop.permute.xlu1 %1431 }
 0x2af   : > { %v1437_v23 = vsel %vm1435_vm0, %v1432_v57, %v1434_v12 }
 0x2b0   : > { %3254 = vmatprep.subr.bf16.mxu1 %v1437_v23 }
 0x2b1   : > { %v2863_v7 = vpop.permute.xlu0 %2862 }
 0x2b2   : > { %v1430_v20 = vpop.permute.xlu1 %1429  ;;  %v2868_v63 = vsel %vm754_vm5, %v2863_v7, %v2865_v5 }
 0x2b3   : > { %v1436_v39 = vsel %vm1435_vm0, %v1430_v20, %v1432_v57 }
 0x2b4   : > { %3255 = vmatpush1.bf16.msra.mxu1 %v1436_v39 }
 0x2b5   : > { %v1487_v24 = vpop.permute.xlu0 %1486 }
 0x2b6   : > { %v2867_v32 = vpop.permute.xlu1 %2866 }
 0x2b7   : > { %v2869_v18 = vsel %vm754_vm5, %v2865_v5, %v2867_v32  ;;  %vm5261_vm5 = vmmov %vm5253_vm4 }
 0x2b8   : > { %3338 = vmatprep.subr.bf16.mxu0 %v2869_v18 }
 0x2b9   : > { %3339 = vmatpush1.bf16.msra.mxu0 %v2868_v63  ;;  %v2918_v34 = vpop.permute.xlu0 %2917 }
 0x2ba   : > { %v1485_v55 = vpop.permute.xlu1 %1484 }
 0x2bb   : > { %v1490_v13 = vsel %vm1488_vm1, %v1485_v55, %v1487_v24 }
 0x2bc   : > { %3256 = vmatprep.subr.bf16.mxu1 %v1490_v13 }
 0x2bd   : > { %v2916_v59 = vpop.permute.xlu0 %2915 }
 0x2be   : > { %v1483_v37 = vpop.permute.xlu1 %1482  ;;  %v2921_v46 = vsel %vm5260_vm8, %v2916_v59, %v2918_v34 }
 0x2bf   : > { %v1489_v14 = vsel %vm1488_vm1, %v1483_v37, %v1485_v55  ;;  %vm5263_vm1 = vcmask 908288  }
 0x2c0   : > { %3257 = vmatpush1.bf16.msra.mxu1 %v1489_v14  ;;  %vm5264_vm0 = vmmov %vm5263_vm1 }
 0x2c1   : > { %v1541_v22 = vpop.permute.xlu0 %1540 }
 0x2c2   : > { %v2920_v26 = vpop.permute.xlu1 %2919 }
 0x2c3   : > { %v2922_v50 = vsel %vm5259_vm3, %v2918_v34, %v2920_v26 }
 0x2c4   : > { %3340 = vmatprep.subr.bf16.mxu0 %v2922_v50 }
 0x2c5   : > { %3341 = vmatpush1.bf16.msra.mxu0 %v2921_v46  ;;  %v2936_v9 = vpop.permute.xlu0 %2935 }
 0x2c6   : > { %v1539_v29 = vpop.permute.xlu1 %1538 }
 0x2c7   : > { %v1543_v4 = vsel %vm642_vm9, %v1539_v29, %v1541_v22 }
 0x2c8   : > { %3258 = vmatprep.subr.bf16.mxu1 %v1543_v4 }
 0x2c9   : > { %v2934_v27 = vpop.permute.xlu0 %2933 }
 0x2ca   : > { %v1537_v60 = vpop.permute.xlu1 %1536  ;;  %v2939_v52 = vsel %vm900_vm7, %v2934_v27, %v2936_v9 }
 0x2cb   : > { %v1542_v40 = vsel %vm642_vm9, %v1537_v60, %v1539_v29  ;;  %vm5262_vm9 = vmmov %vm5253_vm4 }
 0x2cc   : > { %3259 = vmatpush1.bf16.msra.mxu1 %v1542_v40 }
 0x2cd   : > { %v1559_v21 = vpop.permute.xlu0 %1558 }
 0x2ce   : > { %v2938_v42 = vpop.permute.xlu1 %2937 }
 0x2cf   : > { %v2940_v8 = vsel %vm900_vm7, %v2936_v9, %v2938_v42 }
 0x2d0   : > { %3342 = vmatprep.subr.bf16.mxu0 %v2940_v8 }
 0x2d1   : > { %3343 = vmatpush1.bf16.msra.mxu0 %v2939_v52  ;;  %v2989_v19 = vpop.permute.xlu0 %2988 }
 0x2d2   : > { %v1557_v58 = vpop.permute.xlu1 %1556 }
 0x2d3   : > { %v1561_v45 = vsel %vm5261_vm5, %v1557_v58, %v1559_v21 }
 0x2d4   : > { %3260 = vmatprep.subr.bf16.mxu1 %v1561_v45 }
 0x2d5   : > { %v2987_v10 = vpop.permute.xlu0 %2986 }
 0x2d6   : > { %v1555_v30 = vpop.permute.xlu1 %1554  ;;  %v2992_v51 = vsel %vm5264_vm0, %v2987_v10, %v2989_v19 }
 0x2d7   : > { %v1560_v62 = vsel %vm5262_vm9, %v1555_v30, %v1557_v58 }
 0x2d8   : > { %3261 = vmatpush1.bf16.msra.mxu1 %v1560_v62 }
 0x2da   : > { %v2991_v11 = vpop.permute.xlu1 %2990 }
 0x2db   : > { %3263 = vmatmul.mubr.bf16.vlgmr.msra.gmra.mrb[0].mxu1 %v3533_v6  ;;  %v2993_v54 = vsel %vm5263_vm1, %v2989_v19, %v2991_v11 }
 0x2dc   : > { %3344 = vmatprep.subr.bf16.mxu0 %v2993_v54 }
 0x2dd   : > { %3345 = vmatpush1.bf16.msra.mxu0 %v2992_v51 }
 0x2e0   : > { %3349 = vmatmul.mubr.bf16.vlgmr.msra.gmra.mrb[0].mxu0 %v3537_v38 }
 0x2e6   : > { %v3142_v17 = vpop.permute.xlu0 %3141 }
 0x2eb   : > { %v3137_v6 = vpop.permute.xlu1 %3136 }
 0x3ae   : > { %v3264_v48 = vpop.f32.mrb[0].mxu1 }
 0x3af   : > { %v3266_v0 = vpop.f32.mrb[1].mxu1  ;;  %v3544_v56 = vadd.f32 %v3264_v48, %v3137_v6 }
 0x3b0   : > { %v3268_v25 = vpop.f32.mrb[2].mxu1  ;;  %v3546_v38 = vadd.f32 %v3266_v0, %v3137_v6 }
 0x3b1   : > { %v3270_v33 = vpop.f32.mrb[3].mxu1  ;;  %v3548_v44 = vadd.f32 %v3268_v25, %v3142_v17 }
 0x3b2   : > { %v3550_v61 = vadd.f32 %v3270_v33, %v3142_v17 }
 0x3b3   : > { %v3350_v28 = vpop.f32.mrb[0].mxu0 }
 0x3b4   : > { %v3545_v15 = vadd.f32 %v3544_v56, %v3350_v28  ;;  %v3352_v3 = vpop.f32.mrb[1].mxu0 }
 0x3b5   : > { %v3547_v16 = vadd.f32 %v3546_v38, %v3352_v3  ;;  %v3354_v36 = vpop.f32.mrb[2].mxu0 }
 0x3b6   : > { %3359 = vst [vmem:[%s197_s8] sm:$0xff] %v3545_v15  ;;  %v3549_v47 = vadd.f32 %v3548_v44, %v3354_v36  ;;  %v3356_v43 = vpop.f32.mrb[3].mxu0 }
 0x3b7   : > { %3360 = vst [vmem:[%s197_s8 + $0x8] sm:$0xff] %v3547_v16  ;;  %v3551_v12 = vadd.f32 %v3550_v61, %v3356_v43 }
 0x3b8   : > { %3361 = vst [vmem:[%s197_s8 + $0x10] sm:$0xff] %v3549_v47 }
 0x3b9   : > { %3362 = vst [vmem:[%s197_s8 + $0x18] sm:$0xff] %v3551_v12 }
 0x3ba PF: > { %s14_s15 = sadd.s32 1, %s3719_s15  }
 0x3bb   : > { %p11_p4 = scmp.ge.s32.totalorder %s14_s15, 4  }
 0x3bd   :  { %13 = sbr.rel (!%p11_p4) target bundleno = 1 (0x1), region = 66 }

</bundles_post_ra>
